<compile_context>
chip_gen: v5e
topology: v5e:2x2
jax: 0.10.0
libtpu: 0.0.40
codegen_flags: <defaults>
</compile_context>

<pallas_src>
import functools

import jax
import jax.numpy as jnp
from jax.experimental import pallas as pl
from jax.experimental.pallas import tpu as pltpu


# ----------------------------- in-kernel helpers -----------------------------

def _layer_norm(x, gamma, beta, eps=1e-6):
    mean = jnp.mean(x, axis=-1, keepdims=True)
    var = jnp.mean((x - mean) ** 2, axis=-1, keepdims=True)
    return (x - mean) * jax.lax.rsqrt(var + eps) * gamma + beta


def _split_heads(t, nb, S, n_heads, dh):
    """(nb*S, n_heads*dh) f32 -> (n_heads*nb, S, dh) bf16, head-major batch order.

    Built once per tensor (H static lane slices + one leading-axis concat) and
    consumed by a single head-batched einsum, instead of one einsum per head.
    """
    heads = [t[:, h * dh:(h + 1) * dh].reshape(nb, S, dh) for h in range(n_heads)]
    return jnp.concatenate(heads, axis=0).astype(jnp.bfloat16)


def _attention(q_rows, kv_rows, mask, wq, bq, wk, bk, wv, bv, wo, bo, n_heads):
    """Multi-head attention on flattened row tiles.

    q_rows:  (nb*Sq, D) bf16   kv_rows: (nb*Sk, D) bf16
    mask:    (nb, Sq, Sk) bf16 with 1.0 == masked (additive -1e9, applied in f32)
    weights: bf16, biases: f32 (1, D)
    """
    nb, Sq, Sk = mask.shape
    D = q_rows.shape[-1]
    dh = D // n_heads
    scale = 1.0 / float(dh) ** 0.5

    # Projections: one big (rows, D) x (D, D) MXU matmul each, f32 accumulate.
    # The softmax scale is folded into Q (cheaper than scaling the score matrix).
    q = (jnp.dot(q_rows, wq, preferred_element_type=jnp.float32) + bq) * scale
    k = jnp.dot(kv_rows, wk, preferred_element_type=jnp.float32) + bk
    v = jnp.dot(kv_rows, wv, preferred_element_type=jnp.float32) + bv

    qh = _split_heads(q, nb, Sq, n_heads, dh)   # (H*nb, Sq, dh) bf16
    kh = _split_heads(k, nb, Sk, n_heads, dh)   # (H*nb, Sk, dh) bf16
    vh = _split_heads(v, nb, Sk, n_heads, dh)   # (H*nb, Sk, dh) bf16

    # Additive mask, tiled once across heads (matches the head-major batch order).
    neg = jnp.tile(mask.astype(jnp.float32) * (-1e9), (n_heads, 1, 1))

    # Scores + online-free softmax + PV: each ONE einsum batched over (H*nb).
    s = jnp.einsum("bqd,bkd->bqk", qh, kh,
                   preferred_element_type=jnp.float32) + neg
    m = jnp.max(s, axis=-1, keepdims=True)
    e = jnp.exp(s - m)                                               # f32 softmax
    p = e * pl.reciprocal(jnp.sum(e, axis=-1, keepdims=True), approx=True)
    o = jnp.einsum("bqk,bkd->bqd", p.astype(jnp.bfloat16), vh,
                   preferred_element_type=jnp.float32)               # (H*nb, Sq, dh)

    # Re-assemble heads -> (rows, D), then ONE K=D output-projection matmul.
    o = o.reshape(n_heads, nb * Sq, dh)
    attn = jnp.concatenate([o[h] for h in range(n_heads)], axis=-1)  # (rows, D)
    return jnp.dot(attn.astype(jnp.bfloat16), wo,
                   preferred_element_type=jnp.float32) + bo


# --------------------------------- kernel ------------------------------------

def decoder_layer_kernel(
    xr_ref, encr_ref, m1_ref, m2_ref,
    wq1_ref, bq1_ref, wk1_ref, bk1_ref, wv1_ref, bv1_ref, wo1_ref, bo1_ref,
    wq2_ref, bq2_ref, wk2_ref, bk2_ref, wv2_ref, bv2_ref, wo2_ref, bo2_ref,
    wf1_ref, bf1_ref, wf2_ref, bf2_ref,
    g1_ref, be1_ref, g2_ref, be2_ref, g3_ref, be3_ref,
    out_ref, *, n_heads,
):
    x_bf = xr_ref[...]                    # (nb*Sd, D) bf16 (flattened rows)
    enc_bf = encr_ref[...]                # (nb*Se, D) bf16
    x = x_bf.astype(jnp.float32)          # f32 copy for residual / LN

    # 1) masked (causal) self-attention + residual + layernorm
    attn1 = _attention(x_bf, x_bf, m1_ref[...],
                       wq1_ref[...], bq1_ref[...], wk1_ref[...], bk1_ref[...],
                       wv1_ref[...], bv1_ref[...], wo1_ref[...], bo1_ref[...],
                       n_heads)
    a1 = _layer_norm(attn1 + x, g1_ref[...], be1_ref[...])

    # 2) encoder-decoder cross-attention + residual + layernorm
    attn2 = _attention(a1.astype(jnp.bfloat16), enc_bf, m2_ref[...],
                       wq2_ref[...], bq2_ref[...], wk2_ref[...], bk2_ref[...],
                       wv2_ref[...], bv2_ref[...], wo2_ref[...], bo2_ref[...],
                       n_heads)
    a2 = _layer_norm(attn2 + a1, g2_ref[...], be2_ref[...])

    # 3) position-wise FFN (linear -> relu -> linear) + residual + layernorm
    h = jnp.dot(a2.astype(jnp.bfloat16), wf1_ref[...],
                preferred_element_type=jnp.float32) + bf1_ref[...]
    h = jnp.maximum(h, 0.0).astype(jnp.bfloat16)       # f32 bias+ReLU (v5e-safe)
    ffn = jnp.dot(h, wf2_ref[...],
                  preferred_element_type=jnp.float32) + bf2_ref[...]
    out = _layer_norm(ffn + a2, g3_ref[...], be3_ref[...])

    out_ref[...] = out.astype(out_ref.dtype)


# --------------------------------- wrapper -----------------------------------

def decoder_layer(x, enc, mask1, mask2, params, n_heads, rows_per_step=2048):
    B, Sd, D = x.shape
    Se = enc.shape[1]
    F = params["wf1"].shape[1]
    assert D % n_heads == 0

    # Batch tile: pack as many batch elements per grid step as the row budget
    # allows (amortizes per-step overhead, fills MXU rows), but keep >= 2 grid
    # steps when B permits so the "parallel" axis can shard across 2 TCs (v7x).
    bb = min(B, max(1, rows_per_step // max(Sd, 1)))
    if B >= 2:
        bb = min(bb, B // 2)
    while B % bb:
        bb -= 1
    grid = (B // bb,)

    # Flatten (B, S, D) -> rows outside the kernel (free XLA reshape) and ship
    # activations + masks as bf16 (halves activation/mask HBM traffic).
    xr = x.reshape(B * Sd, D).astype(jnp.bfloat16)
    encr = enc.reshape(B * Se, D).astype(jnp.bfloat16)
    m1 = mask1.astype(jnp.bfloat16)
    m2 = mask2.astype(jnp.bfloat16)
    # NOTE: at realistic S, generate the causal mask in-kernel (broadcasted_iota)
    # and pass only padding lengths via scalar prefetch instead of O(B*S^2) masks.

    w16 = lambda w: w.astype(jnp.bfloat16)   # bf16 weights for the MXU
    param_list = [
        w16(params["wq1"]), params["bq1"], w16(params["wk1"]), params["bk1"],
        w16(params["wv1"]), params["bv1"], w16(params["wo1"]), params["bo1"],
        w16(params["wq2"]), params["bq2"], w16(params["wk2"]), params["bk2"],
        w16(params["wv2"]), params["bv2"], w16(params["wo2"]), params["bo2"],
        w16(params["wf1"]), params["bf1"], w16(params["wf2"]), params["bf2"],
        params["g1"], params["be1"], params["g2"], params["be2"],
        params["g3"], params["be3"],
    ]

    def const2d(p):
        return pl.BlockSpec(p.shape, lambda i: (0, 0))   # VMEM-resident weights

    in_specs = [
        pl.BlockSpec((bb * Sd, D), lambda i: (i, 0)),
        pl.BlockSpec((bb * Se, D), lambda i: (i, 0)),
        pl.BlockSpec((bb, Sd, Sd), lambda i: (i, 0, 0)),
        pl.BlockSpec((bb, Sd, Se), lambda i: (i, 0, 0)),
    ] + [const2d(p) for p in param_list]
    out_specs = pl.BlockSpec((bb * Sd, D), lambda i: (i, 0))

    # VMEM budget derived from the actual per-step tile bytes (double-buffered
    # streamed blocks, resident weights, headroom for f32 intermediates).
    rows_d, rows_e = bb * Sd, bb * Se
    stream_bytes = 2 * (2 * rows_d * D + 2 * rows_e * D          # bf16 x / enc
                        + 2 * bb * Sd * Sd + 2 * bb * Sd * Se    # bf16 masks
                        + 4 * rows_d * D)                        # f32 output
    weight_bytes = 2 * (2 * (8 * D * D + 2 * D * F) + 4 * (15 * D + F))
    inter_bytes = 4 * (2 * n_heads * bb * Sd * max(Sd, Se)       # scores + probs
                       + rows_d * F + 8 * rows_d * D)            # ffn hidden + acts
    vmem_limit = int(min(64 * 2 ** 20,
                         max(32 * 2 ** 20,
                             2 * (stream_bytes + weight_bytes + inter_bytes))))

    # Advisory cost estimate for the XLA scheduler (includes output write).
    flops = int(
        4 * 2 * B * Sd * D * D            # self q,k,v,out projections
        + 2 * 2 * B * Sd * Sd * D         # self scores + pv (all heads)
        + 2 * 2 * B * Sd * D * D          # cross q + out projections
        + 2 * 2 * B * Se * D * D          # cross k,v projections
        + 2 * 2 * B * Sd * Se * D         # cross scores + pv
        + 2 * 2 * B * Sd * D * F          # ffn
    )
    transcendentals = int(B * n_heads * Sd * (Sd + Se) + 3 * B * Sd
                          + 2 * B * n_heads * Sd)
    bytes_accessed = int(
        2 * (B * Sd * D + B * Se * D + B * Sd * Sd + B * Sd * Se)  # bf16 inputs
        + 4 * B * Sd * D                                           # f32 output
        + 2 * (8 * D * D + 2 * D * F)                              # bf16 weights
        + 4 * (15 * D + F)                                         # f32 biases/LN
    )

    kernel = functools.partial(decoder_layer_kernel, n_heads=n_heads)

    out_flat = pl.pallas_call(
        kernel,
        out_shape=jax.ShapeDtypeStruct((B * Sd, D), jnp.float32),
        grid=grid,
        in_specs=in_specs,
        out_specs=out_specs,
        compiler_params=pltpu.CompilerParams(
            dimension_semantics=("parallel",),
            vmem_limit_bytes=vmem_limit,
        ),
        cost_estimate=pl.CostEstimate(
            flops=flops, transcendentals=transcendentals,
            bytes_accessed=bytes_accessed),
    )(xr, encr, m1, m2, *param_list)

    return out_flat.reshape(B, Sd, D)


# ------------------------------ pure-JAX reference ----------------------------

def ref_decoder_layer(x, enc, m1, m2, p, n_heads):
    def ln(v, g, b, eps=1e-6):
        mu = jnp.mean(v, axis=-1, keepdims=True)
        var = jnp.mean((v - mu) ** 2, axis=-1, keepdims=True)
        return (v - mu) / jnp.sqrt(var + eps) * g + b

    def mha(q_in, k_in, v_in, mask, wq, bq, wk, bk, wv, bv, wo, bo):
        B, Sq, D = q_in.shape
        Sk = k_in.shape[1]
        dh = D // n_heads
        q = (q_in @ wq + bq).reshape(B, Sq, n_heads, dh).transpose(0, 2, 1, 3)
        k = (k_in @ wk + bk).reshape(B, Sk, n_heads, dh).transpose(0, 2, 1, 3)
        v = (v_in @ wv + bv).reshape(B, Sk, n_heads, dh).transpose(0, 2, 1, 3)
        s = jnp.einsum("bhqd,bhkd->bhqk", q, k) / jnp.sqrt(float(dh))
        s = s + mask[:, None, :, :] * (-1e9)
        a = jax.nn.softmax(s, axis=-1)
        o = jnp.einsum("bhqk,bhkd->bhqd", a, v).transpose(0, 2, 1, 3).reshape(B, Sq, D)
        return o @ wo + bo

    a1 = ln(mha(x, x, x, m1, p["wq1"], p["bq1"], p["wk1"], p["bk1"],
                p["wv1"], p["bv1"], p["wo1"], p["bo1"]) + x, p["g1"], p["be1"])
    a2 = ln(mha(a1, enc, enc, m2, p["wq2"], p["bq2"], p["wk2"], p["bk2"],
                p["wv2"], p["bv2"], p["wo2"], p["bo2"]) + a1, p["g2"], p["be2"])
    h = jax.nn.relu(a2 @ p["wf1"] + p["bf1"])
    out = ln(h @ p["wf2"] + p["bf2"] + a2, p["g3"], p["be3"])
    return out


# ---------------------------------- main --------------------------------------

if __name__ == "__main__":
    B, Sd, Se = 2, 16, 32
    D, H, F = 32, 4, 64   # d_model, n_heads, cnt_ffn_units

    key = jax.random.PRNGKey(0)
    keys = jax.random.split(key, 32)
    k_iter = iter(keys)

    def rnd(shape, scale=0.05):
        return scale * jax.random.normal(next(k_iter), shape, dtype=jnp.float32)

    params = {
        # self-attention projections, (in_features, out_features) layout
        "wq1": rnd((D, D)), "bq1": rnd((1, D)),
        "wk1": rnd((D, D)), "bk1": rnd((1, D)),
        "wv1": rnd((D, D)), "bv1": rnd((1, D)),
        "wo1": rnd((D, D)), "bo1": rnd((1, D)),
        # cross-attention projections
        "wq2": rnd((D, D)), "bq2": rnd((1, D)),
        "wk2": rnd((D, D)), "bk2": rnd((1, D)),
        "wv2": rnd((D, D)), "bv2": rnd((1, D)),
        "wo2": rnd((D, D)), "bo2": rnd((1, D)),
        # FFN
        "wf1": rnd((D, F)), "bf1": rnd((1, F)),
        "wf2": rnd((F, D)), "bf2": rnd((1, D)),
        # layer norms (gamma, beta)
        "g1": jnp.ones((1, D), jnp.float32), "be1": jnp.zeros((1, D), jnp.float32),
        "g2": jnp.ones((1, D), jnp.float32), "be2": jnp.zeros((1, D), jnp.float32),
        "g3": jnp.ones((1, D), jnp.float32), "be3": jnp.zeros((1, D), jnp.float32),
    }

    x = rnd((B, Sd, D), scale=1.0)
    enc = rnd((B, Se, D), scale=1.0)

    # mask_1: causal look-ahead mask (1.0 above diagonal == masked)
    causal = 1.0 - jnp.tril(jnp.ones((Sd, Sd), jnp.float32))
    mask1 = jnp.broadcast_to(causal, (B, Sd, Sd))
    # mask_2: no padding in this synthetic example
    mask2 = jnp.zeros((B, Sd, Se), jnp.float32)

    out = decoder_layer(x, enc, mask1, mask2, params, n_heads=H)
    out = jax.block_until_ready(out)

    ref = ref_decoder_layer(x, enc, mask1, mask2, params, n_heads=H)
    assert out.shape == (B, Sd, D)
    max_err = float(jnp.max(jnp.abs(out - ref)))
    # bf16 activations/weights on the MXU + approx reciprocal vs f32 reference.
    assert jnp.allclose(out, ref, rtol=2e-2, atol=2e-2), \
        f"mismatch vs JAX reference (max abs err {max_err})"

    print("KERNEL_OK")
</pallas_src>

<mosaic_0001>
module attributes {stable_mosaic.version = 11 : i64} {
  func.func @decoder_layer_kernel(%arg0: i32, %arg1: memref<16x32xbf16, #tpu.memory_space<vmem>>, %arg2: memref<32x32xbf16, #tpu.memory_space<vmem>>, %arg3: memref<1x16x16xbf16, #tpu.memory_space<vmem>>, %arg4: memref<1x16x32xbf16, #tpu.memory_space<vmem>>, %arg5: memref<32x32xbf16, #tpu.memory_space<vmem>>, %arg6: memref<1x32xf32, #tpu.memory_space<vmem>>, %arg7: memref<32x32xbf16, #tpu.memory_space<vmem>>, %arg8: memref<1x32xf32, #tpu.memory_space<vmem>>, %arg9: memref<32x32xbf16, #tpu.memory_space<vmem>>, %arg10: memref<1x32xf32, #tpu.memory_space<vmem>>, %arg11: memref<32x32xbf16, #tpu.memory_space<vmem>>, %arg12: memref<1x32xf32, #tpu.memory_space<vmem>>, %arg13: memref<32x32xbf16, #tpu.memory_space<vmem>>, %arg14: memref<1x32xf32, #tpu.memory_space<vmem>>, %arg15: memref<32x32xbf16, #tpu.memory_space<vmem>>, %arg16: memref<1x32xf32, #tpu.memory_space<vmem>>, %arg17: memref<32x32xbf16, #tpu.memory_space<vmem>>, %arg18: memref<1x32xf32, #tpu.memory_space<vmem>>, %arg19: memref<32x32xbf16, #tpu.memory_space<vmem>>, %arg20: memref<1x32xf32, #tpu.memory_space<vmem>>, %arg21: memref<32x64xbf16, #tpu.memory_space<vmem>>, %arg22: memref<1x64xf32, #tpu.memory_space<vmem>>, %arg23: memref<64x32xbf16, #tpu.memory_space<vmem>>, %arg24: memref<1x32xf32, #tpu.memory_space<vmem>>, %arg25: memref<1x32xf32, #tpu.memory_space<vmem>>, %arg26: memref<1x32xf32, #tpu.memory_space<vmem>>, %arg27: memref<1x32xf32, #tpu.memory_space<vmem>>, %arg28: memref<1x32xf32, #tpu.memory_space<vmem>>, %arg29: memref<1x32xf32, #tpu.memory_space<vmem>>, %arg30: memref<1x32xf32, #tpu.memory_space<vmem>>, %arg31: memref<16x32xf32, #tpu.memory_space<vmem>>) attributes {dimension_semantics = [#tpu.dimension_semantics<parallel>], iteration_bounds = array<i64: 2>, scalar_prefetch = 0 : i64, scratch_operands = 0 : i64, tpu.core_type = #tpu.core_type<tc>, window_params = [{transform_indices = @transform_0, window_bounds = array<i64: 16, 32>}, {transform_indices = @transform_1, window_bounds = array<i64: 32, 32>}, {transform_indices = @transform_2, window_bounds = array<i64: 1, 16, 16>}, {transform_indices = @transform_3, window_bounds = array<i64: 1, 16, 32>}, {pipeline_mode = #tpu.pipeline_mode<synchronous>, transform_indices = @transform_4, window_bounds = array<i64: 32, 32>}, {pipeline_mode = #tpu.pipeline_mode<synchronous>, transform_indices = @transform_5, window_bounds = array<i64: 1, 32>}, {pipeline_mode = #tpu.pipeline_mode<synchronous>, transform_indices = @transform_6, window_bounds = array<i64: 32, 32>}, {pipeline_mode = #tpu.pipeline_mode<synchronous>, transform_indices = @transform_7, window_bounds = array<i64: 1, 32>}, {pipeline_mode = #tpu.pipeline_mode<synchronous>, transform_indices = @transform_8, window_bounds = array<i64: 32, 32>}, {pipeline_mode = #tpu.pipeline_mode<synchronous>, transform_indices = @transform_9, window_bounds = array<i64: 1, 32>}, {pipeline_mode = #tpu.pipeline_mode<synchronous>, transform_indices = @transform_10, window_bounds = array<i64: 32, 32>}, {pipeline_mode = #tpu.pipeline_mode<synchronous>, transform_indices = @transform_11, window_bounds = array<i64: 1, 32>}, {pipeline_mode = #tpu.pipeline_mode<synchronous>, transform_indices = @transform_12, window_bounds = array<i64: 32, 32>}, {pipeline_mode = #tpu.pipeline_mode<synchronous>, transform_indices = @transform_13, window_bounds = array<i64: 1, 32>}, {pipeline_mode = #tpu.pipeline_mode<synchronous>, transform_indices = @transform_14, window_bounds = array<i64: 32, 32>}, {pipeline_mode = #tpu.pipeline_mode<synchronous>, transform_indices = @transform_15, window_bounds = array<i64: 1, 32>}, {pipeline_mode = #tpu.pipeline_mode<synchronous>, transform_indices = @transform_16, window_bounds = array<i64: 32, 32>}, {pipeline_mode = #tpu.pipeline_mode<synchronous>, transform_indices = @transform_17, window_bounds = array<i64: 1, 32>}, {pipeline_mode = #tpu.pipeline_mode<synchronous>, transform_indices = @transform_18, window_bounds = array<i64: 32, 32>}, {pipeline_mode = #tpu.pipeline_mode<synchronous>, transform_indices = @transform_19, window_bounds = array<i64: 1, 32>}, {pipeline_mode = #tpu.pipeline_mode<synchronous>, transform_indices = @transform_20, window_bounds = array<i64: 32, 64>}, {pipeline_mode = #tpu.pipeline_mode<synchronous>, transform_indices = @transform_21, window_bounds = array<i64: 1, 64>}, {pipeline_mode = #tpu.pipeline_mode<synchronous>, transform_indices = @transform_22, window_bounds = array<i64: 64, 32>}, {pipeline_mode = #tpu.pipeline_mode<synchronous>, transform_indices = @transform_23, window_bounds = array<i64: 1, 32>}, {pipeline_mode = #tpu.pipeline_mode<synchronous>, transform_indices = @transform_24, window_bounds = array<i64: 1, 32>}, {pipeline_mode = #tpu.pipeline_mode<synchronous>, transform_indices = @transform_25, window_bounds = array<i64: 1, 32>}, {pipeline_mode = #tpu.pipeline_mode<synchronous>, transform_indices = @transform_26, window_bounds = array<i64: 1, 32>}, {pipeline_mode = #tpu.pipeline_mode<synchronous>, transform_indices = @transform_27, window_bounds = array<i64: 1, 32>}, {pipeline_mode = #tpu.pipeline_mode<synchronous>, transform_indices = @transform_28, window_bounds = array<i64: 1, 32>}, {pipeline_mode = #tpu.pipeline_mode<synchronous>, transform_indices = @transform_29, window_bounds = array<i64: 1, 32>}, {transform_indices = @transform_30, window_bounds = array<i64: 16, 32>}]} {
    %c0 = arith.constant 0 : index
    %c0_0 = arith.constant 0 : index
    %0 = vector.load %arg1[%c0, %c0_0] : memref<16x32xbf16, #tpu.memory_space<vmem>>, vector<16x32xbf16>
    %c0_1 = arith.constant 0 : index
    %c0_2 = arith.constant 0 : index
    %1 = vector.load %arg2[%c0_1, %c0_2] : memref<32x32xbf16, #tpu.memory_space<vmem>>, vector<32x32xbf16>
    %2 = arith.extf %0 : vector<16x32xbf16> to vector<16x32xf32>
    %c0_3 = arith.constant 0 : index
    %c0_4 = arith.constant 0 : index
    %c0_5 = arith.constant 0 : index
    %3 = vector.load %arg3[%c0_3, %c0_4, %c0_5] : memref<1x16x16xbf16, #tpu.memory_space<vmem>>, vector<1x16x16xbf16>
    %c0_6 = arith.constant 0 : index
    %c0_7 = arith.constant 0 : index
    %4 = vector.load %arg5[%c0_6, %c0_7] : memref<32x32xbf16, #tpu.memory_space<vmem>>, vector<32x32xbf16>
    %c0_8 = arith.constant 0 : index
    %c0_9 = arith.constant 0 : index
    %5 = vector.load %arg6[%c0_8, %c0_9] : memref<1x32xf32, #tpu.memory_space<vmem>>, vector<1x32xf32>
    %c0_10 = arith.constant 0 : index
    %c0_11 = arith.constant 0 : index
    %6 = vector.load %arg7[%c0_10, %c0_11] : memref<32x32xbf16, #tpu.memory_space<vmem>>, vector<32x32xbf16>
    %c0_12 = arith.constant 0 : index
    %c0_13 = arith.constant 0 : index
    %7 = vector.load %arg8[%c0_12, %c0_13] : memref<1x32xf32, #tpu.memory_space<vmem>>, vector<1x32xf32>
    %c0_14 = arith.constant 0 : index
    %c0_15 = arith.constant 0 : index
    %8 = vector.load %arg9[%c0_14, %c0_15] : memref<32x32xbf16, #tpu.memory_space<vmem>>, vector<32x32xbf16>
    %c0_16 = arith.constant 0 : index
    %c0_17 = arith.constant 0 : index
    %9 = vector.load %arg10[%c0_16, %c0_17] : memref<1x32xf32, #tpu.memory_space<vmem>>, vector<1x32xf32>
    %c0_18 = arith.constant 0 : index
    %c0_19 = arith.constant 0 : index
    %10 = vector.load %arg11[%c0_18, %c0_19] : memref<32x32xbf16, #tpu.memory_space<vmem>>, vector<32x32xbf16>
    %c0_20 = arith.constant 0 : index
    %c0_21 = arith.constant 0 : index
    %11 = vector.load %arg12[%c0_20, %c0_21] : memref<1x32xf32, #tpu.memory_space<vmem>>, vector<1x32xf32>
    %cst = arith.constant dense<0.000000e+00> : vector<16x32xf32>
    %12 = tpu.matmul %0, %4, %cst {dimension_numbers = #tpu.dot_dimension_numbers<[1], [0], [0], [1], [0, 0, 1, 1], [], []>} : vector<16x32xbf16>, vector<32x32xbf16>, vector<16x32xf32> -> vector<16x32xf32>
    %13 = vector.broadcast %5 : vector<1x32xf32> to vector<16x32xf32>
    %14 = arith.addf %12, %13 : vector<16x32xf32>
    %cst_22 = arith.constant 0.353553385 : f32
    %15 = vector.broadcast %cst_22 : f32 to vector<16x32xf32>
    %16 = arith.mulf %14, %15 : vector<16x32xf32>
    %cst_23 = arith.constant dense<0.000000e+00> : vector<16x32xf32>
    %17 = tpu.matmul %0, %6, %cst_23 {dimension_numbers = #tpu.dot_dimension_numbers<[1], [0], [0], [1], [0, 0, 1, 1], [], []>} : vector<16x32xbf16>, vector<32x32xbf16>, vector<16x32xf32> -> vector<16x32xf32>
    %18 = vector.broadcast %7 : vector<1x32xf32> to vector<16x32xf32>
    %19 = arith.addf %17, %18 : vector<16x32xf32>
    %cst_24 = arith.constant dense<0.000000e+00> : vector<16x32xf32>
    %20 = tpu.matmul %0, %8, %cst_24 {dimension_numbers = #tpu.dot_dimension_numbers<[1], [0], [0], [1], [0, 0, 1, 1], [], []>} : vector<16x32xbf16>, vector<32x32xbf16>, vector<16x32xf32> -> vector<16x32xf32>
    %21 = vector.broadcast %9 : vector<1x32xf32> to vector<16x32xf32>
    %22 = arith.addf %20, %21 : vector<16x32xf32>
    %23 = vector.extract_strided_slice %16 {offsets = [0, 0], sizes = [16, 8], strides = [1, 1]} : vector<16x32xf32> to vector<16x8xf32>
    %24 = vector.shape_cast %23 : vector<16x8xf32> to vector<1x16x8xf32>
    %25 = vector.extract_strided_slice %16 {offsets = [0, 8], sizes = [16, 8], strides = [1, 1]} : vector<16x32xf32> to vector<16x8xf32>
    %26 = vector.shape_cast %25 : vector<16x8xf32> to vector<1x16x8xf32>
    %27 = vector.extract_strided_slice %16 {offsets = [0, 16], sizes = [16, 8], strides = [1, 1]} : vector<16x32xf32> to vector<16x8xf32>
    %28 = vector.shape_cast %27 : vector<16x8xf32> to vector<1x16x8xf32>
    %29 = vector.extract_strided_slice %16 {offsets = [0, 24], sizes = [16, 8], strides = [1, 1]} : vector<16x32xf32> to vector<16x8xf32>
    %30 = vector.shape_cast %29 : vector<16x8xf32> to vector<1x16x8xf32>
    %31 = tpu.concatenate %24, %26, %28, %30 in 0 : vector<1x16x8xf32>, vector<1x16x8xf32>, vector<1x16x8xf32>, vector<1x16x8xf32> -> vector<4x16x8xf32>
    %32 = arith.truncf %31 : vector<4x16x8xf32> to vector<4x16x8xbf16>
    %33 = vector.extract_strided_slice %19 {offsets = [0, 0], sizes = [16, 8], strides = [1, 1]} : vector<16x32xf32> to vector<16x8xf32>
    %34 = vector.shape_cast %33 : vector<16x8xf32> to vector<1x16x8xf32>
    %35 = vector.extract_strided_slice %19 {offsets = [0, 8], sizes = [16, 8], strides = [1, 1]} : vector<16x32xf32> to vector<16x8xf32>
    %36 = vector.shape_cast %35 : vector<16x8xf32> to vector<1x16x8xf32>
    %37 = vector.extract_strided_slice %19 {offsets = [0, 16], sizes = [16, 8], strides = [1, 1]} : vector<16x32xf32> to vector<16x8xf32>
    %38 = vector.shape_cast %37 : vector<16x8xf32> to vector<1x16x8xf32>
    %39 = vector.extract_strided_slice %19 {offsets = [0, 24], sizes = [16, 8], strides = [1, 1]} : vector<16x32xf32> to vector<16x8xf32>
    %40 = vector.shape_cast %39 : vector<16x8xf32> to vector<1x16x8xf32>
    %41 = tpu.concatenate %34, %36, %38, %40 in 0 : vector<1x16x8xf32>, vector<1x16x8xf32>, vector<1x16x8xf32>, vector<1x16x8xf32> -> vector<4x16x8xf32>
    %42 = arith.truncf %41 : vector<4x16x8xf32> to vector<4x16x8xbf16>
    %43 = vector.extract_strided_slice %22 {offsets = [0, 0], sizes = [16, 8], strides = [1, 1]} : vector<16x32xf32> to vector<16x8xf32>
    %44 = vector.shape_cast %43 : vector<16x8xf32> to vector<1x16x8xf32>
    %45 = vector.extract_strided_slice %22 {offsets = [0, 8], sizes = [16, 8], strides = [1, 1]} : vector<16x32xf32> to vector<16x8xf32>
    %46 = vector.shape_cast %45 : vector<16x8xf32> to vector<1x16x8xf32>
    %47 = vector.extract_strided_slice %22 {offsets = [0, 16], sizes = [16, 8], strides = [1, 1]} : vector<16x32xf32> to vector<16x8xf32>
    %48 = vector.shape_cast %47 : vector<16x8xf32> to vector<1x16x8xf32>
    %49 = vector.extract_strided_slice %22 {offsets = [0, 24], sizes = [16, 8], strides = [1, 1]} : vector<16x32xf32> to vector<16x8xf32>
    %50 = vector.shape_cast %49 : vector<16x8xf32> to vector<1x16x8xf32>
    %51 = tpu.concatenate %44, %46, %48, %50 in 0 : vector<1x16x8xf32>, vector<1x16x8xf32>, vector<1x16x8xf32>, vector<1x16x8xf32> -> vector<4x16x8xf32>
    %52 = arith.truncf %51 : vector<4x16x8xf32> to vector<4x16x8xbf16>
    %53 = arith.extf %3 : vector<1x16x16xbf16> to vector<1x16x16xf32>
    %cst_25 = arith.constant -1.000000e+09 : f32
    %54 = vector.broadcast %cst_25 : f32 to vector<1x16x16xf32>
    %55 = arith.mulf %53, %54 : vector<1x16x16xf32>
    %56 = tpu.concatenate %55, %55, %55, %55 in 0 : vector<1x16x16xf32>, vector<1x16x16xf32>, vector<1x16x16xf32>, vector<1x16x16xf32> -> vector<4x16x16xf32>
    "tpu.trace_start"() <{level = 10 : i32, message = "bqd,bkd->bqk"}> : () -> ()
    %cst_26 = arith.constant dense<0.000000e+00> : vector<4x16x16xf32>
    %57 = tpu.matmul %32, %42, %cst_26 {dimension_numbers = #tpu.dot_dimension_numbers<[2], [2], [1], [1], [0, 0, 0, 1, 1, 1], [0], [0]>} : vector<4x16x8xbf16>, vector<4x16x8xbf16>, vector<4x16x16xf32> -> vector<4x16x16xf32>
    "tpu.trace_stop"() : () -> ()
    %58 = arith.addf %57, %56 : vector<4x16x16xf32>
    %cst_27 = arith.constant dense<0xFF800000> : vector<4x16xf32>
    %59 = vector.multi_reduction <maximumf>, %58, %cst_27 [2] : vector<4x16x16xf32> to vector<4x16xf32>
    %60 = vector.shape_cast %59 : vector<4x16xf32> to vector<4x16x1xf32>
    %61 = vector.broadcast %60 : vector<4x16x1xf32> to vector<4x16x16xf32>
    %62 = arith.subf %58, %61 : vector<4x16x16xf32>
    %63 = math.exp %62 : vector<4x16x16xf32>
    %cst_28 = arith.constant dense<0.000000e+00> : vector<4x16xf32>
    %64 = vector.multi_reduction <add>, %63, %cst_28 [2] : vector<4x16x16xf32> to vector<4x16xf32>
    %65 = vector.shape_cast %64 : vector<4x16xf32> to vector<4x16x1xf32>
    %66 = tpu.reciprocal %65 {approx = true} : vector<4x16x1xf32> -> vector<4x16x1xf32>
    %67 = vector.broadcast %66 : vector<4x16x1xf32> to vector<4x16x16xf32>
    %68 = arith.mulf %63, %67 : vector<4x16x16xf32>
    %69 = arith.truncf %68 : vector<4x16x16xf32> to vector<4x16x16xbf16>
    "tpu.trace_start"() <{level = 10 : i32, message = "bqk,bkd->bqd"}> : () -> ()
    %cst_29 = arith.constant dense<0.000000e+00> : vector<4x16x8xf32>
    %70 = tpu.matmul %69, %52, %cst_29 {dimension_numbers = #tpu.dot_dimension_numbers<[2], [1], [1], [2], [0, 0, 0, 1, 1, 2], [0], [0]>} : vector<4x16x16xbf16>, vector<4x16x8xbf16>, vector<4x16x8xf32> -> vector<4x16x8xf32>
    "tpu.trace_stop"() : () -> ()
    %71 = vector.extract_strided_slice %70 {offsets = [0, 0, 0], sizes = [1, 16, 8], strides = [1, 1, 1]} : vector<4x16x8xf32> to vector<1x16x8xf32>
    %72 = vector.shape_cast %71 : vector<1x16x8xf32> to vector<16x8xf32>
    %73 = vector.extract_strided_slice %70 {offsets = [1, 0, 0], sizes = [1, 16, 8], strides = [1, 1, 1]} : vector<4x16x8xf32> to vector<1x16x8xf32>
    %74 = vector.shape_cast %73 : vector<1x16x8xf32> to vector<16x8xf32>
    %75 = vector.extract_strided_slice %70 {offsets = [2, 0, 0], sizes = [1, 16, 8], strides = [1, 1, 1]} : vector<4x16x8xf32> to vector<1x16x8xf32>
    %76 = vector.shape_cast %75 : vector<1x16x8xf32> to vector<16x8xf32>
    %77 = vector.extract_strided_slice %70 {offsets = [3, 0, 0], sizes = [1, 16, 8], strides = [1, 1, 1]} : vector<4x16x8xf32> to vector<1x16x8xf32>
    %78 = vector.shape_cast %77 : vector<1x16x8xf32> to vector<16x8xf32>
    %79 = tpu.concatenate %72, %74, %76, %78 in 1 : vector<16x8xf32>, vector<16x8xf32>, vector<16x8xf32>, vector<16x8xf32> -> vector<16x32xf32>
    %80 = arith.truncf %79 : vector<16x32xf32> to vector<16x32xbf16>
    %cst_30 = arith.constant dense<0.000000e+00> : vector<16x32xf32>
    %81 = tpu.matmul %80, %10, %cst_30 {dimension_numbers = #tpu.dot_dimension_numbers<[1], [0], [0], [1], [0, 0, 1, 1], [], []>} : vector<16x32xbf16>, vector<32x32xbf16>, vector<16x32xf32> -> vector<16x32xf32>
    %82 = vector.broadcast %11 : vector<1x32xf32> to vector<16x32xf32>
    %83 = arith.addf %81, %82 : vector<16x32xf32>
    %84 = arith.addf %83, %2 : vector<16x32xf32>
    %c0_31 = arith.constant 0 : index
    %c0_32 = arith.constant 0 : index
    %85 = vector.load %arg25[%c0_31, %c0_32] : memref<1x32xf32, #tpu.memory_space<vmem>>, vector<1x32xf32>
    %c0_33 = arith.constant 0 : index
    %c0_34 = arith.constant 0 : index
    %86 = vector.load %arg26[%c0_33, %c0_34] : memref<1x32xf32, #tpu.memory_space<vmem>>, vector<1x32xf32>
    %cst_35 = arith.constant dense<0.000000e+00> : vector<16xf32>
    %87 = vector.multi_reduction <add>, %84, %cst_35 [1] : vector<16x32xf32> to vector<16xf32>
    %88 = vector.shape_cast %87 : vector<16xf32> to vector<16x1xf32>
    %cst_36 = arith.constant 3.200000e+01 : f32
    %89 = vector.broadcast %cst_36 : f32 to vector<16x1xf32>
    %90 = arith.divf %88, %89 : vector<16x1xf32>
    %91 = vector.broadcast %90 : vector<16x1xf32> to vector<16x32xf32>
    %92 = arith.subf %84, %91 : vector<16x32xf32>
    %93 = arith.mulf %92, %92 : vector<16x32xf32>
    %cst_37 = arith.constant dense<0.000000e+00> : vector<16xf32>
    %94 = vector.multi_reduction <add>, %93, %cst_37 [1] : vector<16x32xf32> to vector<16xf32>
    %95 = vector.shape_cast %94 : vector<16xf32> to vector<16x1xf32>
    %cst_38 = arith.constant 3.200000e+01 : f32
    %96 = vector.broadcast %cst_38 : f32 to vector<16x1xf32>
    %97 = arith.divf %95, %96 : vector<16x1xf32>
    %98 = vector.broadcast %90 : vector<16x1xf32> to vector<16x32xf32>
    %99 = arith.subf %84, %98 : vector<16x32xf32>
    %cst_39 = arith.constant 9.99999997E-7 : f32
    %100 = vector.broadcast %cst_39 : f32 to vector<16x1xf32>
    %101 = arith.addf %97, %100 : vector<16x1xf32>
    %102 = math.rsqrt %101 : vector<16x1xf32>
    %103 = vector.broadcast %102 : vector<16x1xf32> to vector<16x32xf32>
    %104 = arith.mulf %99, %103 : vector<16x32xf32>
    %105 = vector.broadcast %85 : vector<1x32xf32> to vector<16x32xf32>
    %106 = arith.mulf %104, %105 : vector<16x32xf32>
    %107 = vector.broadcast %86 : vector<1x32xf32> to vector<16x32xf32>
    %108 = arith.addf %106, %107 : vector<16x32xf32>
    %109 = arith.truncf %108 : vector<16x32xf32> to vector<16x32xbf16>
    %c0_40 = arith.constant 0 : index
    %c0_41 = arith.constant 0 : index
    %c0_42 = arith.constant 0 : index
    %110 = vector.load %arg4[%c0_40, %c0_41, %c0_42] : memref<1x16x32xbf16, #tpu.memory_space<vmem>>, vector<1x16x32xbf16>
    %c0_43 = arith.constant 0 : index
    %c0_44 = arith.constant 0 : index
    %111 = vector.load %arg13[%c0_43, %c0_44] : memref<32x32xbf16, #tpu.memory_space<vmem>>, vector<32x32xbf16>
    %c0_45 = arith.constant 0 : index
    %c0_46 = arith.constant 0 : index
    %112 = vector.load %arg14[%c0_45, %c0_46] : memref<1x32xf32, #tpu.memory_space<vmem>>, vector<1x32xf32>
    %c0_47 = arith.constant 0 : index
    %c0_48 = arith.constant 0 : index
    %113 = vector.load %arg15[%c0_47, %c0_48] : memref<32x32xbf16, #tpu.memory_space<vmem>>, vector<32x32xbf16>
    %c0_49 = arith.constant 0 : index
    %c0_50 = arith.constant 0 : index
    %114 = vector.load %arg16[%c0_49, %c0_50] : memref<1x32xf32, #tpu.memory_space<vmem>>, vector<1x32xf32>
    %c0_51 = arith.constant 0 : index
    %c0_52 = arith.constant 0 : index
    %115 = vector.load %arg17[%c0_51, %c0_52] : memref<32x32xbf16, #tpu.memory_space<vmem>>, vector<32x32xbf16>
    %c0_53 = arith.constant 0 : index
    %c0_54 = arith.constant 0 : index
    %116 = vector.load %arg18[%c0_53, %c0_54] : memref<1x32xf32, #tpu.memory_space<vmem>>, vector<1x32xf32>
    %c0_55 = arith.constant 0 : index
    %c0_56 = arith.constant 0 : index
    %117 = vector.load %arg19[%c0_55, %c0_56] : memref<32x32xbf16, #tpu.memory_space<vmem>>, vector<32x32xbf16>
    %c0_57 = arith.constant 0 : index
    %c0_58 = arith.constant 0 : index
    %118 = vector.load %arg20[%c0_57, %c0_58] : memref<1x32xf32, #tpu.memory_space<vmem>>, vector<1x32xf32>
    %cst_59 = arith.constant dense<0.000000e+00> : vector<16x32xf32>
    %119 = tpu.matmul %109, %111, %cst_59 {dimension_numbers = #tpu.dot_dimension_numbers<[1], [0], [0], [1], [0, 0, 1, 1], [], []>} : vector<16x32xbf16>, vector<32x32xbf16>, vector<16x32xf32> -> vector<16x32xf32>
    %120 = vector.broadcast %112 : vector<1x32xf32> to vector<16x32xf32>
    %121 = arith.addf %119, %120 : vector<16x32xf32>
    %cst_60 = arith.constant 0.353553385 : f32
    %122 = vector.broadcast %cst_60 : f32 to vector<16x32xf32>
    %123 = arith.mulf %121, %122 : vector<16x32xf32>
    %cst_61 = arith.constant dense<0.000000e+00> : vector<32x32xf32>
    %124 = tpu.matmul %1, %113, %cst_61 {dimension_numbers = #tpu.dot_dimension_numbers<[1], [0], [0], [1], [0, 0, 1, 1], [], []>} : vector<32x32xbf16>, vector<32x32xbf16>, vector<32x32xf32> -> vector<32x32xf32>
    %125 = vector.broadcast %114 : vector<1x32xf32> to vector<32x32xf32>
    %126 = arith.addf %124, %125 : vector<32x32xf32>
    %cst_62 = arith.constant dense<0.000000e+00> : vector<32x32xf32>
    %127 = tpu.matmul %1, %115, %cst_62 {dimension_numbers = #tpu.dot_dimension_numbers<[1], [0], [0], [1], [0, 0, 1, 1], [], []>} : vector<32x32xbf16>, vector<32x32xbf16>, vector<32x32xf32> -> vector<32x32xf32>
    %128 = vector.broadcast %116 : vector<1x32xf32> to vector<32x32xf32>
    %129 = arith.addf %127, %128 : vector<32x32xf32>
    %130 = vector.extract_strided_slice %123 {offsets = [0, 0], sizes = [16, 8], strides = [1, 1]} : vector<16x32xf32> to vector<16x8xf32>
    %131 = vector.shape_cast %130 : vector<16x8xf32> to vector<1x16x8xf32>
    %132 = vector.extract_strided_slice %123 {offsets = [0, 8], sizes = [16, 8], strides = [1, 1]} : vector<16x32xf32> to vector<16x8xf32>
    %133 = vector.shape_cast %132 : vector<16x8xf32> to vector<1x16x8xf32>
    %134 = vector.extract_strided_slice %123 {offsets = [0, 16], sizes = [16, 8], strides = [1, 1]} : vector<16x32xf32> to vector<16x8xf32>
    %135 = vector.shape_cast %134 : vector<16x8xf32> to vector<1x16x8xf32>
    %136 = vector.extract_strided_slice %123 {offsets = [0, 24], sizes = [16, 8], strides = [1, 1]} : vector<16x32xf32> to vector<16x8xf32>
    %137 = vector.shape_cast %136 : vector<16x8xf32> to vector<1x16x8xf32>
    %138 = tpu.concatenate %131, %133, %135, %137 in 0 : vector<1x16x8xf32>, vector<1x16x8xf32>, vector<1x16x8xf32>, vector<1x16x8xf32> -> vector<4x16x8xf32>
    %139 = arith.truncf %138 : vector<4x16x8xf32> to vector<4x16x8xbf16>
    %140 = vector.extract_strided_slice %126 {offsets = [0, 0], sizes = [32, 8], strides = [1, 1]} : vector<32x32xf32> to vector<32x8xf32>
    %141 = vector.shape_cast %140 : vector<32x8xf32> to vector<1x32x8xf32>
    %142 = vector.extract_strided_slice %126 {offsets = [0, 8], sizes = [32, 8], strides = [1, 1]} : vector<32x32xf32> to vector<32x8xf32>
    %143 = vector.shape_cast %142 : vector<32x8xf32> to vector<1x32x8xf32>
    %144 = vector.extract_strided_slice %126 {offsets = [0, 16], sizes = [32, 8], strides = [1, 1]} : vector<32x32xf32> to vector<32x8xf32>
    %145 = vector.shape_cast %144 : vector<32x8xf32> to vector<1x32x8xf32>
    %146 = vector.extract_strided_slice %126 {offsets = [0, 24], sizes = [32, 8], strides = [1, 1]} : vector<32x32xf32> to vector<32x8xf32>
    %147 = vector.shape_cast %146 : vector<32x8xf32> to vector<1x32x8xf32>
    %148 = tpu.concatenate %141, %143, %145, %147 in 0 : vector<1x32x8xf32>, vector<1x32x8xf32>, vector<1x32x8xf32>, vector<1x32x8xf32> -> vector<4x32x8xf32>
    %149 = arith.truncf %148 : vector<4x32x8xf32> to vector<4x32x8xbf16>
    %150 = vector.extract_strided_slice %129 {offsets = [0, 0], sizes = [32, 8], strides = [1, 1]} : vector<32x32xf32> to vector<32x8xf32>
    %151 = vector.shape_cast %150 : vector<32x8xf32> to vector<1x32x8xf32>
    %152 = vector.extract_strided_slice %129 {offsets = [0, 8], sizes = [32, 8], strides = [1, 1]} : vector<32x32xf32> to vector<32x8xf32>
    %153 = vector.shape_cast %152 : vector<32x8xf32> to vector<1x32x8xf32>
    %154 = vector.extract_strided_slice %129 {offsets = [0, 16], sizes = [32, 8], strides = [1, 1]} : vector<32x32xf32> to vector<32x8xf32>
    %155 = vector.shape_cast %154 : vector<32x8xf32> to vector<1x32x8xf32>
    %156 = vector.extract_strided_slice %129 {offsets = [0, 24], sizes = [32, 8], strides = [1, 1]} : vector<32x32xf32> to vector<32x8xf32>
    %157 = vector.shape_cast %156 : vector<32x8xf32> to vector<1x32x8xf32>
    %158 = tpu.concatenate %151, %153, %155, %157 in 0 : vector<1x32x8xf32>, vector<1x32x8xf32>, vector<1x32x8xf32>, vector<1x32x8xf32> -> vector<4x32x8xf32>
    %159 = arith.truncf %158 : vector<4x32x8xf32> to vector<4x32x8xbf16>
    %160 = arith.extf %110 : vector<1x16x32xbf16> to vector<1x16x32xf32>
    %cst_63 = arith.constant -1.000000e+09 : f32
    %161 = vector.broadcast %cst_63 : f32 to vector<1x16x32xf32>
    %162 = arith.mulf %160, %161 : vector<1x16x32xf32>
    %163 = tpu.concatenate %162, %162, %162, %162 in 0 : vector<1x16x32xf32>, vector<1x16x32xf32>, vector<1x16x32xf32>, vector<1x16x32xf32> -> vector<4x16x32xf32>
    "tpu.trace_start"() <{level = 10 : i32, message = "bqd,bkd->bqk"}> : () -> ()
    %cst_64 = arith.constant dense<0.000000e+00> : vector<4x16x32xf32>
    %164 = tpu.matmul %139, %149, %cst_64 {dimension_numbers = #tpu.dot_dimension_numbers<[2], [2], [1], [1], [0, 0, 0, 1, 1, 1], [0], [0]>} : vector<4x16x8xbf16>, vector<4x32x8xbf16>, vector<4x16x32xf32> -> vector<4x16x32xf32>
    "tpu.trace_stop"() : () -> ()
    %165 = arith.addf %164, %163 : vector<4x16x32xf32>
    %cst_65 = arith.constant dense<0xFF800000> : vector<4x16xf32>
    %166 = vector.multi_reduction <maximumf>, %165, %cst_65 [2] : vector<4x16x32xf32> to vector<4x16xf32>
    %167 = vector.shape_cast %166 : vector<4x16xf32> to vector<4x16x1xf32>
    %168 = vector.broadcast %167 : vector<4x16x1xf32> to vector<4x16x32xf32>
    %169 = arith.subf %165, %168 : vector<4x16x32xf32>
    %170 = math.exp %169 : vector<4x16x32xf32>
    %cst_66 = arith.constant dense<0.000000e+00> : vector<4x16xf32>
    %171 = vector.multi_reduction <add>, %170, %cst_66 [2] : vector<4x16x32xf32> to vector<4x16xf32>
    %172 = vector.shape_cast %171 : vector<4x16xf32> to vector<4x16x1xf32>
    %173 = tpu.reciprocal %172 {approx = true} : vector<4x16x1xf32> -> vector<4x16x1xf32>
    %174 = vector.broadcast %173 : vector<4x16x1xf32> to vector<4x16x32xf32>
    %175 = arith.mulf %170, %174 : vector<4x16x32xf32>
    %176 = arith.truncf %175 : vector<4x16x32xf32> to vector<4x16x32xbf16>
    "tpu.trace_start"() <{level = 10 : i32, message = "bqk,bkd->bqd"}> : () -> ()
    %cst_67 = arith.constant dense<0.000000e+00> : vector<4x16x8xf32>
    %177 = tpu.matmul %176, %159, %cst_67 {dimension_numbers = #tpu.dot_dimension_numbers<[2], [1], [1], [2], [0, 0, 0, 1, 1, 2], [0], [0]>} : vector<4x16x32xbf16>, vector<4x32x8xbf16>, vector<4x16x8xf32> -> vector<4x16x8xf32>
    "tpu.trace_stop"() : () -> ()
    %178 = vector.extract_strided_slice %177 {offsets = [0, 0, 0], sizes = [1, 16, 8], strides = [1, 1, 1]} : vector<4x16x8xf32> to vector<1x16x8xf32>
    %179 = vector.shape_cast %178 : vector<1x16x8xf32> to vector<16x8xf32>
    %180 = vector.extract_strided_slice %177 {offsets = [1, 0, 0], sizes = [1, 16, 8], strides = [1, 1, 1]} : vector<4x16x8xf32> to vector<1x16x8xf32>
    %181 = vector.shape_cast %180 : vector<1x16x8xf32> to vector<16x8xf32>
    %182 = vector.extract_strided_slice %177 {offsets = [2, 0, 0], sizes = [1, 16, 8], strides = [1, 1, 1]} : vector<4x16x8xf32> to vector<1x16x8xf32>
    %183 = vector.shape_cast %182 : vector<1x16x8xf32> to vector<16x8xf32>
    %184 = vector.extract_strided_slice %177 {offsets = [3, 0, 0], sizes = [1, 16, 8], strides = [1, 1, 1]} : vector<4x16x8xf32> to vector<1x16x8xf32>
    %185 = vector.shape_cast %184 : vector<1x16x8xf32> to vector<16x8xf32>
    %186 = tpu.concatenate %179, %181, %183, %185 in 1 : vector<16x8xf32>, vector<16x8xf32>, vector<16x8xf32>, vector<16x8xf32> -> vector<16x32xf32>
    %187 = arith.truncf %186 : vector<16x32xf32> to vector<16x32xbf16>
    %cst_68 = arith.constant dense<0.000000e+00> : vector<16x32xf32>
    %188 = tpu.matmul %187, %117, %cst_68 {dimension_numbers = #tpu.dot_dimension_numbers<[1], [0], [0], [1], [0, 0, 1, 1], [], []>} : vector<16x32xbf16>, vector<32x32xbf16>, vector<16x32xf32> -> vector<16x32xf32>
    %189 = vector.broadcast %118 : vector<1x32xf32> to vector<16x32xf32>
    %190 = arith.addf %188, %189 : vector<16x32xf32>
    %191 = arith.addf %190, %108 : vector<16x32xf32>
    %c0_69 = arith.constant 0 : index
    %c0_70 = arith.constant 0 : index
    %192 = vector.load %arg27[%c0_69, %c0_70] : memref<1x32xf32, #tpu.memory_space<vmem>>, vector<1x32xf32>
    %c0_71 = arith.constant 0 : index
    %c0_72 = arith.constant 0 : index
    %193 = vector.load %arg28[%c0_71, %c0_72] : memref<1x32xf32, #tpu.memory_space<vmem>>, vector<1x32xf32>
    %cst_73 = arith.constant dense<0.000000e+00> : vector<16xf32>
    %194 = vector.multi_reduction <add>, %191, %cst_73 [1] : vector<16x32xf32> to vector<16xf32>
    %195 = vector.shape_cast %194 : vector<16xf32> to vector<16x1xf32>
    %cst_74 = arith.constant 3.200000e+01 : f32
    %196 = vector.broadcast %cst_74 : f32 to vector<16x1xf32>
    %197 = arith.divf %195, %196 : vector<16x1xf32>
    %198 = vector.broadcast %197 : vector<16x1xf32> to vector<16x32xf32>
    %199 = arith.subf %191, %198 : vector<16x32xf32>
    %200 = arith.mulf %199, %199 : vector<16x32xf32>
    %cst_75 = arith.constant dense<0.000000e+00> : vector<16xf32>
    %201 = vector.multi_reduction <add>, %200, %cst_75 [1] : vector<16x32xf32> to vector<16xf32>
    %202 = vector.shape_cast %201 : vector<16xf32> to vector<16x1xf32>
    %cst_76 = arith.constant 3.200000e+01 : f32
    %203 = vector.broadcast %cst_76 : f32 to vector<16x1xf32>
    %204 = arith.divf %202, %203 : vector<16x1xf32>
    %205 = vector.broadcast %197 : vector<16x1xf32> to vector<16x32xf32>
    %206 = arith.subf %191, %205 : vector<16x32xf32>
    %cst_77 = arith.constant 9.99999997E-7 : f32
    %207 = vector.broadcast %cst_77 : f32 to vector<16x1xf32>
    %208 = arith.addf %204, %207 : vector<16x1xf32>
    %209 = math.rsqrt %208 : vector<16x1xf32>
    %210 = vector.broadcast %209 : vector<16x1xf32> to vector<16x32xf32>
    %211 = arith.mulf %206, %210 : vector<16x32xf32>
    %212 = vector.broadcast %192 : vector<1x32xf32> to vector<16x32xf32>
    %213 = arith.mulf %211, %212 : vector<16x32xf32>
    %214 = vector.broadcast %193 : vector<1x32xf32> to vector<16x32xf32>
    %215 = arith.addf %213, %214 : vector<16x32xf32>
    %216 = arith.truncf %215 : vector<16x32xf32> to vector<16x32xbf16>
    %c0_78 = arith.constant 0 : index
    %c0_79 = arith.constant 0 : index
    %217 = vector.load %arg21[%c0_78, %c0_79] : memref<32x64xbf16, #tpu.memory_space<vmem>>, vector<32x64xbf16>
    %cst_80 = arith.constant dense<0.000000e+00> : vector<16x64xf32>
    %218 = tpu.matmul %216, %217, %cst_80 {dimension_numbers = #tpu.dot_dimension_numbers<[1], [0], [0], [1], [0, 0, 1, 1], [], []>} : vector<16x32xbf16>, vector<32x64xbf16>, vector<16x64xf32> -> vector<16x64xf32>
    %c0_81 = arith.constant 0 : index
    %c0_82 = arith.constant 0 : index
    %219 = vector.load %arg22[%c0_81, %c0_82] : memref<1x64xf32, #tpu.memory_space<vmem>>, vector<1x64xf32>
    %220 = vector.broadcast %219 : vector<1x64xf32> to vector<16x64xf32>
    %221 = arith.addf %218, %220 : vector<16x64xf32>
    %cst_83 = arith.constant 0.000000e+00 : f32
    %222 = vector.broadcast %cst_83 : f32 to vector<16x64xf32>
    %223 = arith.maximumf %221, %222 : vector<16x64xf32>
    %224 = arith.truncf %223 : vector<16x64xf32> to vector<16x64xbf16>
    %c0_84 = arith.constant 0 : index
    %c0_85 = arith.constant 0 : index
    %225 = vector.load %arg23[%c0_84, %c0_85] : memref<64x32xbf16, #tpu.memory_space<vmem>>, vector<64x32xbf16>
    %cst_86 = arith.constant dense<0.000000e+00> : vector<16x32xf32>
    %226 = tpu.matmul %224, %225, %cst_86 {dimension_numbers = #tpu.dot_dimension_numbers<[1], [0], [0], [1], [0, 0, 1, 1], [], []>} : vector<16x64xbf16>, vector<64x32xbf16>, vector<16x32xf32> -> vector<16x32xf32>
    %c0_87 = arith.constant 0 : index
    %c0_88 = arith.constant 0 : index
    %227 = vector.load %arg24[%c0_87, %c0_88] : memref<1x32xf32, #tpu.memory_space<vmem>>, vector<1x32xf32>
    %228 = vector.broadcast %227 : vector<1x32xf32> to vector<16x32xf32>
    %229 = arith.addf %226, %228 : vector<16x32xf32>
    %230 = arith.addf %229, %215 : vector<16x32xf32>
    %c0_89 = arith.constant 0 : index
    %c0_90 = arith.constant 0 : index
    %231 = vector.load %arg29[%c0_89, %c0_90] : memref<1x32xf32, #tpu.memory_space<vmem>>, vector<1x32xf32>
    %c0_91 = arith.constant 0 : index
    %c0_92 = arith.constant 0 : index
    %232 = vector.load %arg30[%c0_91, %c0_92] : memref<1x32xf32, #tpu.memory_space<vmem>>, vector<1x32xf32>
    %cst_93 = arith.constant dense<0.000000e+00> : vector<16xf32>
    %233 = vector.multi_reduction <add>, %230, %cst_93 [1] : vector<16x32xf32> to vector<16xf32>
    %234 = vector.shape_cast %233 : vector<16xf32> to vector<16x1xf32>
    %cst_94 = arith.constant 3.200000e+01 : f32
    %235 = vector.broadcast %cst_94 : f32 to vector<16x1xf32>
    %236 = arith.divf %234, %235 : vector<16x1xf32>
    %237 = vector.broadcast %236 : vector<16x1xf32> to vector<16x32xf32>
    %238 = arith.subf %230, %237 : vector<16x32xf32>
    %239 = arith.mulf %238, %238 : vector<16x32xf32>
    %cst_95 = arith.constant dense<0.000000e+00> : vector<16xf32>
    %240 = vector.multi_reduction <add>, %239, %cst_95 [1] : vector<16x32xf32> to vector<16xf32>
    %241 = vector.shape_cast %240 : vector<16xf32> to vector<16x1xf32>
    %cst_96 = arith.constant 3.200000e+01 : f32
    %242 = vector.broadcast %cst_96 : f32 to vector<16x1xf32>
    %243 = arith.divf %241, %242 : vector<16x1xf32>
    %244 = vector.broadcast %236 : vector<16x1xf32> to vector<16x32xf32>
    %245 = arith.subf %230, %244 : vector<16x32xf32>
    %cst_97 = arith.constant 9.99999997E-7 : f32
    %246 = vector.broadcast %cst_97 : f32 to vector<16x1xf32>
    %247 = arith.addf %243, %246 : vector<16x1xf32>
    %248 = math.rsqrt %247 : vector<16x1xf32>
    %249 = vector.broadcast %248 : vector<16x1xf32> to vector<16x32xf32>
    %250 = arith.mulf %245, %249 : vector<16x32xf32>
    %251 = vector.broadcast %231 : vector<1x32xf32> to vector<16x32xf32>
    %252 = arith.mulf %250, %251 : vector<16x32xf32>
    %253 = vector.broadcast %232 : vector<1x32xf32> to vector<16x32xf32>
    %254 = arith.addf %252, %253 : vector<16x32xf32>
    %c0_98 = arith.constant 0 : index
    %c0_99 = arith.constant 0 : index
    %255 = vector.load %arg31[%c0_98, %c0_99] : memref<16x32xf32, #tpu.memory_space<vmem>>, vector<16x32xf32>
    tpu.vector_store %arg31[%c0_98, %c0_99], %254 {strides = array<i32>} : memref<16x32xf32, #tpu.memory_space<vmem>>, vector<16x32xf32>,
    return
  }
  func.func @transform_0(%arg0: i32) -> (i32, i32) {
    %c0_i32 = arith.constant 0 : i32
    %c0_i32_0 = arith.constant 0 : i32
    return %arg0, %c0_i32 : i32, i32
  }
  func.func @transform_1(%arg0: i32) -> (i32, i32) {
    %c0_i32 = arith.constant 0 : i32
    %c0_i32_0 = arith.constant 0 : i32
    return %arg0, %c0_i32 : i32, i32
  }
  func.func @transform_2(%arg0: i32) -> (i32, i32, i32) {
    %c0_i32 = arith.constant 0 : i32
    %c0_i32_0 = arith.constant 0 : i32
    %c0_i32_1 = arith.constant 0 : i32
    return %arg0, %c0_i32, %c0_i32_0 : i32, i32, i32
  }
  func.func @transform_3(%arg0: i32) -> (i32, i32, i32) {
    %c0_i32 = arith.constant 0 : i32
    %c0_i32_0 = arith.constant 0 : i32
    %c0_i32_1 = arith.constant 0 : i32
    return %arg0, %c0_i32, %c0_i32_0 : i32, i32, i32
  }
  func.func @transform_4(%arg0: i32) -> (i32, i32) {
    %c0_i32 = arith.constant 0 : i32
    %c0_i32_0 = arith.constant 0 : i32
    %c0_i32_1 = arith.constant 0 : i32
    return %c0_i32, %c0_i32_0 : i32, i32
  }
  func.func @transform_5(%arg0: i32) -> (i32, i32) {
    %c0_i32 = arith.constant 0 : i32
    %c0_i32_0 = arith.constant 0 : i32
    %c0_i32_1 = arith.constant 0 : i32
    return %c0_i32, %c0_i32_0 : i32, i32
  }
  func.func @transform_6(%arg0: i32) -> (i32, i32) {
    %c0_i32 = arith.constant 0 : i32
    %c0_i32_0 = arith.constant 0 : i32
    %c0_i32_1 = arith.constant 0 : i32
    return %c0_i32, %c0_i32_0 : i32, i32
  }
  func.func @transform_7(%arg0: i32) -> (i32, i32) {
    %c0_i32 = arith.constant 0 : i32
    %c0_i32_0 = arith.constant 0 : i32
    %c0_i32_1 = arith.constant 0 : i32
    return %c0_i32, %c0_i32_0 : i32, i32
  }
  func.func @transform_8(%arg0: i32) -> (i32, i32) {
    %c0_i32 = arith.constant 0 : i32
    %c0_i32_0 = arith.constant 0 : i32
    %c0_i32_1 = arith.constant 0 : i32
    return %c0_i32, %c0_i32_0 : i32, i32
  }
  func.func @transform_9(%arg0: i32) -> (i32, i32) {
    %c0_i32 = arith.constant 0 : i32
    %c0_i32_0 = arith.constant 0 : i32
    %c0_i32_1 = arith.constant 0 : i32
    return %c0_i32, %c0_i32_0 : i32, i32
  }
  func.func @transform_10(%arg0: i32) -> (i32, i32) {
    %c0_i32 = arith.constant 0 : i32
    %c0_i32_0 = arith.constant 0 : i32
    %c0_i32_1 = arith.constant 0 : i32
    return %c0_i32, %c0_i32_0 : i32, i32
  }
  func.func @transform_11(%arg0: i32) -> (i32, i32) {
    %c0_i32 = arith.constant 0 : i32
    %c0_i32_0 = arith.constant 0 : i32
    %c0_i32_1 = arith.constant 0 : i32
    return %c0_i32, %c0_i32_0 : i32, i32
  }
  func.func @transform_12(%arg0: i32) -> (i32, i32) {
    %c0_i32 = arith.constant 0 : i32
    %c0_i32_0 = arith.constant 0 : i32
    %c0_i32_1 = arith.constant 0 : i32
    return %c0_i32, %c0_i32_0 : i32, i32
  }
  func.func @transform_13(%arg0: i32) -> (i32, i32) {
    %c0_i32 = arith.constant 0 : i32
    %c0_i32_0 = arith.constant 0 : i32
    %c0_i32_1 = arith.constant 0 : i32
    return %c0_i32, %c0_i32_0 : i32, i32
  }
  func.func @transform_14(%arg0: i32) -> (i32, i32) {
    %c0_i32 = arith.constant 0 : i32
    %c0_i32_0 = arith.constant 0 : i32
    %c0_i32_1 = arith.constant 0 : i32
    return %c0_i32, %c0_i32_0 : i32, i32
  }
  func.func @transform_15(%arg0: i32) -> (i32, i32) {
    %c0_i32 = arith.constant 0 : i32
    %c0_i32_0 = arith.constant 0 : i32
    %c0_i32_1 = arith.constant 0 : i32
    return %c0_i32, %c0_i32_0 : i32, i32
  }
  func.func @transform_16(%arg0: i32) -> (i32, i32) {
    %c0_i32 = arith.constant 0 : i32
    %c0_i32_0 = arith.constant 0 : i32
    %c0_i32_1 = arith.constant 0 : i32
    return %c0_i32, %c0_i32_0 : i32, i32
  }
  func.func @transform_17(%arg0: i32) -> (i32, i32) {
    %c0_i32 = arith.constant 0 : i32
    %c0_i32_0 = arith.constant 0 : i32
    %c0_i32_1 = arith.constant 0 : i32
    return %c0_i32, %c0_i32_0 : i32, i32
  }
  func.func @transform_18(%arg0: i32) -> (i32, i32) {
    %c0_i32 = arith.constant 0 : i32
    %c0_i32_0 = arith.constant 0 : i32
    %c0_i32_1 = arith.constant 0 : i32
    return %c0_i32, %c0_i32_0 : i32, i32
  }
  func.func @transform_19(%arg0: i32) -> (i32, i32) {
    %c0_i32 = arith.constant 0 : i32
    %c0_i32_0 = arith.constant 0 : i32
    %c0_i32_1 = arith.constant 0 : i32
    return %c0_i32, %c0_i32_0 : i32, i32
  }
  func.func @transform_20(%arg0: i32) -> (i32, i32) {
    %c0_i32 = arith.constant 0 : i32
    %c0_i32_0 = arith.constant 0 : i32
    %c0_i32_1 = arith.constant 0 : i32
    return %c0_i32, %c0_i32_0 : i32, i32
  }
  func.func @transform_21(%arg0: i32) -> (i32, i32) {
    %c0_i32 = arith.constant 0 : i32
    %c0_i32_0 = arith.constant 0 : i32
    %c0_i32_1 = arith.constant 0 : i32
    return %c0_i32, %c0_i32_0 : i32, i32
  }
  func.func @transform_22(%arg0: i32) -> (i32, i32) {
    %c0_i32 = arith.constant 0 : i32
    %c0_i32_0 = arith.constant 0 : i32
    %c0_i32_1 = arith.constant 0 : i32
    return %c0_i32, %c0_i32_0 : i32, i32
  }
  func.func @transform_23(%arg0: i32) -> (i32, i32) {
    %c0_i32 = arith.constant 0 : i32
    %c0_i32_0 = arith.constant 0 : i32
    %c0_i32_1 = arith.constant 0 : i32
    return %c0_i32, %c0_i32_0 : i32, i32
  }
  func.func @transform_24(%arg0: i32) -> (i32, i32) {
    %c0_i32 = arith.constant 0 : i32
    %c0_i32_0 = arith.constant 0 : i32
    %c0_i32_1 = arith.constant 0 : i32
    return %c0_i32, %c0_i32_0 : i32, i32
  }
  func.func @transform_25(%arg0: i32) -> (i32, i32) {
    %c0_i32 = arith.constant 0 : i32
    %c0_i32_0 = arith.constant 0 : i32
    %c0_i32_1 = arith.constant 0 : i32
    return %c0_i32, %c0_i32_0 : i32, i32
  }
  func.func @transform_26(%arg0: i32) -> (i32, i32) {
    %c0_i32 = arith.constant 0 : i32
    %c0_i32_0 = arith.constant 0 : i32
    %c0_i32_1 = arith.constant 0 : i32
    return %c0_i32, %c0_i32_0 : i32, i32
  }
  func.func @transform_27(%arg0: i32) -> (i32, i32) {
    %c0_i32 = arith.constant 0 : i32
    %c0_i32_0 = arith.constant 0 : i32
    %c0_i32_1 = arith.constant 0 : i32
    return %c0_i32, %c0_i32_0 : i32, i32
  }
  func.func @transform_28(%arg0: i32) -> (i32, i32) {
    %c0_i32 = arith.constant 0 : i32
    %c0_i32_0 = arith.constant 0 : i32
    %c0_i32_1 = arith.constant 0 : i32
    return %c0_i32, %c0_i32_0 : i32, i32
  }
  func.func @transform_29(%arg0: i32) -> (i32, i32) {
    %c0_i32 = arith.constant 0 : i32
    %c0_i32_0 = arith.constant 0 : i32
    %c0_i32_1 = arith.constant 0 : i32
    return %c0_i32, %c0_i32_0 : i32, i32
  }
  func.func @transform_30(%arg0: i32) -> (i32, i32) {
    %c0_i32 = arith.constant 0 : i32
    %c0_i32_0 = arith.constant 0 : i32
    return %arg0, %c0_i32 : i32, i32
  }
}

</mosaic_0001>

<bundles_post_ra>
// kernel: tpu_custom_call.1
= control target key start
LH: loop header
LB: loop body
LE: loop exit
PB: predicated region body
PF: predicated region fallthrough
CT: control target
= control target key end

     0   :  { %s4163_s6 = smov 1   ;;  %s4164_s10 = smov 2   ;;  %s4934_s0 = inlined_call_operand.smem [shape: u32[31], index: -1, kind: input, shape index: {}] }
   0x1   :  { %s4223_s5 = sld [smem:[%s4934_s0]]   ;;  %s4165_s14 = smov 3  }
   0x2   :  { %s4228_s9 = sld [smem:[%s4934_s0 + %s4163_s6]]   ;;  %s4166_s18 = smov 4  }
   0x3   :  { %s4233_s13 = sld [smem:[%s4934_s0 + %s4164_s10]]   ;;  %s4167_s22 = smov 5  }
   0x4   :  { %s4238_s17 = sld [smem:[%s4934_s0 + %s4165_s14]]   ;;  %s4168_s26 = smov 6  }
   0x5   :  { %s4243_s21 = sld [smem:[%s4934_s0 + %s4166_s18]]   ;;  %s4169_s30 = smov 7  }
   0x6   :  { %s4248_s25 = sld [smem:[%s4934_s0 + %s4167_s22]]   ;;  %s4170_s4 = smov 8  }
   0x7   :  { %4951 = sst [smem:[#allocation31_spill]] %s4223_s5  ;;  %s4171_s10 = smov 9  }
   0x8   :  { %4952 = sst [smem:[#allocation32_spill]] %s4228_s9  ;;  %s4172_s15 = smov 10  }
   0x9   :  { %4953 = sst [smem:[#allocation33_spill]] %s4233_s13  ;;  %s4173_s20 = smov 11  }
   0xa   :  { %4954 = sst [smem:[#allocation34_spill]] %s4238_s17  ;;  %s4175_s1 = smov 13  }
   0xb   :  { %s4253_s29 = sld [smem:[%s4934_s0 + %s4168_s26]]   ;;  %s4174_s26 = smov 12  }
   0xc   :  { %4955 = sst [smem:[#allocation35_spill]] %s4248_s25  ;;  %s4176_s7 = smov 14  }
   0xd   :  { %s4258_s3 = sld [smem:[%s4934_s0 + %s4169_s30]]   ;;  %s4178_s22 = smov 16  }
   0xe   :  { %s4263_s8 = sld [smem:[%s4934_s0 + %s4170_s4]]   ;;  %s4179_s28 = smov 17  }
   0xf   :  { %s4268_s14 = sld [smem:[%s4934_s0 + %s4171_s10]]  }
  0x10   :  { %s4273_s19 = sld [smem:[%s4934_s0 + %s4172_s15]]   ;;  %s4177_s15 = smov 15  }
  0x11   :  { %s4278_s24 = sld [smem:[%s4934_s0 + %s4173_s20]]  }
  0x12   :  { %s4283_s30 = sld [smem:[%s4934_s0 + %s4174_s26]]  }
  0x13   :  { %4956 = sst [smem:[#allocation36_spill]] %s4258_s3 }
  0x14   :  { %4957 = sst [smem:[#allocation37_spill]] %s4263_s8 }
  0x15   :  { %s4288_s6 = sld [smem:[%s4934_s0 + %s4175_s1]]  }
  0x16   :  { %s4293_s12 = sld [smem:[%s4934_s0 + %s4176_s7]]   ;;  %s4180_s7 = smov 18  }
  0x17   :  { %s4298_s20 = sld [smem:[%s4934_s0 + %s4177_s15]]   ;;  %s4181_s15 = smov 19  }
  0x18   :  { %s4303_s27 = sld [smem:[%s4934_s0 + %s4178_s22]]   ;;  %s4182_s22 = smov 20  }
  0x19   :  { %s4308_s4 = sld [smem:[%s4934_s0 + %s4179_s28]]   ;;  %s4183_s28 = smov 21  }
  0x1a   :  { %s4313_s17 = sld [smem:[%s4934_s0 + %s4180_s7]]   ;;  %s4184_s7 = smov 22  }
  0x1b   :  { %s4318_s9 = sld [smem:[%s4934_s0 + %s4181_s15]]   ;;  %s4185_s15 = smov 23  }
  0x1c   :  { %s4323_s13 = sld [smem:[%s4934_s0 + %s4182_s22]]   ;;  %s4186_s22 = smov 24  }
  0x1d   :  { %s4328_s8 = sld [smem:[%s4934_s0 + %s4183_s28]]   ;;  %s4187_s28 = smov 25  }
  0x1e   :  { %s4338_s25 = sld [smem:[%s4934_s0 + %s4185_s15]]   ;;  %s4189_s15 = smov 27  }
  0x1f   :  { %4958 = sst [smem:[#allocation38_spill]] %s4308_s4 }
  0x20   :  { %4959 = sst [smem:[#allocation39_spill]] %s4313_s17 }
  0x21   :  { %s4333_s17 = sld [smem:[%s4934_s0 + %s4184_s7]]   ;;  %s4188_s7 = smov 26  }
  0x22   :  { %s4343_s5 = sld [smem:[%s4934_s0 + %s4186_s22]]   ;;  %s4190_s22 = smov 28  }
  0x23   :  { %4960 = sst [smem:[#allocation40_spill]] %s4328_s8 }
  0x24   :  { %4962 = sst [smem:[#allocation42_spill]] %s4338_s25 }
  0x25   :  { %s4348_s8 = sld [smem:[%s4934_s0 + %s4187_s28]]   ;;  %s4191_s28 = smov 29  }
  0x26   :  { %s4358_s25 = sld [smem:[%s4934_s0 + %s4189_s15]]  }
  0x27   :  { %4961 = sst [smem:[#allocation41_spill]] %s4333_s17 }
  0x28   :  { %4963 = sst [smem:[#allocation43_spill]] %s4343_s5 }
  0x29   :  { %s4353_s17 = sld [smem:[%s4934_s0 + %s4188_s7]]   ;;  %s4192_s7 = smov 30  }
  0x2a   :  { %s4363_s5 = sld [smem:[%s4934_s0 + %s4190_s22]]  }
  0x2b   :  { %4964 = sst [smem:[#allocation44_spill]] %s4348_s8 }
  0x2c   :  { %s4368_s8 = sld [smem:[%s4934_s0 + %s4191_s28]]  }
  0x2f   :  { %4965 = sst [smem:[#allocation45_spill]] %s4353_s17 }
  0x30   :  { %4966 = sst [smem:[#allocation46_spill]] %s4363_s5 }
  0x31   :  { %s4373_s17 = sld [smem:[%s4934_s0 + %s4192_s7]]  }
  0x32   :  { %4967 = sst [smem:[#allocation47_spill]] %s4368_s8 }
  0x37   :  { %4968 = sst [smem:[#allocation48_spill]] %s4373_s17 }
  0x38   :  { %66 = vsyncpa [#allocation3], 0 }
  0x39   :  { %67 = vsyncpa [#allocation6], 0 }
  0x3a   :  { %68 = vsyncpa [#allocation9], 0 }
  0x3b   :  { %69 = vsyncpa [#allocation12], 0 }
  0x3c   :  { %70 = vsyncpa [#allocation15], 0 }
  0x3d   :  { %71 = vsyncpa [#allocation18], 0 }
  0x3e   :  { %72 = vsyncpa [#allocation21], 0 }
  0x3f   :  { %73 = vsyncpa [#allocation4], 0 }
  0x40   :  { %75 = vsyncpa [#allocation4 + $0x1], 0  ;;  %s4375_s15 = smov 0   ;;  %s4377_s16 = smov 0  }
  0x41   :  { %s4379_s18 = smov 0   ;;  %s4381_s22 = smov 0  }
  0x42 LB: > { %s4969_s4 = sld [smem:[#allocation38_spill]]  ;;  %s4396_s0 = sadd.s32 4294967295, %s4161_s22   ;;  %s4153_s16 = sphi %s4377_s16, %s5009_s16   ;;  %s4149_s15 = sphi %s4375_s15, %s5008_s15   ;;  %s4161_s22 = sphi %s4381_s22, %s5005_s22   ;;  %s4157_s18 = sphi %s4379_s18, %s5007_s18  }
  0x43   : > { %s4970_s3 = sld [smem:[#allocation36_spill]]  ;;  %s3061_s23 = sadd.s32 4294967294, %s4161_s22  }
  0x44   : > { %4971 = sst [smem:[#allocation49_spill]] %s4149_s15  ;;  %s4400_s26 = sadd.s32 1, %s4161_s22  }
  0x45   : > { %4972 = sst [smem:[#allocation50_spill]] %s4157_s18  ;;  %s738_s28 = sadd.s32 1, %s4157_s18 }
  0x46   : > { %4973 = sst [smem:[#allocation51_spill]] %s4161_s22  ;;  %s735_s1 = ssub.s32 %s4161_s22, %s4400_s26 }
  0x47   : > { %4974 = sst [smem:[#allocation52_spill]] %s4400_s26  ;;  %p748_p0 = scmp.ne.s32.totalorder %s4157_s18, %s4153_s16 }
  0x48   : > { %p736_p1 = scmp.eq.s32.totalorder %s735_s1, 0  ;;  %p749_p2 = scmp.eq.s32.totalorder %s4396_s0, 1 }
  0x49   : > { %p754_p3 = scmp.ne.s32.totalorder %s4153_s16, %s4149_s15  ;;  %p755_p4 = scmp.eq.s32.totalorder %s3061_s23, 1 }
  0x4a   : > { %s4411_s2 = scalar_select %p736_p1, %s4157_s18, %s738_s28  }
  0x4b   : > { %p4413_p5 = por %p749_p2, %p748_p0  ;;  %p4417_p6 = por %p755_p4, %p754_p3 }
  0x4c   : > { %4975 = sst [smem:[#allocation53_spill]] %s4411_s2  ;;  %p3062_p7 = scmp.ge.s32.totalorder %s4161_s22, 1 }
  0x4d   : > { %s4976_s7 = scalar_select %p4413_p5, 1, 0 }
  0x4e   : > { %s4978_s10 = scalar_select %p4417_p6, 1, 0 }
  0x4f   : > { %4977 = sst [smem:[#allocation54_spill]] %s4976_s7  ;;  %p762_p8 = scmp.lt.s32.totalorder %s4161_s22, 3 }
  0x50   : > { %4979 = sst [smem:[#allocation55_spill]] %s4978_s10  ;;  %p3358_p9 = scmp.eq.s32.totalorder %s4396_s0, 0 }
  0x51   : > { %p4424_p10 = pnand %p3062_p7, %p762_p8  ;;  %s798_s23 = sshll.u32 %s4268_s14, 4  ;;  %s799_s23 = int_to_ptr.hbm [resolvable:$true] %s798_s23 }
  0x52   : > { %s4193_s28 = smov [#allocation5]   ;;  %s824_s2 = sshll.u32 %s4278_s24, 4  ;;  %s4438_s2 = int_to_ptr.hbm [resolvable:$true] %s824_s2 }
  0x53   : > { %p3317_p11 = pneg %p4424_p10  ;;  %s800_s1 = sshll.u32 %s4193_s28, 4  ;;  %s801_s1 = int_to_ptr.vmem [resolvable:$true] %s800_s1 }
  0x54   : > { %s850_s26 = sshll.u32 %s4288_s6, 4  ;;  %s4194_s10 = smov [#allocation8]   ;;  %s4456_s26 = int_to_ptr.hbm [resolvable:$true] %s850_s26 }
  0x55   : > { %p4434_p12 = pnand %p3358_p9, %p3317_p11  ;;  %s4441_s15 = sshll.u32 %s4194_s10, 4  ;;  %s827_s15 = int_to_ptr.vmem [resolvable:$true] %s4441_s15 }
  0x56   : > { %s3711_s22 = sshra.s32 %s799_s23, 4  ;;  %s3718_s17 = scalar_lea.hbm %s4268_s14, 1  ;;  %s3712_s22 = int_to_ptr.hbm [resolvable:$true] %s3711_s22 }
  0x57   : > { %s3713_s7 = scalar_lea.hbm %s3712_s22, 1  ;;  %p4445_p0 = pneg %p4434_p12 }
  0x58   : > { %p3714_p13 = scmp.ne.s32.totalorder %s3712_s22, %s3713_s7  ;;  %p3719_p3 = scmp.lt.s32.totalorder %s3712_s22, %s4268_s14 }
  0x59   : > { %p3720_p4 = scmp.lt.s32.totalorder %s3718_s17, %s3713_s7 }
  0x5a   : > { %p3716_p1 = pnand %p4445_p0, %p3714_p13 }
  0x5b   : > { %p3721_p7 = por %p3720_p4, %p3719_p3 }
  0x5c   : > { %p3717_p2 = pneg %p3716_p1 }
  0x5e   : > { %p3722_p8 = pnand %p3721_p7, %p3717_p2 }
  0x60   : > { %3725 = shalt.err (!%p3722_p8)
}
  0x61   : > { %3323 = dma.hbm_to_vmem [thread:$0]  (!%p4434_p12), %s799_s23, 16, %s801_s1, [#allocation6]  }
  0x62   : > { %s3741_s10 = sshra.s32 %s4438_s2, 4  ;;  %s3748_s17 = scalar_lea.hbm %s4278_s24, 1  ;;  %s3742_s10 = int_to_ptr.hbm [resolvable:$true] %s3741_s10 }
  0x63   : > { %s3743_s8 = scalar_lea.hbm %s3742_s10, 1  ;;  %p3749_p2 = scmp.lt.s32.totalorder %s3742_s10, %s4278_s24 }
  0x64   : > { %p3744_p11 = scmp.ne.s32.totalorder %s3742_s10, %s3743_s8  ;;  %p3750_p3 = scmp.lt.s32.totalorder %s3748_s17, %s3743_s8 }
  0x66   : > { %p3746_p13 = pnand %p3744_p11, %p4445_p0  ;;  %p3751_p4 = por %p3750_p3, %p3749_p2 }
  0x68   : > { %p3747_p1 = pneg %p3746_p13 }
  0x6a   : > { %p3752_p7 = pnand %p3751_p4, %p3747_p1 }
  0x6c   : > { %3755 = shalt.err (!%p3752_p7)
}
  0x6d   : > { %3329 = dma.hbm_to_vmem [thread:$0]  (!%p4434_p12), %s4438_s2, 16, %s827_s15, [#allocation9]  }
  0x6e   : > { %s876_s22 = sshll.u32 %s4298_s20, 4  ;;  %s4195_s7 = smov [#allocation11]   ;;  %s4467_s22 = int_to_ptr.hbm [resolvable:$true] %s876_s22 }
  0x6f   : > { %s852_s23 = sshll.u32 %s4195_s7, 4  ;;  %s3771_s1 = sshra.s32 %s4456_s26, 4  ;;  %s853_s23 = int_to_ptr.vmem [resolvable:$true] %s852_s23  ;;  %s3772_s1 = int_to_ptr.hbm [resolvable:$true] %s3771_s1 }
  0x70   : > { %s3773_s8 = scalar_lea.hbm %s3772_s1, 1  ;;  %s3778_s10 = scalar_lea.hbm %s4288_s6, 1 }
  0x71   : > { %p3774_p8 = scmp.ne.s32.totalorder %s3772_s1, %s3773_s8  ;;  %p3779_p1 = scmp.lt.s32.totalorder %s3772_s1, %s4288_s6 }
  0x72   : > { %p3780_p2 = scmp.lt.s32.totalorder %s3778_s10, %s3773_s8 }
  0x73   : > { %p3776_p11 = pnand %p3774_p8, %p4445_p0 }
  0x74   : > { %p3781_p3 = por %p3780_p2, %p3779_p1 }
  0x75   : > { %p3777_p13 = pneg %p3776_p11 }
  0x77   : > { %p3782_p4 = pnand %p3781_p3, %p3777_p13 }
  0x79   : > { %3785 = shalt.err (!%p3782_p4)
}
  0x7a   : > { %3335 = dma.hbm_to_vmem [thread:$0]  (!%p4434_p12), %s4456_s26, 16, %s853_s23, [#allocation12]  }
  0x7b   : > { %s4196_s15 = smov [#allocation14]   ;;  %s902_s17 = sshll.u32 %s4969_s4, 4  ;;  %s4478_s17 = int_to_ptr.hbm [resolvable:$true] %s902_s17 }
  0x7c   : > { %s878_s2 = sshll.u32 %s4196_s15, 4  ;;  %s3801_s7 = sshra.s32 %s4467_s22, 4  ;;  %s879_s2 = int_to_ptr.vmem [resolvable:$true] %s878_s2  ;;  %s3802_s7 = int_to_ptr.hbm [resolvable:$true] %s3801_s7 }
  0x7d   : > { %s3803_s1 = scalar_lea.hbm %s3802_s7, 1  ;;  %s3808_s8 = scalar_lea.hbm %s4298_s20, 1 }
  0x7e   : > { %p3804_p7 = scmp.ne.s32.totalorder %s3802_s7, %s3803_s1  ;;  %p3809_p13 = scmp.lt.s32.totalorder %s3802_s7, %s4298_s20 }
  0x7f   : > { %p3810_p1 = scmp.lt.s32.totalorder %s3808_s8, %s3803_s1 }
  0x80   : > { %p3806_p8 = pnand %p3804_p7, %p4445_p0 }
  0x81   : > { %p3811_p2 = por %p3810_p1, %p3809_p13 }
  0x82   : > { %p3807_p11 = pneg %p3806_p8 }
  0x84   : > { %p3812_p3 = pnand %p3811_p2, %p3807_p11 }
  0x86   : > { %3815 = shalt.err (!%p3812_p3)
}
  0x87   : > { %3341 = dma.hbm_to_vmem [thread:$0]  (!%p4434_p12), %s4467_s22, 16, %s879_s2, [#allocation15]  }
  0x88   : > { %s783_s26 = sshll.u32 %s4970_s3, 4  ;;  %s4197_s23 = smov [#allocation17]   ;;  %s4489_s26 = int_to_ptr.hbm [resolvable:$true] %s783_s26 }
  0x89   : > { %s904_s10 = sshll.u32 %s4197_s23, 4  ;;  %s3831_s15 = sshra.s32 %s4478_s17, 4  ;;  %s905_s10 = int_to_ptr.vmem [resolvable:$true] %s904_s10  ;;  %s3832_s15 = int_to_ptr.hbm [resolvable:$true] %s3831_s15 }
  0x8a   : > { %s3833_s7 = scalar_lea.hbm %s3832_s15, 1  ;;  %s3838_s1 = scalar_lea.hbm %s4969_s4, 1 }
  0x8b   : > { %p3834_p4 = scmp.ne.s32.totalorder %s3832_s15, %s3833_s7  ;;  %p3839_p11 = scmp.lt.s32.totalorder %s3832_s15, %s4969_s4 }
  0x8c   : > { %p3840_p13 = scmp.lt.s32.totalorder %s3838_s1, %s3833_s7 }
  0x8d   : > { %p3836_p7 = pnand %p3834_p4, %p4445_p0 }
  0x8e   : > { %p3841_p1 = por %p3840_p13, %p3839_p11 }
  0x8f   : > { %p3837_p8 = pneg %p3836_p7 }
  0x91   : > { %p3842_p2 = pnand %p3841_p1, %p3837_p8 }
  0x93   : > { %3845 = shalt.err (!%p3842_p2)
}
  0x94   : > { %3347 = dma.hbm_to_vmem [thread:$0]  (!%p4434_p12), %s4478_s17, 16, %s905_s10, [#allocation18]  }
  0x95   : > { %s4198_s22 = smov [#allocation2]   ;;  %s809_s8 = sshll.u32 %s4273_s19, 4  ;;  %s4500_s8 = int_to_ptr.hbm [resolvable:$true] %s809_s8 }
  0x96   : > { %s785_s2 = sshll.u32 %s4198_s22, 4  ;;  %s3861_s23 = sshra.s32 %s4489_s26, 4  ;;  %s786_s2 = int_to_ptr.vmem [resolvable:$true] %s785_s2  ;;  %s3862_s23 = int_to_ptr.hbm [resolvable:$true] %s3861_s23 }
  0x97   : > { %s3863_s15 = scalar_lea.hbm %s3862_s23, 1  ;;  %s3868_s7 = scalar_lea.hbm %s4970_s3, 1 }
  0x98   : > { %p3864_p3 = scmp.ne.s32.totalorder %s3862_s23, %s3863_s15  ;;  %p3869_p8 = scmp.lt.s32.totalorder %s3862_s23, %s4970_s3 }
  0x99   : > { %p3870_p11 = scmp.lt.s32.totalorder %s3868_s7, %s3863_s15 }
  0x9a   : > { %p3866_p4 = pnand %p3864_p3, %p4445_p0 }
  0x9b   : > { %p3871_p13 = por %p3870_p11, %p3869_p8 }
  0x9c   : > { %p3867_p7 = pneg %p3866_p4 }
  0x9e   : > { %p3872_p1 = pnand %p3871_p13, %p3867_p7 }
  0xa0   : > { %3875 = shalt.err (!%p3872_p1)
}
  0xa1   : > { %3320 = dma.hbm_to_vmem [thread:$0]  (!%p4434_p12), %s4489_s26, 16, %s786_s2, [#allocation3]  }
  0xa2   : > { %s4199_s17 = smov [#allocation7]   ;;  %s835_s1 = sshll.u32 %s4283_s30, 4  ;;  %s836_s1 = int_to_ptr.hbm [resolvable:$true] %s835_s1 }
  0xa3   : > { %s811_s10 = sshll.u32 %s4199_s17, 4  ;;  %s3891_s22 = sshra.s32 %s4500_s8, 4  ;;  %s812_s10 = int_to_ptr.vmem [resolvable:$true] %s811_s10  ;;  %s3892_s22 = int_to_ptr.hbm [resolvable:$true] %s3891_s22 }
  0xa4   : > { %s3893_s23 = scalar_lea.hbm %s3892_s22, 16  ;;  %s3898_s15 = scalar_lea.hbm %s4273_s19, 16 }
  0xa5   : > { %p3894_p2 = scmp.ne.s32.totalorder %s3892_s22, %s3893_s23  ;;  %p3899_p7 = scmp.lt.s32.totalorder %s3892_s22, %s4273_s19 }
  0xa6   : > { %p3900_p8 = scmp.lt.s32.totalorder %s3898_s15, %s3893_s23 }
  0xa7   : > { %p3896_p3 = pnand %p3894_p2, %p4445_p0 }
  0xa8   : > { %p3901_p11 = por %p3900_p8, %p3899_p7 }
  0xa9   : > { %p3897_p4 = pneg %p3896_p3 }
  0xab   : > { %p3902_p13 = pnand %p3901_p11, %p3897_p4 }
  0xad   : > { %3905 = shalt.err (!%p3902_p13)
}
  0xae   : > { %s4948_s7 = smov 64   ;;  %s4201_s26 = smov 4  }
  0xaf   : > { %3326 = dma.hbm_to_vmem [thread:$0]  (!%p4434_p12), %s4500_s8, 256, %s812_s10, [#allocation6], %s4948_s7, %s4948_s7, %s4201_s26  }
  0xb0   : > { %s4202_s2 = smov [#allocation10]   ;;  %s861_s22 = sshll.u32 %s4293_s12, 4  ;;  %s4523_s22 = int_to_ptr.hbm [resolvable:$true] %s861_s22 }
  0xb1   : > { %s837_s17 = sshll.u32 %s4202_s2, 4  ;;  %s3921_s23 = sshra.s32 %s836_s1, 4  ;;  %s838_s17 = int_to_ptr.vmem [resolvable:$true] %s837_s17  ;;  %s3922_s23 = int_to_ptr.hbm [resolvable:$true] %s3921_s23 }
  0xb2   : > { %s3923_s15 = scalar_lea.hbm %s3922_s23, 16  ;;  %s3928_s3 = scalar_lea.hbm %s4283_s30, 16 }
  0xb3   : > { %p3924_p1 = scmp.ne.s32.totalorder %s3922_s23, %s3923_s15  ;;  %p3929_p4 = scmp.lt.s32.totalorder %s3922_s23, %s4283_s30 }
  0xb4   : > { %p3930_p7 = scmp.lt.s32.totalorder %s3928_s3, %s3923_s15 }
  0xb5   : > { %p3926_p2 = pnand %p3924_p1, %p4445_p0 }
  0xb6   : > { %p3931_p8 = por %p3930_p7, %p3929_p4 }
  0xb7   : > { %p3927_p3 = pneg %p3926_p2 }
  0xb9   : > { %p3932_p11 = pnand %p3931_p8, %p3927_p3 }
  0xbb   : > { %3935 = shalt.err (!%p3932_p11)
}
  0xbc   : > { %3332 = dma.hbm_to_vmem [thread:$0]  (!%p4434_p12), %s836_s1, 256, %s838_s17, [#allocation9], %s4948_s7, %s4948_s7, %s4201_s26  }
  0xbd   : > { %s887_s8 = sshll.u32 %s4303_s27, 4  ;;  %s4203_s10 = smov [#allocation13]   ;;  %s4535_s8 = int_to_ptr.hbm [resolvable:$true] %s887_s8 }
  0xbe   : > { %s863_s2 = sshll.u32 %s4203_s10, 4  ;;  %s3951_s3 = sshra.s32 %s4523_s22, 4  ;;  %s864_s2 = int_to_ptr.vmem [resolvable:$true] %s863_s2  ;;  %s3952_s3 = int_to_ptr.hbm [resolvable:$true] %s3951_s3 }
  0xbf   : > { %s3953_s23 = scalar_lea.hbm %s3952_s3, 16  ;;  %s3958_s15 = scalar_lea.hbm %s4293_s12, 16 }
  0xc0   : > { %p3954_p13 = scmp.ne.s32.totalorder %s3952_s3, %s3953_s23  ;;  %p3959_p3 = scmp.lt.s32.totalorder %s3952_s3, %s4293_s12 }
  0xc1   : > { %p3960_p4 = scmp.lt.s32.totalorder %s3958_s15, %s3953_s23 }
  0xc2   : > { %p3956_p1 = pnand %p3954_p13, %p4445_p0 }
  0xc3   : > { %p3961_p7 = por %p3960_p4, %p3959_p3 }
  0xc4   : > { %p3957_p2 = pneg %p3956_p1 }
  0xc6   : > { %p3962_p8 = pnand %p3961_p7, %p3957_p2 }
  0xc8   : > { %3965 = shalt.err (!%p3962_p8)
}
  0xc9   : > { %3338 = dma.hbm_to_vmem [thread:$0]  (!%p4434_p12), %s4523_s22, 256, %s864_s2, [#allocation12], %s4948_s7, %s4948_s7, %s4201_s26  }
  0xca   : > { %s4204_s1 = smov [#allocation16]   ;;  %s917_s10 = sshll.u32 %s4318_s9, 4  ;;  %s4549_s10 = int_to_ptr.hbm [resolvable:$true] %s917_s10 }
  0xcb   : > { %s889_s17 = sshll.u32 %s4204_s1, 4  ;;  %s3981_s3 = sshra.s32 %s4535_s8, 4  ;;  %s890_s17 = int_to_ptr.vmem [resolvable:$true] %s889_s17  ;;  %s3982_s3 = int_to_ptr.hbm [resolvable:$true] %s3981_s3 }
  0xcc   : > { %s3983_s23 = scalar_lea.hbm %s3982_s3, 16  ;;  %s3988_s15 = scalar_lea.hbm %s4303_s27, 16 }
  0xcd   : > { %p3984_p11 = scmp.ne.s32.totalorder %s3982_s3, %s3983_s23  ;;  %p3989_p2 = scmp.lt.s32.totalorder %s3982_s3, %s4303_s27 }
  0xce   : > { %p3990_p3 = scmp.lt.s32.totalorder %s3988_s15, %s3983_s23 }
  0xcf   : > { %p3986_p13 = pnand %p3984_p11, %p4445_p0 }
  0xd0   : > { %p3991_p4 = por %p3990_p3, %p3989_p2 }
  0xd1   : > { %p3987_p1 = pneg %p3986_p13 }
  0xd3   : > { %p3992_p7 = pnand %p3991_p4, %p3987_p1 }
  0xd5   : > { %3995 = shalt.err (!%p3992_p7)
}
  0xd6   : > { %3344 = dma.hbm_to_vmem [thread:$0]  (!%p4434_p12), %s4535_s8, 256, %s890_s17, [#allocation15], %s4948_s7, %s4948_s7, %s4201_s26  }
  0xd7   : > { %s928_s22 = sshll.u32 %s4323_s13, 4  ;;  %s4205_s2 = smov [#allocation19]   ;;  %s4563_s22 = int_to_ptr.hbm [resolvable:$true] %s928_s22 }
  0xd8   : > { %s919_s1 = sshll.u32 %s4205_s2, 4  ;;  %s4011_s3 = sshra.s32 %s4549_s10, 4  ;;  %s920_s1 = int_to_ptr.vmem [resolvable:$true] %s919_s1  ;;  %s4012_s3 = int_to_ptr.hbm [resolvable:$true] %s4011_s3 }
  0xd9   : > { %s4013_s23 = scalar_lea.hbm %s4012_s3, 1  ;;  %s4018_s15 = scalar_lea.hbm %s4318_s9, 1 }
  0xda   : > { %p4014_p8 = scmp.ne.s32.totalorder %s4012_s3, %s4013_s23  ;;  %p4019_p1 = scmp.lt.s32.totalorder %s4012_s3, %s4318_s9 }
  0xdb   : > { %p4020_p2 = scmp.lt.s32.totalorder %s4018_s15, %s4013_s23 }
  0xdc   : > { %p4016_p11 = pnand %p4014_p8, %p4445_p0 }
  0xdd   : > { %p4021_p3 = por %p4020_p2, %p4019_p1 }
  0xde   : > { %p4017_p13 = pneg %p4016_p11 }
  0xe0   : > { %p4022_p4 = pnand %p4021_p3, %p4017_p13 }
  0xe2   : > { %4025 = shalt.err (!%p4022_p4)
}
  0xe3   : > { %3350 = dma.hbm_to_vmem [thread:$0]  (!%p4434_p12), %s4549_s10, 16, %s920_s1, [#allocation18]  }
  0xe4   : > { %s4206_s8 = smov [#allocation20]   ;;  %s4041_s2 = sshra.s32 %s4563_s22, 4  ;;  %s4042_s2 = int_to_ptr.hbm [resolvable:$true] %s4041_s2 }
  0xe5   : > { %s930_s17 = sshll.u32 %s4206_s8, 4  ;;  %s4043_s7 = scalar_lea.hbm %s4042_s2, 16  ;;  %s931_s17 = int_to_ptr.vmem [resolvable:$true] %s930_s17 }
  0xe6   : > { %p4044_p7 = scmp.ne.s32.totalorder %s4042_s2, %s4043_s7  ;;  %s4048_s3 = scalar_lea.hbm %s4323_s13, 16 }
  0xe7   : > { %p4049_p13 = scmp.lt.s32.totalorder %s4042_s2, %s4323_s13  ;;  %p4050_p1 = scmp.lt.s32.totalorder %s4048_s3, %s4043_s7 }
  0xe8   : > { %p4046_p8 = pnand %p4044_p7, %p4445_p0 }
  0xe9   : > { %p4051_p2 = por %p4050_p1, %p4049_p13 }
  0xea   : > { %p4047_p11 = pneg %p4046_p8 }
  0xec   : > { %p4052_p3 = pnand %p4051_p2, %p4047_p11 }
  0xee   : > { %4055 = shalt.err (!%p4052_p3)
}
  0xef   : > { %s4983_s10 = smov 64   ;;  %1007 = sbr.rel (%p4424_p10) target bundleno = 3552 (0xde0), region = 140 }
  0xf0   : > { %3353 = dma.hbm_to_vmem [thread:$0]  (!%p4434_p12), %s4563_s22, 256, %s931_s17, [#allocation21], %s4983_s10, %s4983_s10, %s4201_s26  }
  0xf4   : > { %4116 = dma.done.wait (%p3358_p9), [#allocation3], 16  }
  0xf5   : > { %4118 = vsyncadd (%p3358_p9), [#allocation3], 4294967280 }
  0xf6   : > { %4120 = dma.done.wait (%p3358_p9), [#allocation6], 272  }
  0xf7   : > { %4122 = vsyncadd (%p3358_p9), [#allocation6], 4294967024 }
  0xf8   : > { %4124 = dma.done.wait (%p3358_p9), [#allocation9], 272  }
  0xf9   : > { %4126 = vsyncadd (%p3358_p9), [#allocation9], 4294967024 }
  0xfa   : > { %4128 = dma.done.wait (%p3358_p9), [#allocation12], 272  }
  0xfb   : > { %4130 = vsyncadd (%p3358_p9), [#allocation12], 4294967024 }
  0xfc   : > { %4132 = dma.done.wait (%p3358_p9), [#allocation15], 272  }
  0xfd   : > { %4134 = vsyncadd (%p3358_p9), [#allocation15], 4294967024 }
  0xfe   : > { %4136 = dma.done.wait (%p3358_p9), [#allocation18], 32  }
  0xff   : > { %4138 = vsyncadd (%p3358_p9), [#allocation18], 4294967264 }
 0x100   : > { %4140 = dma.done.wait (%p3358_p9), [#allocation21], 256  }
 0x101   : > { %4142 = vsyncadd (%p3358_p9), [#allocation21], 4294967040  ;;  %s4984_s18 = sld [smem:[#allocation31_spill]]  ;;  %s3090_s11 = sshll.u32 %s4396_s0, 1  ;;  %v3237_v0 = vld [vmem:[%s4243_s21 + $0x8] sm:$0xff]  ;;  %v3236_v2 = vld [vmem:[%s4243_s21] sm:$0xff] }
 0x102   : > { %p1157_p10 = scmp.lt.s32.totalorder %s3090_s11, 3  ;;  %s4985_s7 = sld [smem:[#allocation35_spill]]  ;;  %v3239_v1 = vld [vmem:[%s4253_s29 + $0x8] sm:$0xff]  ;;  %1240 = vmatpush.bf16.msra.mxu0 %v3237_v0  ;;  %v3238_v3 = vld [vmem:[%s4253_s29] sm:$0xff]  ;;  %vm1230_vm0 = vcmask 261120   ;;  %vm1406_vm1 = vcmask 64512  }
 0x103   : > { %1271 = vmatpush.bf16.msra.mxu1 %v3239_v1  ;;  %v3618_v8 = vld [vmem:[#allocation2] ss:$0 sm:$0xff]  ;;  %s4207_s22 = smov 120   ;;  %s4208_s1 = smov 104   ;;  %vm1517_vm2 = vcmask 130048   ;;  %vm1754_vm3 = vcmask 195584  }
 0x104   : > { %s5011_s11 = smov (!%p1157_p10, %s3090_s11), 3  ;;  %s4986_s23 = sld [smem:[#allocation37_spill]] }
 0x105   : > { %s3091_s28 = sshll.u32 %s5011_s11, 2  ;;  %s4209_s15 = smov 112  }
 0x106   : > { %1241 = vmatpush.bf16.msra.mxu0 %v3236_v2  ;;  %s4987_s8 = sld [smem:[#allocation33_spill]]  ;;  %p1168_p9 = scmp.lt.s32.totalorder %s4396_s0, 1 }
 0x107   : > { %s4618_s26 = scalar_lea.vmem %s4984_s18, %s3091_s28  ;;  %1272 = vmatpush.bf16.msra.mxu1 %v3238_v3  ;;  %s4210_s10 = smov 8  }
 0x108   : > { %v3233_v4 = vld [vmem:[%s4618_s26] sm:$0xff]  ;;  %s4647_s17 = scalar_select %p1168_p9, %s4396_s0, 1 }
 0x109   : > { %3110 = vmatmul.msk.bf16.vlgmr.msra.gmra.mxu0 %vm1230_vm0, %v3233_v4  ;;  %v3617_v7 = vld [vmem:[%s4985_s7] ss:$0 sm:$0xff]  ;;  %s4211_s18 = smov 16   ;;  %s4212_s11 = smov 24  }
 0x10a   : > { %3119 = vmatmul.msk.bf16.vlgmr.msra.gmra.mxu1 %vm1230_vm0, %v3233_v4  ;;  %v3241_v30 = vld [vmem:[%s4986_s23 + $0x8] sm:$0xff]  ;;  %v3240_v31 = vld [vmem:[%s4986_s23] sm:$0xff]  ;;  %s3231_s2 = sshll.u32 %s4647_s17, 3  ;;  %s4988_s28 = sld [smem:[#allocation32_spill]] }
 0x10b   : > { %1300 = vmatpush.bf16.msra.mxu2 %v3241_v30  ;;  %s3092_s7 = sshll.u32 %s4396_s0, 2  ;;  %s4995_s17 = sld [smem:[#allocation41_spill]] }
 0x10c   : > { %s1172_s3 = scalar_lea.vmem %s4987_s8, %s3231_s2  ;;  %p1163_p12 = scmp.lt.s32.totalorder %s3092_s7, 7 }
 0x10d   : > { %v3260_v30 = vld [vmem:[%s1172_s3] sm:$0xff]   ;;  %s4989_s3 = sld [smem:[#allocation43_spill]] }
 0x10e   : > { %s5013_s7 = smov (!%p1163_p12, %s3092_s7), 7  ;;  %s4998_s5 = sld [smem:[#allocation46_spill]] }
 0x10f   : > { %1301 = vmatpush.bf16.msra.mxu2 %v3240_v31  ;;  %v3261_v31 = vunpack.c.l.bf16 %v3260_v30 }
 0x112   : > { %3128 = vmatmul.msk.bf16.vlgmr.msra.gmra.mxu2 %vm1230_vm0, %v3233_v4 }
 0x186   : > { %v1243_v5 = vpop.f32.mrf.mxu0 }
 0x187   : > { %v1274_v6 = vpop.f32.mrf.mxu1  ;;  %v1244_v9 = vadd.f32 %v3617_v7, %v1243_v5 }
 0x188   : > { %v1275_v10 = vadd.f32 %v3618_v8, %v1274_v6 }
 0x189   : > { %v1248_v13 = vmul.f32 0.35355338, %v1244_v9 }
 0x18a   : > { %v1356_v16 = vpack.c.bf16 %v1275_v10, %v1275_v10 }
 0x18b   : > { %v1328_v24 = vpack.c.bf16 %v1248_v13, %v1248_v13 }
 0x18c   : > { %v1403_v21 = vunpack.c.l.b16 %v1356_v16 }
 0x18d   : > { %v1398_v27 = vunpack.c.l.b16 %v1328_v24 }
 0x18e   : > { %v1245_v11 = vpop.f32.mrf.mxu0 }
 0x18f   : > { %v1276_v12 = vpop.f32.mrf.mxu1  ;;  %v1246_v14 = vadd.f32 %v3617_v7, %v1245_v11 }
 0x190   : > { %v1277_v15 = vadd.f32 %v3618_v8, %v1276_v12 }
 0x191   : > { %v1249_v17 = vmul.f32 0.35355338, %v1246_v14 }
 0x192   : > { %v3477_v18 = vpack.i.bf16 %v1277_v15, %v1275_v10  ;;  %v1357_v19 = vpack.c.bf16 %v1277_v15, %v1277_v15 }
 0x193   : > { %v3487_v20 = vpack.i.bf16 %v1249_v17, %v1248_v13  ;;  %v1329_v25 = vpack.c.bf16 %v1249_v17, %v1249_v17 }
 0x194   : > { %3478 = vrot.lane.b32.xlu1 %v3477_v18, %s4207_s22  ;;  %3468 = vrot.lane.b32.xlu0 %v3477_v18, %s4208_s1  ;;  %v1404_v22 = vunpack.c.l.b16 %v1357_v19 }
 0x195   : > { %3488 = vrot.lane.b32.xlu2 %v3487_v20, %s4207_s22  ;;  %v1399_v28 = vunpack.c.l.b16 %v1329_v25  ;;  %v1303_v19 = vpop.f32.mrf.mxu2 }
 0x196   : > { %v1405_v23 = vpack.c.b16 %v1404_v22, %v1403_v21 }
 0x197   : > { %v1400_v29 = vpack.c.b16 %v1399_v28, %v1398_v27 }
 0x198   : > { %v1411_v26 = vsel %vm1406_vm1, %v1405_v23, 0 }
 0x199   : > { %1420 = vmatpush.bf16.xpose.msra.mxu3 %v1411_v26 }
 0x19c   : > { %3483 = vrot.lane.b32.xlu1 %v3477_v18, %s4209_s15  ;;  %3473 = vrot.lane.b32.xlu0 %v3487_v20, %s4208_s1 }
 0x19d   : > { %3493 = vrot.lane.b32.xlu2 %v3487_v20, %s4209_s15  ;;  %v3619_v20 = vld [vmem:[#allocation5] ss:$0 sm:$0xff]  ;;  %v1305_v22 = vpop.f32.mrf.mxu2 }
 0x19e   : > { %v1304_v21 = vadd.f32 %v3619_v20, %v1303_v19  ;;  %v1306_v23 = vadd.f32 %v3619_v20, %v1305_v22 }
 0x1a0   : > { %3129 = vmatmul.msk.bf16.vlgmr.msra.gmra.mxu3 %vm1406_vm1, %v1400_v29  ;;  %v1384_v24 = vpack.c.bf16 %v1304_v21, %v1304_v21  ;;  %v1385_v25 = vpack.c.bf16 %v1306_v23, %v1306_v23  ;;  %v4643_v26 = vpack.i.bf16 %v1306_v23, %v1304_v21 }
 0x1a2   : > { %v1621_v27 = vunpack.c.l.b16 %v1384_v24  ;;  %v1622_v28 = vunpack.c.l.b16 %v1385_v25 }
 0x1a4   : > { %v1623_v29 = vpack.c.b16 %v1622_v28, %v1621_v27 }
 0x1a6   : > { %1635 = vmatpush.bf16.msrb.mxu3 %v1623_v29 }
 0x1ef   : > { %v3489_v32 = vpop.permute.xlu2 %3488 }
 0x1f0   : > { %v3491_v43 = vunpack.i.h.bf16 %v3489_v32  ;;  %v3490_v44 = vunpack.i.l.bf16 %v3489_v32  ;;  %v1394_v32 = vmul.f32 -1e+09, %v3261_v31 }
 0x1f2   : > { %v1331_v52 = vpack.c.bf16 %v3491_v43, %v3491_v43  ;;  %v1330_v53 = vpack.c.bf16 %v3490_v44, %v3490_v44 }
 0x1f4   : > { %v1430_v4 = vunpack.c.l.b16 %v1331_v52  ;;  %v1429_v5 = vunpack.c.l.b16 %v1330_v53 }
 0x1f6   : > { %v1431_v14 = vpack.c.b16 %v1430_v4, %v1429_v5 }
 0x1f7   : > { %v3494_v49 = vpop.permute.xlu2 %3493 }
 0x1f8   : > { %v3496_v60 = vunpack.i.h.bf16 %v3494_v49  ;;  %v3495_v61 = vunpack.i.l.bf16 %v3494_v49 }
 0x1fa   : > { %v1333_v10 = vpack.c.bf16 %v3496_v60, %v3496_v60  ;;  %v1332_v11 = vpack.c.bf16 %v3495_v61, %v3495_v61 }
 0x1fc   : > { %v1460_v16 = vunpack.c.l.b16 %v1333_v10  ;;  %v1459_v17 = vunpack.c.l.b16 %v1332_v11 }
 0x1fe   : > { %v1461_v18 = vpack.c.b16 %v1460_v16, %v1459_v17 }
 0x206   : > { %v3479_v33 = vpop.permute.xlu1 %3478  ;;  %v3469_v34 = vpop.permute.xlu0 %3468 }
 0x207   : > { %v3481_v35 = vunpack.i.h.bf16 %v3479_v33  ;;  %v3480_v36 = vunpack.i.l.bf16 %v3479_v33  ;;  %v3471_v37 = vunpack.i.h.bf16 %v3469_v34  ;;  %v3470_v38 = vunpack.i.l.bf16 %v3469_v34 }
 0x209   : > { %v1359_v39 = vpack.c.bf16 %v3481_v35, %v3481_v35  ;;  %v1358_v40 = vpack.c.bf16 %v3480_v36, %v3480_v36  ;;  %v1363_v41 = vpack.c.bf16 %v3471_v37, %v3471_v37  ;;  %v1362_v42 = vpack.c.bf16 %v3470_v38, %v3470_v38 }
 0x20a   : > { %v3262_v35 = vunpack.c.h.bf16 %v3260_v30 }
 0x20b   : > { %v1435_v45 = vunpack.c.l.b16 %v1359_v39  ;;  %v1434_v46 = vunpack.c.l.b16 %v1358_v40  ;;  %v1495_v47 = vunpack.c.l.b16 %v1363_v41  ;;  %v1494_v48 = vunpack.c.l.b16 %v1362_v42 }
 0x20c   : > { %v1395_v37 = vmul.f32 -1e+09, %v3262_v35 }
 0x20d   : > { %v1436_v50 = vpack.c.b16 %v1435_v45, %v1434_v46  ;;  %v1496_v51 = vpack.c.b16 %v1495_v47, %v1494_v48 }
 0x20e   : > { %v3484_v54 = vpop.permute.xlu1 %3483  ;;  %v3474_v55 = vpop.permute.xlu0 %3473 }
 0x20f   : > { %v3486_v56 = vunpack.i.h.bf16 %v3484_v54  ;;  %v3485_v57 = vunpack.i.l.bf16 %v3484_v54  ;;  %v3476_v58 = vunpack.i.h.bf16 %v3474_v55  ;;  %v3475_v59 = vunpack.i.l.bf16 %v3474_v55 }
 0x210   : > { %v1441_v62 = vsel %vm1406_vm1, %v1436_v50, 0  ;;  %v1501_v63 = vsel %vm1406_vm1, %v1496_v51, 0 }
 0x211   : > { %v1361_v0 = vpack.c.bf16 %v3486_v56, %v3486_v56  ;;  %v1360_v1 = vpack.c.bf16 %v3485_v57, %v3485_v57  ;;  %v1335_v2 = vpack.c.bf16 %v3476_v58, %v3476_v58  ;;  %v1334_v3 = vpack.c.bf16 %v3475_v59, %v3475_v59  ;;  %1450 = vmatpush.bf16.xpose.msrb.mxu0 %v1441_v62 }
 0x212   : > { %1510 = vmatpush.bf16.xpose.msrb.mxu2 %v1501_v63 }
 0x213   : > { %v1465_v6 = vunpack.c.l.b16 %v1361_v0  ;;  %v1464_v7 = vunpack.c.l.b16 %v1360_v1  ;;  %v1490_v8 = vunpack.c.l.b16 %v1335_v2  ;;  %v1489_v9 = vunpack.c.l.b16 %v1334_v3 }
 0x215   : > { %v1491_v12 = vpack.c.b16 %v1490_v8, %v1489_v9  ;;  %v1466_v13 = vpack.c.b16 %v1465_v6, %v1464_v7 }
 0x217   : > { %v1471_v15 = vsel %vm1406_vm1, %v1466_v13, 0 }
 0x218   : > { %3130 = vmatmul.msk.bf16.vlgmr.msrb.gmra.mxu0 %vm1406_vm1, %v1431_v14  ;;  %1480 = vmatpush.bf16.xpose.msrb.mxu1 %v1471_v15 }
 0x219   : > { %3132 = vmatmul.msk.bf16.vlgmr.msrb.gmra.mxu2 %vm1406_vm1, %v1491_v12 }
 0x21f   : > { %3131 = vmatmul.msk.bf16.vlgmr.msrb.gmra.mxu1 %vm1406_vm1, %v1461_v18 }
 0x223   : > { %v1422_v42 = vpop.f32.mrf.mxu3 }
 0x224   : > { %v4656_v47 = vadd.f32 %v1422_v42, %v1394_v32 }
 0x226   : > { %v1518_v54 = vsel %vm1517_vm2, %v4656_v47, -inf }
 0x22b   : > { %v1424_v52 = vpop.f32.mrf.mxu3 }
 0x22c   : > { %v1425_v55 = vadd.f32 %v1424_v52, %v1395_v37 }
 0x22e   : > { %v1521_v58 = vsel %vm1517_vm2, %v1425_v55, -inf }
 0x295   : > { %v1452_v33 = vpop.f32.mrf.mxu0 }
 0x296   : > { %v1453_v34 = vadd.f32 %v1452_v33, %v1394_v32 }
 0x298   : > { %v1524_v36 = vsel %vm1517_vm2, %v1453_v34, -inf }
 0x299   : > { %1525 = vmax.xlane.f32.xlu2 %v1524_v36 }
 0x29c   : > { %v1512_v38 = vpop.f32.mrf.mxu2  ;;  %v1482_v39 = vpop.f32.mrf.mxu1 }
 0x29d   : > { %v1454_v40 = vpop.f32.mrf.mxu0  ;;  %v1483_v41 = vadd.f32 %v1482_v39, %v1394_v32  ;;  %v1513_v46 = vadd.f32 %v1512_v38, %v1394_v32 }
 0x29e   : > { %v1455_v43 = vadd.f32 %v1454_v40, %v1395_v37 }
 0x29f   : > { %v1530_v44 = vsel %vm1517_vm2, %v1483_v41, -inf  ;;  %v1536_v51 = vsel %vm1517_vm2, %v1513_v46, -inf }
 0x2a0   : > { %v1527_v45 = vsel %vm1517_vm2, %v1455_v43, -inf  ;;  %1531 = vmax.xlane.f32.xlu0 %v1530_v44 }
 0x2a1   : > { %1528 = vmax.xlane.f32.xlu2 %v1527_v45 }
 0x2a4   : > { %v1514_v48 = vpop.f32.mrf.mxu2  ;;  %v1484_v53 = vpop.f32.mrf.mxu1 }
 0x2a5   : > { %v1515_v49 = vadd.f32 %v1514_v48, %v1395_v37  ;;  %v1485_v56 = vadd.f32 %v1484_v53, %v1395_v37 }
 0x2a7   : > { %v1539_v50 = vsel %vm1517_vm2, %v1515_v49, -inf  ;;  %v1533_v57 = vsel %vm1517_vm2, %v1485_v56, -inf }
 0x2a8   : > { %1540 = vmax.xlane.f32.xlu1 %v1539_v50  ;;  %1537 = vmax.xlane.f32.xlu0 %v1536_v51 }
 0x2a9   : > { %1519 = vmax.xlane.f32.xlu2 %v1518_v54 }
 0x2b0   : > { %1534 = vmax.xlane.f32.xlu1 %v1533_v57  ;;  %1522 = vmax.xlane.f32.xlu0 %v1521_v58 }
 0x30c   : > { %v1526_v59 = vpop.xlane.xlu2 %1525 }
 0x30d   : > { %v1544_v60 = vsub.f32 %v1453_v34, %v1526_v59 }
 0x30f   : > { %v1554_v61 = vmul.f32 1.442695, %v1544_v60 }
 0x311   : > { %3633 = vpow2.f32 %v1554_v61 }
 0x313   : > { %v1532_v62 = vpop.xlane.xlu0 %1531 }
 0x314   : > { %v1546_v63 = vsub.f32 %v1483_v41, %v1532_v62  ;;  %v1529_v5 = vpop.xlane.xlu2 %1528 }
 0x315   : > { %v1545_v11 = vsub.f32 %v1455_v43, %v1529_v5 }
 0x316   : > { %v1558_v0 = vmul.f32 1.442695, %v1546_v63 }
 0x317   : > { %v4664_v1 = vpop.eup %3633  ;;  %v1556_v13 = vmul.f32 1.442695, %v1545_v11 }
 0x318   : > { %3635 = vpow2.f32 %v1558_v0  ;;  %v1572_v2 = vsel %vm1517_vm2, %v4664_v1, 0.0 }
 0x319   : > { %1573 = vadd.xlane.f32.xlu0 %v1572_v2 }
 0x31b   : > { %v1541_v3 = vpop.xlane.xlu1 %1540  ;;  %v1538_v4 = vpop.xlane.xlu0 %1537 }
 0x31c   : > { %v1549_v6 = vsub.f32 %v1515_v49, %v1541_v3  ;;  %v1548_v7 = vsub.f32 %v1513_v46, %v1538_v4  ;;  %v1520_v28 = vpop.xlane.xlu2 %1519 }
 0x31d   : > { %v1542_v30 = vsub.f32 %v4656_v47, %v1520_v28 }
 0x31e   : > { %v4668_v8 = vpop.eup %3635  ;;  %v1564_v9 = vmul.f32 1.442695, %v1549_v6  ;;  %v1562_v10 = vmul.f32 1.442695, %v1548_v7 }
 0x31f   : > { %v1578_v12 = vsel %vm1517_vm2, %v4668_v8, 0.0  ;;  %v1550_v31 = vmul.f32 1.442695, %v1542_v30 }
 0x320   : > { %3637 = vpow2.f32 %v1564_v9  ;;  %1579 = vadd.xlane.f32.xlu2 %v1578_v12 }
 0x321   : > { %3639 = vpow2.f32 %v1562_v10 }
 0x322   : > { %3641 = vpow2.f32 %v1556_v13 }
 0x323   : > { %v1535_v14 = vpop.xlane.xlu1 %1534  ;;  %v1523_v25 = vpop.xlane.xlu0 %1522 }
 0x324   : > { %v1547_v15 = vsub.f32 %v1485_v56, %v1535_v14  ;;  %v1543_v27 = vsub.f32 %v1425_v55, %v1523_v25 }
 0x326   : > { %v4672_v16 = vpop.eup %3637  ;;  %v1560_v17 = vmul.f32 1.442695, %v1547_v15  ;;  %v1552_v29 = vmul.f32 1.442695, %v1543_v27 }
 0x327   : > { %v4674_v18 = vpop.eup %3639  ;;  %v1587_v19 = vsel %vm1517_vm2, %v4672_v16, 0.0 }
 0x328   : > { %3643 = vpow2.f32 %v1560_v17  ;;  %v1584_v20 = vsel %vm1517_vm2, %v4674_v18, 0.0  ;;  %1588 = vadd.xlane.f32.xlu2 %v1587_v19  ;;  %v3642_v21 = vpop.eup %3641 }
 0x329   : > { %1585 = vadd.xlane.f32.xlu1 %v1584_v20  ;;  %v1575_v24 = vsel %vm1517_vm2, %v3642_v21, 0.0  ;;  %3645 = vpow2.f32 %v1552_v29 }
 0x32a   : > { %3647 = vpow2.f32 %v1550_v31 }
 0x32e   : > { %v3644_v22 = vpop.eup %3643 }
 0x32f   : > { %v1581_v23 = vsel %vm1517_vm2, %v3644_v22, 0.0  ;;  %v4689_v32 = vpop.eup %3645 }
 0x330   : > { %1582 = vadd.xlane.f32.xlu0 %v1581_v23  ;;  %v1569_v33 = vsel %vm1517_vm2, %v4689_v32, 0.0  ;;  %v4693_v34 = vpop.eup %3647 }
 0x331   : > { %1576 = vadd.xlane.f32.xlu1 %v1575_v24 }
 0x340   : > { %3503 = vrot.lane.b32.xlu2 %v4643_v26, %s4207_s22 }
 0x344   : > { %3508 = vrot.lane.b32.xlu0 %v4643_v26, %s4209_s15 }
 0x34a   : > { %3498 = vrot.lane.b32.xlu1 %v4643_v26, %s4208_s1  ;;  %v1566_v26 = vsel %vm1517_vm2, %v4693_v34, 0.0 }
 0x36e   : > { %1570 = vadd.xlane.f32.xlu0 %v1569_v33 }
 0x374   : > { %1567 = vadd.xlane.f32.xlu1 %v1566_v26 }
 0x38c   : > { %v1574_v37 = vpop.xlane.xlu0 %1573 }
 0x38d   : > { %3649 = vrcp.f32 %v1574_v37 }
 0x393   : > { %v1580_v35 = vpop.xlane.xlu2 %1579  ;;  %v3650_v43 = vpop.eup %3649 }
 0x394   : > { %v1600_v46 = vmul.f32 %v3650_v43, %v4664_v1 }
 0x396   : > { %v1608_v52 = vpack.c.bf16 %v1600_v46, %v1600_v46 }
 0x398   : > { %v1644_v55 = vunpack.c.l.b16 %v1608_v52 }
 0x39b   : > { %v1589_v36 = vpop.xlane.xlu2 %1588 }
 0x39c   : > { %v1586_v38 = vpop.xlane.xlu1 %1585 }
 0x3a3   : > { %v3504_v39 = vpop.permute.xlu2 %3503  ;;  %v1583_v47 = vpop.xlane.xlu0 %1582 }
 0x3a4   : > { %v1577_v40 = vpop.xlane.xlu1 %1576  ;;  %v3506_v41 = vunpack.i.h.bf16 %v3504_v39  ;;  %v3505_v42 = vunpack.i.l.bf16 %v3504_v39 }
 0x3a5   : > { %3651 = vrcp.f32 %v1577_v40 }
 0x3a6   : > { %v1387_v44 = vpack.c.bf16 %v3506_v41, %v3506_v41  ;;  %v1386_v45 = vpack.c.bf16 %v3505_v42, %v3505_v42  ;;  %3653 = vrcp.f32 %v1583_v47 }
 0x3a7   : > { %3655 = vrcp.f32 %v1580_v35 }
 0x3a8   : > { %v1650_v48 = vunpack.c.l.b16 %v1387_v44  ;;  %v1649_v49 = vunpack.c.l.b16 %v1386_v45  ;;  %3657 = vrcp.f32 %v1589_v36 }
 0x3a9   : > { %3659 = vrcp.f32 %v1586_v38 }
 0x3aa   : > { %v1651_v50 = vpack.c.b16 %v1650_v48, %v1649_v49  ;;  %v3243_v48 = vld [vmem:[#allocation7 + $0x8] sm:$0xff]  ;;  %v3242_v49 = vld [vmem:[#allocation7] sm:$0xff] }
 0x3ab   : > { %v3652_v51 = vpop.eup %3651  ;;  %1782 = vmatpush.bf16.msra.mxu3 %v3243_v48 }
 0x3ac   : > { %v1601_v53 = vmul.f32 %v3652_v51, %v3642_v21  ;;  %1663 = vmatpush.bf16.msra.mxu0 %v1651_v50  ;;  %v3654_v57 = vpop.eup %3653 }
 0x3ad   : > { %v3656_v59 = vpop.eup %3655  ;;  %v1603_v60 = vmul.f32 %v3654_v57, %v3644_v22 }
 0x3ae   : > { %v1609_v54 = vpack.c.bf16 %v1601_v53, %v1601_v53  ;;  %v3658_v61 = vpop.eup %3657  ;;  %v1602_v62 = vmul.f32 %v3656_v59, %v4668_v8 }
 0x3af   : > { %v3660_v0 = vpop.eup %3659  ;;  %v1611_v3 = vpack.c.bf16 %v1603_v60, %v1603_v60  ;;  %v1605_v9 = vmul.f32 %v3658_v61, %v4672_v16  ;;  %1783 = vmatpush.bf16.msra.mxu3 %v3242_v49 }
 0x3b0   : > { %v1645_v56 = vunpack.c.l.b16 %v1609_v54  ;;  %v1610_v6 = vpack.c.bf16 %v1602_v62, %v1602_v62  ;;  %v1604_v7 = vmul.f32 %v3660_v0, %v4674_v18 }
 0x3b1   : > { %v1673_v12 = vunpack.c.l.b16 %v1611_v3  ;;  %v1613_v20 = vpack.c.bf16 %v1605_v9, %v1605_v9 }
 0x3b2   : > { %v1646_v58 = vpack.c.b16 %v1645_v56, %v1644_v55  ;;  %v1672_v8 = vunpack.c.l.b16 %v1610_v6  ;;  %v1612_v19 = vpack.c.bf16 %v1604_v7, %v1604_v7 }
 0x3b3   : > { %v1701_v18 = vunpack.c.l.b16 %v1613_v20 }
 0x3b4   : > { %3134 = vmatmul.msk.bf16.vlgmr.msra.gmra.mxu0 %vm1517_vm2, %v1646_v58  ;;  %v1674_v23 = vpack.c.b16 %v1673_v12, %v1672_v8  ;;  %v1700_v27 = vunpack.c.l.b16 %v1612_v19  ;;  %v4213_v8 = vmov 32.0  }
 0x3b6   : > { %v3509_v63 = vpop.permute.xlu0 %3508  ;;  %v1702_v28 = vpack.c.b16 %v1701_v18, %v1700_v27 }
 0x3b7   : > { %v3511_v1 = vunpack.i.h.bf16 %v3509_v63  ;;  %v3510_v2 = vunpack.i.l.bf16 %v3509_v63 }
 0x3b9   : > { %v1389_v4 = vpack.c.bf16 %v3511_v1, %v3511_v1  ;;  %v1388_v5 = vpack.c.bf16 %v3510_v2, %v3510_v2 }
 0x3bb   : > { %v1678_v10 = vunpack.c.l.b16 %v1389_v4  ;;  %v1677_v11 = vunpack.c.l.b16 %v1388_v5  ;;  %v1180_v4 = vld [vmem:[%s4618_s26] sm:$0xff]   ;;  %v3620_v5 = vld [vmem:[#allocation8] ss:$0 sm:$0xff]  ;;  %s3093_s26 = sshll.u32 %s5013_s7, 2  ;;  %s4991_s7 = sld [smem:[#allocation34_spill]] }
 0x3bc   : > { %v3499_v13 = vpop.permute.xlu1 %3498  ;;  %v1186_v6 = vunpack.c.l.bf16 %v1180_v4  ;;  %v1187_v12 = vunpack.c.h.bf16 %v1180_v4  ;;  %s1166_s8 = scalar_lea.vmem %s4988_s28, %s3093_s26  ;;  %s4990_s28 = sld [smem:[#allocation44_spill]] }
 0x3bd   : > { %v1679_v14 = vpack.c.b16 %v1678_v10, %v1677_v11  ;;  %v3501_v15 = vunpack.i.h.bf16 %v3499_v13  ;;  %v3500_v17 = vunpack.i.l.bf16 %v3499_v13 }
 0x3bf   : > { %v1391_v21 = vpack.c.bf16 %v3501_v15, %v3501_v15  ;;  %v1390_v22 = vpack.c.bf16 %v3500_v17, %v3500_v17  ;;  %1691 = vmatpush.bf16.msra.mxu1 %v1679_v14 }
 0x3c1   : > { %v1706_v24 = vunpack.c.l.b16 %v1391_v21  ;;  %v1705_v25 = vunpack.c.l.b16 %v1390_v22  ;;  %v3247_v21 = vld [vmem:[#allocation13 + $0x8] sm:$0xff]  ;;  %s1177_s26 = scalar_lea.vmem %s4991_s7, %s3231_s2  ;;  %s4996_s2 = sld [smem:[#allocation40_spill]] }
 0x3c2   : > { %3135 = vmatmul.msk.bf16.vlgmr.msra.gmra.mxu1 %vm1517_vm2, %v1674_v23  ;;  %v3246_v23 = vld [vmem:[#allocation13] sm:$0xff]  ;;  %s3258_s7 = sshll.u32 %s4396_s0, 4 }
 0x3c3   : > { %v1707_v16 = vpack.c.b16 %v1706_v24, %v1705_v25  ;;  %1949 = vmatpush.bf16.msrb.mxu1 %v3247_v21  ;;  %v3234_v24 = vld [vmem:[%s1166_s8] sm:$0xff] }
 0x3c5   : > { %1719 = vmatpush.bf16.msra.mxu2 %v1707_v16 }
 0x3c7   : > { %1950 = vmatpush.bf16.msrb.mxu1 %v3246_v23 }
 0x3c8   : > { %3136 = vmatmul.msk.bf16.vlgmr.msra.gmra.mxu2 %vm1517_vm2, %v1702_v28 }
 0x3d2   : > { %3171 = vmatmul.msk.bf16.vlgmr.msrb.gmra.mxu1 %vm1230_vm0, %v3234_v24 }
 0x3e1   : > { %v1571_v29 = vpop.xlane.xlu0 %1570 }
 0x3e2   : > { %3661 = vrcp.f32 %v1571_v29 }
 0x3e7   : > { %v1568_v30 = vpop.xlane.xlu1 %1567 }
 0x3e8   : > { %v3662_v31 = vpop.eup %3661  ;;  %3663 = vrcp.f32 %v1568_v30 }
 0x3e9   : > { %v1599_v33 = vmul.f32 %v3662_v31, %v4689_v32  ;;  %3665 = vrcp.f32 %v4213_v8  ;;  %v4726_v31 = vld [vmem:[%s1166_s8 + $0x8] sm:$0xff]  ;;  %s1153_s8 = sand.u32 1, %s4153_s16  }
 0x3ea   : > { %3172 = vmatmul.msk.bf16.gmra.mxu1 %vm1230_vm0, %v4726_v31  ;;  %s2801_s0 = scalar_lea.sflag [#allocation4], %s1153_s8 }
 0x3eb   : > { %v1607_v35 = vpack.c.bf16 %v1599_v33, %v1599_v33 }
 0x3ed   : > { %v1617_v38 = vunpack.c.l.b16 %v1607_v35 }
 0x3ee   : > { %v3664_v26 = vpop.eup %3663 }
 0x3ef   : > { %v1598_v36 = vmul.f32 %v3664_v26, %v4693_v34  ;;  %v3666_v19 = vpop.eup %3665 }
 0x3f0   : > { %v1801_v20 = vmul.f32 32.0, %v3666_v19  ;;  %vm1805_vm4 = vweird.f32 %v3666_v19 }
 0x3f1   : > { %v1606_v37 = vpack.c.bf16 %v1598_v36, %v1598_v36 }
 0x3f2   : > { %v1802_v22 = vsub.f32 1.0, %v1801_v20 }
 0x3f3   : > { %v1616_v39 = vunpack.c.l.b16 %v1606_v37 }
 0x3f4   : > { %v1803_v25 = vmul.f32 %v3666_v19, %v1802_v22 }
 0x3f5   : > { %v1618_v40 = vpack.c.b16 %v1617_v38, %v1616_v39  ;;  %v3245_v39 = vld [vmem:[#allocation10 + $0x8] sm:$0xff] }
 0x3f6   : > { %v1804_v27 = vadd.f32 %v3666_v19, %v1803_v25  ;;  %1902 = vmatpush.bf16.msrb.mxu0 %v3245_v39 }
 0x3f7   : > { %3133 = vmatmul.msk.bf16.vlgmr.msrb.gmra.mxu3 %vm1517_vm2, %v1618_v40 }
 0x3f8   : > { %v4723_v18 = vsel %vm1805_vm4, %v3666_v19, %v1804_v27 }
 0x431   : > { %v1665_v41 = vpop.f32.mrf.mxu0 }
 0x439   : > { %v1667_v42 = vpop.f32.mrf.mxu0 }
 0x43a   : > { %v3512_v43 = vpack.i.bf16 %v1667_v42, %v1665_v41 }
 0x43c   : > { %3513 = vrot.lane.b32.xlu2 %v3512_v43, %s4210_s10  ;;  %v3244_v43 = vld [vmem:[#allocation10] sm:$0xff] }
 0x43d   : > { %1903 = vmatpush.bf16.msrb.mxu0 %v3244_v43 }
 0x43f   : > { %v1693_v44 = vpop.f32.mrf.mxu1 }
 0x447   : > { %v1695_v45 = vpop.f32.mrf.mxu1 }
 0x448   : > { %v3517_v46 = vpack.i.bf16 %v1695_v45, %v1693_v44  ;;  %v3249_v45 = vld [vmem:[#allocation16 + $0x8] sm:$0xff] }
 0x449   : > { %1983 = vmatpush.bf16.msrb.mxu2 %v3249_v45 }
 0x44a   : > { %3518 = vrot.lane.b32.xlu2 %v3517_v46, %s4211_s18 }
 0x44b   : > { %v1721_v32 = vpop.f32.mrf.mxu2 }
 0x44f   : > { %v1952_v44 = vpop.f32.mrf.mxu1 }
 0x453   : > { %v1723_v34 = vpop.f32.mrf.mxu2 }
 0x454   : > { %v3522_v47 = vpack.i.bf16 %v1723_v34, %v1721_v32  ;;  %v3248_v34 = vld [vmem:[#allocation16] sm:$0xff] }
 0x455   : > { %1984 = vmatpush.bf16.msrb.mxu2 %v3248_v34 }
 0x456   : > { %3523 = vrot.lane.b32.xlu2 %v3522_v47, %s4212_s11 }
 0x458   : > { %3181 = vmatmul.msk.bf16.vlgmr.msrb.gmra.mxu2 %vm1230_vm0, %v3234_v24 }
 0x468   : > { %3182 = vmatmul.msk.bf16.gmra.mxu2 %vm1230_vm0, %v4726_v31 }
 0x47a   : > { %v1637_v51 = vpop.f32.mrf.mxu3 }
 0x482   : > { %v1639_v57 = vpop.f32.mrf.mxu3 }
 0x496   : > { %v3514_v50 = vpop.permute.xlu2 %3513 }
 0x497   : > { %v3516_v53 = vunpack.i.h.bf16 %v3514_v50  ;;  %v3515_v54 = vunpack.i.l.bf16 %v3514_v50 }
 0x499   : > { %v1751_v59 = vsel %vm1406_vm1, %v1639_v57, %v3516_v53  ;;  %v1750_v60 = vsel %vm1406_vm1, %v1637_v51, %v3515_v54  ;;  %v3623_v51 = vld [vmem:[#allocation14] ss:$0 sm:$0xff] }
 0x49a   : > { %v1953_v54 = vadd.f32 %v3623_v51, %v1952_v44 }
 0x4a4   : > { %v3519_v52 = vpop.permute.xlu2 %3518 }
 0x4a5   : > { %v3521_v55 = vunpack.i.h.bf16 %v3519_v52  ;;  %v3520_v56 = vunpack.i.l.bf16 %v3519_v52  ;;  %v1954_v52 = vpop.f32.mrf.mxu1 }
 0x4a7   : > { %v1752_v63 = vsel %vm1517_vm2, %v1750_v60, %v3520_v56  ;;  %v1753_v0 = vsel %vm1517_vm2, %v1751_v59, %v3521_v55  ;;  %v1955_v55 = vadd.f32 %v3623_v51, %v1954_v52  ;;  %v3624_v52 = vld [vmem:[#allocation11] ss:$0 sm:$0xff] }
 0x4a9   : > { %v3537_v60 = vpack.i.bf16 %v1955_v55, %v1953_v54 }
 0x4b0   : > { %v3524_v58 = vpop.permute.xlu2 %3523 }
 0x4b1   : > { %v3526_v61 = vunpack.i.h.bf16 %v3524_v58  ;;  %v3525_v62 = vunpack.i.l.bf16 %v3524_v58 }
 0x4b3   : > { %v1755_v1 = vsel %vm1754_vm3, %v1752_v63, %v3525_v62  ;;  %v1756_v2 = vsel %vm1754_vm3, %v1753_v0, %v3526_v61  ;;  %v1957_v62 = vpop.f32.mrf.mxu1 }
 0x4b4   : > { %v1757_v3 = vpack.c.bf16 %v1756_v2, %v1755_v1  ;;  %v3621_v2 = vld [vmem:[%s4989_s3] ss:$0 sm:$0xff]  ;;  %s5000_s3 = sld [smem:[#allocation48_spill]] }
 0x4b6   : > { %3145 = vmatmul.msk.bf16.vlgmr.msra.gmra.mxu3 %vm1230_vm0, %v1757_v3 }
 0x539   : > { %v1785_v7 = vpop.f32.mrf.mxu3 }
 0x53a   : > { %v1786_v9 = vadd.f32 %v3620_v5, %v1785_v7 }
 0x53c   : > { %v1790_v10 = vadd.f32 %v1786_v9, %v1186_v6  ;;  %v3622_v9 = vld [vmem:[%s4990_s28] ss:$0 sm:$0xff]  ;;  %s3089_s28 = sshll.u32 %s1153_s8, 4 }
 0x53e   : > { %v1794_v11 = vsel %vm1230_vm0, %v1790_v10, 0.0 }
 0x53f   : > { %1795 = vadd.xlane.f32.xlu2 %v1794_v11 }
 0x541   : > { %v1787_v13 = vpop.f32.mrf.mxu3 }
 0x542   : > { %v1788_v14 = vadd.f32 %v3620_v5, %v1787_v13  ;;  %v1958_v5 = vadd.f32 %v3623_v51, %v1957_v62 }
 0x544   : > { %v1791_v15 = vadd.f32 %v1788_v14, %v1187_v12  ;;  %v2066_v7 = vpack.c.bf16 %v1958_v5, %v1958_v5  ;;  %v1959_v12 = vpop.f32.mrf.mxu1 }
 0x545   : > { %v1960_v13 = vadd.f32 %v3623_v51, %v1959_v12 }
 0x546   : > { %v1797_v17 = vsel %vm1230_vm0, %v1791_v15, 0.0  ;;  %v2151_v20 = vunpack.c.l.b16 %v2066_v7 }
 0x547   : > { %1798 = vadd.xlane.f32.xlu1 %v1797_v17  ;;  %v2065_v17 = vpack.c.bf16 %v1955_v55, %v1955_v55  ;;  %v3527_v8 = vpack.i.bf16 %v1960_v13, %v1958_v5  ;;  %v2067_v19 = vpack.c.bf16 %v1960_v13, %v1960_v13 }
 0x549   : > { %v2152_v23 = vunpack.c.l.b16 %v2067_v19 }
 0x54b   : > { %v2154_v25 = vpack.c.b16 %v2152_v23, %v2151_v20 }
 0x557   : > { %3538 = vrot.lane.b32.xlu2 %v3537_v60, %s4207_s22 }
 0x5b2   : > { %v1796_v16 = vpop.xlane.xlu2 %1795 }
 0x5b3   : > { %v1807_v28 = vmul.f32 %v4723_v18, %v1796_v16  ;;  %v2150_v16 = vunpack.c.l.b16 %v2065_v17  ;;  %v1986_v17 = vpop.f32.mrf.mxu2 }
 0x5b5   : > { %v1809_v29 = vsub.f32 %v1790_v10, %v1807_v28  ;;  %v2162_v28 = vsel %vm1406_vm1, %v2154_v25, 0 }
 0x5b6   : > { %2170 = vmatpush.bf16.xpose.msrb.mxu3 %v2162_v28 }
 0x5b7   : > { %v1811_v30 = vmul.f32 %v1809_v29, %v1809_v29 }
 0x5b9   : > { %v1813_v33 = vsel %vm1230_vm0, %v1811_v30, 0.0 }
 0x5ba   : > { %v1799_v26 = vpop.xlane.xlu1 %1798  ;;  %1814 = vadd.xlane.f32.xlu0 %v1813_v33  ;;  %v3539_v33 = vpop.permute.xlu2 %3538 }
 0x5bb   : > { %v1808_v35 = vmul.f32 %v4723_v18, %v1799_v26 }
 0x5bd   : > { %v1810_v36 = vsub.f32 %v1791_v15, %v1808_v35  ;;  %v2064_v15 = vpack.c.bf16 %v1953_v54, %v1953_v54 }
 0x5bf   : > { %v1812_v37 = vmul.f32 %v1810_v36, %v1810_v36  ;;  %v2149_v27 = vunpack.c.l.b16 %v2064_v15 }
 0x5c1   : > { %v1816_v38 = vsel %vm1230_vm0, %v1812_v37, 0.0  ;;  %v3540_v37 = vunpack.i.l.bf16 %v3539_v33 }
 0x5c2   : > { %1817 = vadd.xlane.f32.xlu1 %v1816_v38 }
 0x5c3   : > { %v2068_v44 = vpack.c.bf16 %v3540_v37, %v3540_v37 }
 0x5c5   : > { %v2187_v51 = vunpack.c.l.b16 %v2068_v44 }
 0x5ce   : > { %3528 = vrot.lane.b32.xlu0 %v3527_v8, %s4207_s22 }
 0x5d6   : > { %3543 = vrot.lane.b32.xlu0 %v3537_v60, %s4209_s15 }
 0x5db   : > { %3533 = vrot.lane.b32.xlu1 %v3527_v8, %s4209_s15 }
 0x5e3   : > { %3548 = vrot.lane.b32.xlu1 %v3527_v8, %s4208_s1 }
 0x5eb   : > { %3563 = vrot.lane.b32.xlu1 %v3537_v60, %s4208_s1 }
 0x62d   : > { %v1815_v40 = vpop.xlane.xlu0 %1814 }
 0x62e   : > { %v1819_v41 = vmul.f32 %v1815_v40, %v4723_v18 }
 0x630   : > { %v1821_v42 = vadd.f32 1e-06, %v1819_v41 }
 0x632   : > { %3667 = vrsqrt.f32 %v1821_v42  ;;  %vm1829_vm6 = vweird.f32 %v1821_v42 }
 0x635   : > { %v1818_v46 = vpop.xlane.xlu1 %1817 }
 0x636   : > { %v1820_v32 = vmul.f32 %v1818_v46, %v4723_v18 }
 0x638   : > { %v3668_v47 = vpop.eup %3667  ;;  %v1822_v48 = vadd.f32 1e-06, %v1820_v32 }
 0x639   : > { %v1824_v49 = vmul.f32 %v3668_v47, %v1821_v42  ;;  %vm1830_vm5 = vweird.f32 %v3668_v47 }
 0x63a   : > { %3669 = vrsqrt.f32 %v1822_v48  ;;  %vm1831_vm7 = vmor %vm1829_vm6, %vm1830_vm5  ;;  %vm1839_vm9 = vweird.f32 %v1822_v48 }
 0x63b   : > { %v1825_v50 = vmul.f32 %v3668_v47, %v1824_v49 }
 0x63d   : > { %v1826_v53 = vmul.f32 0.5, %v1825_v50 }
 0x63f   : > { %v1827_v56 = vsub.f32 1.5, %v1826_v53 }
 0x640   : > { %v3670_v57 = vpop.eup %3669  ;;  %v3529_v31 = vpop.permute.xlu0 %3528 }
 0x641   : > { %v1828_v58 = vmul.f32 %v3668_v47, %v1827_v56  ;;  %v1834_v59 = vmul.f32 %v3670_v57, %v1822_v48  ;;  %vm1840_vm8 = vweird.f32 %v3670_v57  ;;  %v3531_v26 = vunpack.i.h.bf16 %v3529_v31 }
 0x642   : > { %vm1841_vm10 = vmor %vm1839_vm9, %vm1840_vm8  ;;  %v3530_v35 = vunpack.i.l.bf16 %v3529_v31 }
 0x643   : > { %v1835_v61 = vmul.f32 %v3670_v57, %v1834_v59  ;;  %v1832_v63 = vsel %vm1831_vm7, %v3668_v47, %v1828_v58  ;;  %v2071_v41 = vpack.c.bf16 %v3531_v26, %v3531_v26 }
 0x644   : > { %v1843_v3 = vmul.f32 %v1832_v63, %v1809_v29  ;;  %v2153_v29 = vpack.c.b16 %v2150_v16, %v2149_v27  ;;  %v2070_v42 = vpack.c.bf16 %v3530_v35, %v3530_v35  ;;  %v1988_v27 = vpop.f32.mrf.mxu2 }
 0x645   : > { %v1836_v0 = vmul.f32 0.5, %v1835_v61  ;;  %v2190_v32 = vunpack.c.l.b16 %v2071_v41  ;;  %v3625_v41 = vld [vmem:[#allocation17] ss:$0 sm:$0xff] }
 0x646   : > { %v1848_v10 = vmul.f32 %v3621_v2, %v1843_v3  ;;  %v2159_v30 = vsel %vm1406_vm1, %v2153_v29, 0  ;;  %v2189_v34 = vunpack.c.l.b16 %v2070_v42 }
 0x647   : > { %v1837_v1 = vsub.f32 1.5, %v1836_v0  ;;  %2171 = vmatpush.bf16.xpose.msrb.mxu3 %v2159_v30 }
 0x648   : > { %v4741_v21 = vadd.f32 %v3622_v9, %v1848_v10  ;;  %v2192_v49 = vpack.c.b16 %v2190_v32, %v2189_v34  ;;  %v3544_v19 = vpop.permute.xlu0 %3543  ;;  %v4769_v34 = vadd.f32 %v3625_v41, %v1986_v17 }
 0x649   : > { %v1838_v4 = vmul.f32 %v3670_v57, %v1837_v1  ;;  %v3545_v25 = vunpack.i.l.bf16 %v3544_v19 }
 0x64a   : > { %v2200_v55 = vsel %vm1406_vm1, %v2192_v49, 0  ;;  %v4771_v49 = vadd.f32 %v3625_v41, %v1988_v27 }
 0x64b   : > { %v1842_v6 = vsel %vm1841_vm10, %v3670_v57, %v1838_v4  ;;  %2208 = vmatpush.bf16.xpose.msra.mxu0 %v2200_v55  ;;  %v2072_v30 = vpack.c.bf16 %v3545_v25, %v3545_v25 }
 0x64c   : > { %v1844_v11 = vmul.f32 %v1842_v6, %v1810_v36  ;;  %v3541_v36 = vunpack.i.h.bf16 %v3539_v33  ;;  %v2121_v55 = vpack.c.bf16 %v4771_v49, %v4771_v49 }
 0x64d   : > { %v3534_v38 = vpop.permute.xlu1 %3533  ;;  %v2225_v35 = vunpack.c.l.b16 %v2072_v30 }
 0x64e   : > { %v1849_v14 = vmul.f32 %v3621_v2, %v1844_v11  ;;  %v3536_v39 = vunpack.i.h.bf16 %v3534_v38  ;;  %v3535_v40 = vunpack.i.l.bf16 %v3534_v38  ;;  %v2069_v43 = vpack.c.bf16 %v3541_v36, %v3541_v36  ;;  %v1991_v38 = vpop.f32.mrf.mxu2 }
 0x64f   : > { %v1992_v42 = vadd.f32 %v3625_v41, %v1991_v38 }
 0x650   : > { %v4743_v22 = vadd.f32 %v3622_v9, %v1849_v14  ;;  %v2075_v45 = vpack.c.bf16 %v3536_v39, %v3536_v39  ;;  %v2074_v46 = vpack.c.bf16 %v3535_v40, %v3535_v40  ;;  %v2188_v50 = vunpack.c.l.b16 %v2069_v43 }
 0x652   : > { %v1855_v24 = vpack.c.bf16 %v4743_v22, %v4741_v21  ;;  %v2228_v47 = vunpack.c.l.b16 %v2075_v45  ;;  %v2227_v48 = vunpack.c.l.b16 %v2074_v46  ;;  %v2191_v58 = vpack.c.b16 %v2188_v50, %v2187_v51 }
 0x653   : > { %v2122_v46 = vpack.c.bf16 %v1992_v42, %v1992_v42 }
 0x654   : > { %3154 = vmatmul.msk.bf16.vlgmr.msrb.gmra.mxu0 %vm1230_vm0, %v1855_v24  ;;  %v2230_v53 = vpack.c.b16 %v2228_v47, %v2227_v48  ;;  %v2197_v0 = vsel %vm1406_vm1, %v2191_v58, 0  ;;  %v3546_v24 = vunpack.i.h.bf16 %v3544_v19 }
 0x655   : > { %v3549_v56 = vpop.permute.xlu1 %3548  ;;  %2209 = vmatpush.bf16.xpose.msra.mxu0 %v2197_v0  ;;  %v2399_v47 = vunpack.c.l.b16 %v2122_v46 }
 0x656   : > { %v2238_v57 = vsel %vm1406_vm1, %v2230_v53, 0  ;;  %v3551_v59 = vunpack.i.h.bf16 %v3549_v56  ;;  %v3550_v60 = vunpack.i.l.bf16 %v3549_v56  ;;  %v2073_v29 = vpack.c.bf16 %v3546_v24, %v3546_v24  ;;  %v1993_v43 = vpop.f32.mrf.mxu2 }
 0x657   : > { %2246 = vmatpush.bf16.xpose.msra.mxu3 %v2238_v57  ;;  %v1994_v44 = vadd.f32 %v3625_v41, %v1993_v43 }
 0x658   : > { %v2079_v62 = vpack.c.bf16 %v3551_v59, %v3551_v59  ;;  %v2078_v63 = vpack.c.bf16 %v3550_v60, %v3550_v60  ;;  %v2226_v26 = vunpack.c.l.b16 %v2073_v29  ;;  %v2398_v59 = vunpack.c.l.b16 %v2121_v55 }
 0x659   : > { %v4765_v45 = vpack.i.bf16 %v1994_v44, %v1992_v42  ;;  %v2123_v32 = vpack.c.bf16 %v1994_v44, %v1994_v44 }
 0x65a   : > { %v2266_v1 = vunpack.c.l.b16 %v2079_v62  ;;  %v2265_v2 = vunpack.c.l.b16 %v2078_v63  ;;  %v2229_v36 = vpack.c.b16 %v2226_v26, %v2225_v35 }
 0x65b   : > { %v2400_v48 = vunpack.c.l.b16 %v2123_v32 }
 0x65c   : > { %v2268_v5 = vpack.c.b16 %v2266_v1, %v2265_v2  ;;  %v2235_v39 = vsel %vm1406_vm1, %v2229_v36, 0 }
 0x65d   : > { %v3564_v8 = vpop.permute.xlu1 %3563  ;;  %v2402_v53 = vpack.c.b16 %v2400_v48, %v2399_v47 }
 0x65e   : > { %v2276_v7 = vsel %vm1406_vm1, %v2268_v5, 0  ;;  %v3566_v20 = vunpack.i.h.bf16 %v3564_v8  ;;  %v3565_v23 = vunpack.i.l.bf16 %v3564_v8 }
 0x65f   : > { %2284 = vmatpush.bf16.xpose.msrb.mxu0 %v2276_v7  ;;  %2247 = vmatpush.bf16.xpose.msra.mxu3 %v2235_v39 }
 0x660   : > { %v2077_v16 = vpack.c.bf16 %v3566_v20, %v3566_v20  ;;  %v2076_v28 = vpack.c.bf16 %v3565_v23, %v3565_v23  ;;  %2414 = vmatpush.bf16.msra.mxu1 %v2402_v53 }
 0x662   : > { %v2264_v31 = vunpack.c.l.b16 %v2077_v16  ;;  %v2263_v33 = vunpack.c.l.b16 %v2076_v28 }
 0x664   : > { %v2267_v37 = vpack.c.b16 %v2264_v31, %v2263_v33 }
 0x666   : > { %v2273_v40 = vsel %vm1406_vm1, %v2267_v37, 0 }
 0x667   : > { %2285 = vmatpush.bf16.xpose.msrb.mxu0 %v2273_v40 }
 0x6d1   : > { %v1905_v54 = vpop.f32.mrf.mxu0 }
 0x6d2   : > { %v1906_v61 = vadd.f32 %v3624_v52, %v1905_v54  ;;  %v2120_v54 = vpack.c.bf16 %v4769_v34, %v4769_v34 }
 0x6d4   : > { %v1910_v3 = vmul.f32 0.35355338, %v1906_v61  ;;  %v2397_v58 = vunpack.c.l.b16 %v2120_v54 }
 0x6d6   : > { %v2016_v9 = vpack.c.bf16 %v1910_v3, %v1910_v3  ;;  %v2401_v62 = vpack.c.b16 %v2398_v59, %v2397_v58 }
 0x6d8   : > { %v2142_v13 = vunpack.c.l.b16 %v2016_v9  ;;  %2415 = vmatpush.bf16.msra.mxu1 %v2401_v62  ;;  %v3264_v9 = vld [vmem:[%s1177_s26] sm:$0xff]   ;;  %s1155_s26 = scalar_lea.vmem [#allocation22], %s3089_s28 }
 0x6d9   : > { %v1907_v4 = vpop.f32.mrf.mxu0  ;;  %v3266_v24 = vunpack.c.h.bf16 %v3264_v9 }
 0x6da   : > { %v1908_v6 = vadd.f32 %v3624_v52, %v1907_v4 }
 0x6db   : > { %v2139_v16 = vmul.f32 -1e+09, %v3266_v24 }
 0x6dc   : > { %v1911_v10 = vmul.f32 0.35355338, %v1908_v6 }
 0x6de   : > { %v2017_v11 = vpack.c.bf16 %v1911_v10, %v1911_v10  ;;  %v3567_v12 = vpack.i.bf16 %v1911_v10, %v1910_v3 }
 0x6e0   : > { %v2143_v14 = vunpack.c.l.b16 %v2017_v11  ;;  %3568 = vrot.lane.b32.xlu2 %v3567_v12, %s4208_s1  ;;  %3553 = vrot.lane.b32.xlu0 %v3567_v12, %s4207_s22 }
 0x6e2   : > { %v2144_v15 = vpack.c.b16 %v2143_v14, %v2142_v13 }
 0x6e4   : > { %3183 = vmatmul.msk.bf16.vlgmr.msrb.gmra.mxu3 %vm1406_vm1, %v2144_v15 }
 0x6e8   : > { %3558 = vrot.lane.b32.xlu0 %v3567_v12, %s4209_s15  ;;  %v3265_v12 = vunpack.c.l.bf16 %v3264_v9 }
 0x6ea   : > { %v2138_v17 = vmul.f32 -1e+09, %v3265_v12 }
 0x6f0   : > { %3573 = vrot.lane.b32.xlu0 %v4765_v45, %s4207_s22 }
 0x73a   : > { %v3569_v0 = vpop.permute.xlu2 %3568 }
 0x73b   : > { %v3571_v4 = vunpack.i.h.bf16 %v3569_v0  ;;  %v3570_v5 = vunpack.i.l.bf16 %v3569_v0 }
 0x73d   : > { %v2023_v13 = vpack.c.bf16 %v3571_v4, %v3571_v4  ;;  %v2022_v14 = vpack.c.bf16 %v3570_v5, %v3570_v5 }
 0x73f   : > { %v2257_v8 = vunpack.c.l.b16 %v2023_v13  ;;  %v2256_v19 = vunpack.c.l.b16 %v2022_v14 }
 0x741   : > { %v2258_v25 = vpack.c.b16 %v2257_v8, %v2256_v19 }
 0x752   : > { %v3554_v50 = vpop.permute.xlu0 %3553 }
 0x753   : > { %v3556_v51 = vunpack.i.h.bf16 %v3554_v50  ;;  %v3555_v52 = vunpack.i.l.bf16 %v3554_v50 }
 0x755   : > { %v2019_v56 = vpack.c.bf16 %v3556_v51, %v3556_v51  ;;  %v2018_v57 = vpack.c.bf16 %v3555_v52, %v3555_v52 }
 0x757   : > { %v2181_v60 = vunpack.c.l.b16 %v2019_v56  ;;  %v2180_v61 = vunpack.c.l.b16 %v2018_v57  ;;  %v4798_v56 = vpack.i.bf16 %v4771_v49, %v4769_v34 }
 0x759   : > { %v2182_v63 = vpack.c.b16 %v2181_v60, %v2180_v61 }
 0x75a   : > { %v3559_v1 = vpop.permute.xlu0 %3558 }
 0x75b   : > { %v3561_v2 = vunpack.i.h.bf16 %v3559_v1  ;;  %v3560_v3 = vunpack.i.l.bf16 %v3559_v1  ;;  %3184 = vmatmul.msk.bf16.vlgmr.msra.gmra.mxu0 %vm1406_vm1, %v2182_v63 }
 0x75d   : > { %v2021_v6 = vpack.c.bf16 %v3561_v2, %v3561_v2  ;;  %v2020_v7 = vpack.c.bf16 %v3560_v3, %v3560_v3 }
 0x75f   : > { %v2219_v10 = vunpack.c.l.b16 %v2021_v6  ;;  %v2218_v11 = vunpack.c.l.b16 %v2020_v7 }
 0x761   : > { %v2220_v15 = vpack.c.b16 %v2219_v10, %v2218_v11 }
 0x762   : > { %v3574_v31 = vpop.permute.xlu0 %3573 }
 0x763   : > { %3185 = vmatmul.msk.bf16.vlgmr.msra.gmra.mxu3 %vm1406_vm1, %v2220_v15  ;;  %v3576_v33 = vunpack.i.h.bf16 %v3574_v31  ;;  %v3575_v26 = vunpack.i.l.bf16 %v3574_v31 }
 0x765   : > { %v2127_v35 = vpack.c.bf16 %v3576_v33, %v3576_v33  ;;  %v2126_v36 = vpack.c.bf16 %v3575_v26, %v3575_v26 }
 0x767   : > { %v2173_v20 = vpop.f32.mrf.mxu3  ;;  %v2434_v37 = vunpack.c.l.b16 %v2127_v35  ;;  %v2433_v38 = vunpack.c.l.b16 %v2126_v36 }
 0x768   : > { %v4782_v23 = vadd.f32 %v2173_v20, %v2138_v17 }
 0x769   : > { %v2436_v39 = vpack.c.b16 %v2434_v37, %v2433_v38 }
 0x76a   : > { %v2292_v27 = vsel %vm1230_vm0, %v4782_v23, -inf }
 0x76b   : > { %2293 = vmax.xlane.f32.xlu0 %v2292_v27  ;;  %3186 = vmatmul.msk.bf16.vlgmr.msrb.gmra.mxu0 %vm1406_vm1, %v2258_v25 }
 0x76c   : > { %2448 = vmatpush.bf16.msra.mxu2 %v2436_v39 }
 0x76f   : > { %v2175_v28 = vpop.f32.mrf.mxu3 }
 0x770   : > { %v4787_v29 = vadd.f32 %v2175_v28, %v2139_v16 }
 0x772   : > { %v2295_v30 = vsel %vm1230_vm0, %v4787_v29, -inf }
 0x773   : > { %2296 = vmax.xlane.f32.xlu1 %v2295_v30 }
 0x7d8   : > { %v2211_v40 = vpop.f32.mrf.mxu0 }
 0x7d9   : > { %v2212_v41 = vadd.f32 %v2211_v40, %v2138_v17 }
 0x7db   : > { %v2298_v42 = vsel %vm1230_vm0, %v2212_v41, -inf }
 0x7dc   : > { %2299 = vmax.xlane.f32.xlu0 %v2298_v42 }
 0x7de   : > { %v4810_v60 = vpop.xlane.xlu0 %2293 }
 0x7e0   : > { %v2213_v43 = vpop.f32.mrf.mxu0 }
 0x7e1   : > { %v2214_v44 = vadd.f32 %v2213_v43, %v2139_v16 }
 0x7e3   : > { %v2301_v46 = vsel %vm1230_vm0, %v2214_v44, -inf }
 0x7e4   : > { %2302 = vmax.xlane.f32.xlu1 %v2301_v46 }
 0x7e6   : > { %v2249_v32 = vpop.f32.mrf.mxu3  ;;  %v2297_v34 = vpop.xlane.xlu1 %2296 }
 0x7e7   : > { %v2250_v47 = vadd.f32 %v2249_v32, %v2138_v17  ;;  %v2317_v19 = vsub.f32 %v4787_v29, %v2297_v34 }
 0x7e8   : > { %v2287_v48 = vpop.f32.mrf.mxu0 }
 0x7e9   : > { %v2288_v50 = vadd.f32 %v2287_v48, %v2138_v17  ;;  %v2304_v51 = vsel %vm1230_vm0, %v2250_v47, -inf  ;;  %v2326_v31 = vmul.f32 1.442695, %v2317_v19 }
 0x7ea   : > { %2305 = vmax.xlane.f32.xlu2 %v2304_v51 }
 0x7eb   : > { %v2310_v52 = vsel %vm1230_vm0, %v2288_v50, -inf }
 0x7ec   : > { %2311 = vmax.xlane.f32.xlu1 %v2310_v52 }
 0x7ee   : > { %v2251_v53 = vpop.f32.mrf.mxu3 }
 0x7ef   : > { %v2252_v54 = vadd.f32 %v2251_v53, %v2139_v16 }
 0x7f0   : > { %v2289_v57 = vpop.f32.mrf.mxu0 }
 0x7f1   : > { %v2307_v55 = vsel %vm1230_vm0, %v2252_v54, -inf  ;;  %v4806_v58 = vadd.f32 %v2289_v57, %v2139_v16 }
 0x7f2   : > { %2308 = vmax.xlane.f32.xlu0 %v2307_v55 }
 0x7f3   : > { %v2313_v59 = vsel %vm1230_vm0, %v4806_v58, -inf }
 0x802   : > { %3583 = vrot.lane.b32.xlu2 %v4798_v56, %s4207_s22  ;;  %s4992_s22 = sld [smem:[#allocation39_spill]] }
 0x805   : > { %3578 = vrot.lane.b32.xlu1 %v4765_v45, %s4209_s15 }
 0x806   : > { %3588 = vrot.lane.b32.xlu0 %v4798_v56, %s4209_s15  ;;  %s4994_s15 = sld [smem:[#allocation45_spill]] }
 0x82b   : > { %2314 = vmax.xlane.f32.xlu2 %v2313_v59 }
 0x84f   : > { %v2300_v49 = vpop.xlane.xlu0 %2299 }
 0x850   : > { %v2318_v61 = vsub.f32 %v2212_v41, %v2300_v49 }
 0x852   : > { %v2328_v62 = vmul.f32 1.442695, %v2318_v61  ;;  %v2316_v61 = vsub.f32 %v4782_v23, %v4810_v60 }
 0x854   : > { %3671 = vpow2.f32 %v2328_v62 }
 0x857   : > { %v2303_v63 = vpop.xlane.xlu1 %2302 }
 0x858   : > { %v2319_v0 = vsub.f32 %v2214_v44, %v2303_v63  ;;  %v2324_v63 = vmul.f32 1.442695, %v2316_v61 }
 0x85a   : > { %v4812_v1 = vpop.eup %3671  ;;  %v2330_v2 = vmul.f32 1.442695, %v2319_v0 }
 0x85b   : > { %v2346_v3 = vsel %vm1230_vm0, %v4812_v1, 0.0 }
 0x85c   : > { %3673 = vpow2.f32 %v2330_v2  ;;  %2347 = vadd.xlane.f32.xlu2 %v2346_v3 }
 0x85d   : > { %v2306_v4 = vpop.xlane.xlu2 %2305 }
 0x85e   : > { %v2320_v5 = vsub.f32 %v2250_v47, %v2306_v4 }
 0x85f   : > { %v2312_v6 = vpop.xlane.xlu1 %2311 }
 0x860   : > { %v2332_v7 = vmul.f32 1.442695, %v2320_v5  ;;  %v2322_v9 = vsub.f32 %v2288_v50, %v2312_v6 }
 0x862   : > { %v4816_v10 = vpop.eup %3673  ;;  %3675 = vpow2.f32 %v2332_v7  ;;  %v2336_v12 = vmul.f32 1.442695, %v2322_v9 }
 0x863   : > { %v2349_v11 = vsel %vm1230_vm0, %v4816_v10, 0.0 }
 0x864   : > { %2350 = vadd.xlane.f32.xlu0 %v2349_v11  ;;  %3677 = vpow2.f32 %v2336_v12 }
 0x865   : > { %v3584_v13 = vpop.permute.xlu2 %3583  ;;  %v2309_v14 = vpop.xlane.xlu0 %2308 }
 0x866   : > { %v3586_v15 = vunpack.i.h.bf16 %v3584_v13  ;;  %v3585_v17 = vunpack.i.l.bf16 %v3584_v13  ;;  %v2321_v8 = vsub.f32 %v2252_v54, %v2309_v14 }
 0x868   : > { %v4821_v20 = vpop.eup %3675  ;;  %v2125_v24 = vpack.c.bf16 %v3586_v15, %v3586_v15  ;;  %v2124_v25 = vpack.c.bf16 %v3585_v17, %v3585_v17  ;;  %v2334_v27 = vmul.f32 1.442695, %v2321_v8 }
 0x869   : > { %v2352_v16 = vsel %vm1230_vm0, %v4821_v20, 0.0 }
 0x86a   : > { %v2432_v28 = vunpack.c.l.b16 %v2125_v24  ;;  %v2431_v30 = vunpack.c.l.b16 %v2124_v25  ;;  %3679 = vpow2.f32 %v2334_v27  ;;  %2353 = vadd.xlane.f32.xlu1 %v2352_v16  ;;  %v4825_v26 = vpop.eup %3677 }
 0x86b   : > { %3681 = vpow2.f32 %v2326_v31  ;;  %v2358_v29 = vsel %vm1230_vm0, %v4825_v26, 0.0 }
 0x86c   : > { %v2435_v33 = vpack.c.b16 %v2432_v28, %v2431_v30 }
 0x86e   : > { %2449 = vmatpush.bf16.msra.mxu2 %v2435_v33 }
 0x870   : > { %v4827_v35 = vpop.eup %3679 }
 0x871   : > { %v2355_v36 = vsel %vm1230_vm0, %v4827_v35, 0.0  ;;  %v4833_v37 = vpop.eup %3681 }
 0x872   : > { %2359 = vadd.xlane.f32.xlu1 %v2358_v29  ;;  %2356 = vadd.xlane.f32.xlu2 %v2355_v36  ;;  %v2343_v44 = vsel %vm1230_vm0, %v4833_v37, 0.0 }
 0x877   : > { %v3579_v38 = vpop.permute.xlu1 %3578 }
 0x878   : > { %v3581_v39 = vunpack.i.h.bf16 %v3579_v38  ;;  %v3580_v40 = vunpack.i.l.bf16 %v3579_v38  ;;  %v3589_v41 = vpop.permute.xlu0 %3588 }
 0x879   : > { %v3591_v42 = vunpack.i.h.bf16 %v3589_v41  ;;  %v3590_v43 = vunpack.i.l.bf16 %v3589_v41 }
 0x87a   : > { %v2131_v46 = vpack.c.bf16 %v3581_v39, %v3581_v39  ;;  %v2130_v32 = vpack.c.bf16 %v3580_v40, %v3580_v40  ;;  %2344 = vadd.xlane.f32.xlu1 %v2343_v44 }
 0x87b   : > { %v2129_v47 = vpack.c.bf16 %v3591_v42, %v3591_v42  ;;  %v2128_v48 = vpack.c.bf16 %v3590_v43, %v3590_v43 }
 0x87c   : > { %v2468_v50 = vunpack.c.l.b16 %v2131_v46  ;;  %v2467_v51 = vunpack.c.l.b16 %v2130_v32 }
 0x87d   : > { %v2466_v53 = vunpack.c.l.b16 %v2129_v47  ;;  %v2465_v54 = vunpack.c.l.b16 %v2128_v48 }
 0x87e   : > { %v2470_v52 = vpack.c.b16 %v2468_v50, %v2467_v51 }
 0x87f   : > { %v2469_v55 = vpack.c.b16 %v2466_v53, %v2465_v54 }
 0x880   : > { %2482 = vmatpush.bf16.msrb.mxu3 %v2470_v52 }
 0x884   : > { %2483 = vmatpush.bf16.msrb.mxu3 %v2469_v55 }
 0x88a   : > { %3593 = vrot.lane.b32.xlu2 %v4765_v45, %s4208_s1 }
 0x892   : > { %3598 = vrot.lane.b32.xlu2 %v4798_v56, %s4208_s1  ;;  %s4993_s1 = smov %s4992_s22 }
 0x89e   : > { %v2315_v57 = vpop.xlane.xlu2 %2314 }
 0x89f   : > { %v2323_v59 = vsub.f32 %v4806_v58, %v2315_v57 }
 0x8a1   : > { %v2338_v34 = vmul.f32 1.442695, %v2323_v59 }
 0x8a3   : > { %3683 = vpow2.f32 %v2338_v34 }
 0x8a4   : > { %3685 = vpow2.f32 %v2324_v63 }
 0x8a9   : > { %v4842_v49 = vpop.eup %3683 }
 0x8aa   : > { %v2361_v62 = vsel %vm1230_vm0, %v4842_v49, 0.0  ;;  %v4848_v45 = vpop.eup %3685 }
 0x8ab   : > { %2362 = vadd.xlane.f32.xlu0 %v2361_v62  ;;  %v2340_v56 = vsel %vm1230_vm0, %v4848_v45, 0.0 }
 0x8bb   : > { %2341 = vadd.xlane.f32.xlu2 %v2340_v56 }
 0x8cf   : > { %v2348_v58 = vpop.xlane.xlu2 %2347 }
 0x8d0   : > { %3687 = vrcp.f32 %v2348_v58 }
 0x8d6   : > { %v3688_v2 = vpop.eup %3687 }
 0x8d7   : > { %v2351_v0 = vpop.xlane.xlu0 %2350  ;;  %v2374_v3 = vmul.f32 %v3688_v2, %v4812_v1 }
 0x8d8   : > { %3689 = vrcp.f32 %v2351_v0 }
 0x8d9   : > { %v2382_v4 = vpack.c.bf16 %v2374_v3, %v2374_v3 }
 0x8db   : > { %v2424_v7 = vunpack.c.l.b16 %v2382_v4 }
 0x8dd   : > { %v2354_v60 = vpop.xlane.xlu1 %2353 }
 0x8de   : > { %v3690_v23 = vpop.eup %3689  ;;  %3691 = vrcp.f32 %v2354_v60 }
 0x8df   : > { %v2375_v5 = vmul.f32 %v3690_v23, %v4816_v10 }
 0x8e1   : > { %v2383_v6 = vpack.c.bf16 %v2375_v5, %v2375_v5 }
 0x8e3   : > { %v2425_v9 = vunpack.c.l.b16 %v2383_v6  ;;  %v3251_v6 = vld [vmem:[%s4992_s22 + $0x8] sm:$0xff] }
 0x8e4   : > { %v3692_v13 = vpop.eup %3691  ;;  %2579 = vmatpush.bf16.msrb.mxu1 %v3251_v6  ;;  %v3628_v6 = vld [vmem:[%s4358_s25] ss:$0 sm:$0xff] }
 0x8e5   : > { %v2426_v11 = vpack.c.b16 %v2425_v9, %v2424_v7  ;;  %v2357_v12 = vpop.xlane.xlu2 %2356  ;;  %v2376_v14 = vmul.f32 %v3692_v13, %v4821_v20  ;;  %v2360_v43 = vpop.xlane.xlu1 %2359  ;;  %v3250_v7 = vld [vmem:[%s4993_s1] sm:$0xff] }
 0x8e6   : > { %3693 = vrcp.f32 %v2357_v12 }
 0x8e7   : > { %3188 = vmatmul.msk.bf16.vlgmr.msra.gmra.mxu2 %vm1230_vm0, %v2426_v11  ;;  %v2384_v1 = vpack.c.bf16 %v2376_v14, %v2376_v14  ;;  %3695 = vrcp.f32 %v2360_v43 }
 0x8e8   : > { %2580 = vmatpush.bf16.msrb.mxu1 %v3250_v7 }
 0x8e9   : > { %v2458_v16 = vunpack.c.l.b16 %v2384_v1 }
 0x8ec   : > { %v3694_v15 = vpop.eup %3693 }
 0x8ed   : > { %v3594_v17 = vpop.permute.xlu2 %3593  ;;  %v2377_v8 = vmul.f32 %v3694_v15, %v4827_v35  ;;  %v3696_v46 = vpop.eup %3695 }
 0x8ee   : > { %v3596_v19 = vunpack.i.h.bf16 %v3594_v17  ;;  %v3595_v24 = vunpack.i.l.bf16 %v3594_v17  ;;  %v2378_v32 = vmul.f32 %v3696_v46, %v4825_v26  ;;  %v2345_v50 = vpop.xlane.xlu1 %2344 }
 0x8ef   : > { %v2385_v10 = vpack.c.bf16 %v2377_v8, %v2377_v8 }
 0x8f0   : > { %v2135_v25 = vpack.c.bf16 %v3596_v19, %v3596_v19  ;;  %v2134_v27 = vpack.c.bf16 %v3595_v24, %v3595_v24  ;;  %v2386_v48 = vpack.c.bf16 %v2378_v32, %v2378_v32 }
 0x8f1   : > { %v2459_v28 = vunpack.c.l.b16 %v2385_v10 }
 0x8f2   : > { %v2502_v30 = vunpack.c.l.b16 %v2135_v25  ;;  %v2501_v31 = vunpack.c.l.b16 %v2134_v27  ;;  %v2492_v53 = vunpack.c.l.b16 %v2386_v48 }
 0x8f3   : > { %v2460_v33 = vpack.c.b16 %v2459_v28, %v2458_v16 }
 0x8f4   : > { %v2504_v29 = vpack.c.b16 %v2502_v30, %v2501_v31 }
 0x8f5   : > { %v3599_v36 = vpop.permute.xlu2 %3598  ;;  %3189 = vmatmul.msk.bf16.vlgmr.msrb.gmra.mxu3 %vm1230_vm0, %v2460_v33  ;;  %v3626_v33 = vld [vmem:[#allocation19] ss:$0 sm:$0xff] }
 0x8f6   : > { %v3601_v38 = vunpack.i.h.bf16 %v3599_v36  ;;  %v3600_v39 = vunpack.i.l.bf16 %v3599_v36  ;;  %2516 = vmatpush.bf16.msra.mxu0 %v2504_v29 }
 0x8f8   : > { %v2133_v20 = vpack.c.bf16 %v3601_v38, %v3601_v38  ;;  %v2132_v40 = vpack.c.bf16 %v3600_v39, %v3600_v39 }
 0x8fa   : > { %v2500_v35 = vunpack.c.l.b16 %v2133_v20  ;;  %v2499_v41 = vunpack.c.l.b16 %v2132_v40 }
 0x8fc   : > { %v2503_v42 = vpack.c.b16 %v2500_v35, %v2499_v41 }
 0x8fe   : > { %2517 = vmatpush.bf16.msra.mxu0 %v2503_v42 }
 0x91e   : > { %v2363_v44 = vpop.xlane.xlu0 %2362 }
 0x91f   : > { %3697 = vrcp.f32 %v2363_v44 }
 0x920   : > { %3699 = vrcp.f32 %v2345_v50 }
 0x925   : > { %v3698_v47 = vpop.eup %3697 }
 0x926   : > { %v2379_v51 = vmul.f32 %v3698_v47, %v4842_v49  ;;  %v3700_v59 = vpop.eup %3699 }
 0x927   : > { %v2373_v34 = vmul.f32 %v3700_v59, %v4833_v37 }
 0x928   : > { %v2387_v52 = vpack.c.bf16 %v2379_v51, %v2379_v51 }
 0x929   : > { %v2381_v62 = vpack.c.bf16 %v2373_v34, %v2373_v34 }
 0x92a   : > { %v2493_v54 = vunpack.c.l.b16 %v2387_v52 }
 0x92b   : > { %v2391_v56 = vunpack.c.l.b16 %v2381_v62 }
 0x92c   : > { %v2494_v55 = vpack.c.b16 %v2493_v54, %v2492_v53 }
 0x92e   : > { %v2342_v57 = vpop.xlane.xlu2 %2341  ;;  %3190 = vmatmul.msk.bf16.vlgmr.msra.gmra.mxu0 %vm1230_vm0, %v2494_v55  ;;  %v3252_v55 = vld [vmem:[#allocation20] sm:$0xff] }
 0x92f   : > { %3701 = vrcp.f32 %v2342_v57 }
 0x935   : > { %v3702_v61 = vpop.eup %3701 }
 0x936   : > { %v2372_v26 = vmul.f32 %v3702_v61, %v4848_v45 }
 0x938   : > { %v2380_v63 = vpack.c.bf16 %v2372_v26, %v2372_v26 }
 0x93a   : > { %v2390_v49 = vunpack.c.l.b16 %v2380_v63 }
 0x93c   : > { %v2392_v58 = vpack.c.b16 %v2391_v56, %v2390_v49 }
 0x93e   : > { %3187 = vmatmul.msk.bf16.vlgmr.msra.gmra.mxu1 %vm1230_vm0, %v2392_v58 }
 0x96a   : > { %v2451_v0 = vpop.f32.mrf.mxu2 }
 0x972   : > { %v2453_v2 = vpop.f32.mrf.mxu2 }
 0x973   : > { %v3602_v3 = vpack.i.bf16 %v2453_v2, %v2451_v0 }
 0x975   : > { %3603 = vrot.lane.b32.xlu0 %v3602_v3, %s4210_s10 }
 0x978   : > { %v2485_v23 = vpop.f32.mrf.mxu3 }
 0x980   : > { %v2487_v60 = vpop.f32.mrf.mxu3 }
 0x981   : > { %v3607_v37 = vpack.i.bf16 %v2487_v60, %v2485_v23 }
 0x983   : > { %3608 = vrot.lane.b32.xlu1 %v3607_v37, %s4211_s18  ;;  %v3627_v37 = vld [vmem:[%s4994_s15] ss:$0 sm:$0xff]  ;;  %s4997_s18 = sld [smem:[#allocation42_spill]]  ;;  %s2812_s15 = scalar_lea.hbm %s5000_s3, %s3258_s7 }
 0x984   : > { %s4091_s7 = scalar_lea.hbm %s5000_s3, 32 }
 0x9ab   : > { %v2519_v4 = vpop.f32.mrf.mxu0 }
 0x9b3   : > { %v2521_v45 = vpop.f32.mrf.mxu0 }
 0x9b4   : > { %v3612_v5 = vpack.i.bf16 %v2521_v45, %v2519_v4 }
 0x9b6   : > { %3613 = vrot.lane.b32.xlu2 %v3612_v5, %s4212_s11  ;;  %s4999_s11 = sld [smem:[#allocation47_spill]] }
 0x9bb   : > { %v2417_v9 = vpop.f32.mrf.mxu1 }
 0x9c3   : > { %v2419_v1 = vpop.f32.mrf.mxu1 }
 0x9e7   : > { %v3604_v11 = vpop.permute.xlu0 %3603 }
 0x9e8   : > { %v3606_v13 = vunpack.i.h.bf16 %v3604_v11  ;;  %v3605_v14 = vunpack.i.l.bf16 %v3604_v11 }
 0x9ea   : > { %v2549_v19 = vsel %vm1406_vm1, %v2419_v1, %v3606_v13  ;;  %v2548_v24 = vsel %vm1406_vm1, %v2417_v9, %v3605_v14  ;;  %v3255_v1 = vld [vmem:[%s4995_s17 + $0x8] sm:$0xff] }
 0x9f5   : > { %v3609_v12 = vpop.permute.xlu1 %3608 }
 0x9f6   : > { %v3611_v15 = vunpack.i.h.bf16 %v3609_v12  ;;  %v3610_v17 = vunpack.i.l.bf16 %v3609_v12 }
 0x9f8   : > { %v2551_v27 = vsel %vm1517_vm2, %v2549_v19, %v3611_v15  ;;  %v2550_v16 = vsel %vm1517_vm2, %v2548_v24, %v3610_v17  ;;  %v3257_v15 = vld [vmem:[%s4995_s17 + $0x18] sm:$0xff]  ;;  %v3256_v17 = vld [vmem:[%s4995_s17 + $0x10] sm:$0xff]  ;;  %v3629_v24 = vld [vmem:[%s4996_s2] ss:$0 sm:$0xff]  ;;  %vm2722_vm2 = vcmask 523264   ;;  %s2813_s2 = sshll.u32 %s1155_s26, 4  ;;  %s2814_s2 = int_to_ptr.vmem [resolvable:$true] %s2813_s2 }
 0x9f9   : > { %2730 = vmatpush.bf16.msra.mxu3 %v3257_v15 }
 0x9fd   : > { %2731 = vmatpush.bf16.msra.mxu3 %v3256_v17 }
 0xa01   : > { %2732 = vmatpush.bf16.msra.mxu3 %v3255_v1 }
 0xa10   : > { %v3614_v8 = vpop.permute.xlu2 %3613 }
 0xa11   : > { %v3616_v10 = vunpack.i.h.bf16 %v3614_v8  ;;  %v3615_v25 = vunpack.i.l.bf16 %v3614_v8  ;;  %v3254_v8 = vld [vmem:[%s4995_s17] sm:$0xff] }
 0xa12   : > { %2733 = vmatpush.bf16.msra.mxu3 %v3254_v8 }
 0xa13   : > { %v2552_v28 = vsel %vm1754_vm3, %v2550_v16, %v3615_v25  ;;  %v2553_v30 = vsel %vm1754_vm3, %v2551_v27, %v3616_v10 }
 0xa14   : > { %v2554_v31 = vpack.c.bf16 %v2553_v30, %v2552_v28 }
 0xa16   : > { %3199 = vmatmul.msk.bf16.vlgmr.msrb.gmra.mxu1 %vm1230_vm0, %v2554_v31  ;;  %v3630_v31 = vld [vmem:[%s4997_s18] ss:$0 sm:$0xff]  ;;  %s2815_s18 = sshll.u32 %s2812_s15, 4  ;;  %s2816_s18 = int_to_ptr.hbm [resolvable:$true] %s2815_s18 }
 0xa93   : > { %v2582_v29 = vpop.f32.mrf.mxu1 }
 0xa94   : > { %v2583_v36 = vadd.f32 %v3626_v33, %v2582_v29 }
 0xa96   : > { %v2587_v38 = vadd.f32 %v2583_v36, %v4741_v21 }
 0xa98   : > { %v2591_v39 = vsel %vm1230_vm0, %v2587_v38, 0.0 }
 0xa99   : > { %2592 = vadd.xlane.f32.xlu0 %v2591_v39 }
 0xa9b   : > { %v2584_v20 = vpop.f32.mrf.mxu1 }
 0xa9c   : > { %v2585_v40 = vadd.f32 %v3626_v33, %v2584_v20 }
 0xa9e   : > { %v2588_v35 = vadd.f32 %v2585_v40, %v4743_v22  ;;  %v3253_v22 = vld [vmem:[#allocation20 + $0x8] sm:$0xff] }
 0xa9f   : > { %2675 = vmatpush.bf16.msrb.mxu2 %v3253_v22 }
 0xaa0   : > { %v2594_v41 = vsel %vm1230_vm0, %v2588_v35, 0.0 }
 0xaa1   : > { %2595 = vadd.xlane.f32.xlu1 %v2594_v41 }
 0xaa3   : > { %2676 = vmatpush.bf16.msrb.mxu2 %v3252_v55 }
 0xb0c   : > { %v2593_v42 = vpop.xlane.xlu0 %2592 }
 0xb0d   : > { %v2597_v43 = vmul.f32 %v2593_v42, %v4723_v18 }
 0xb0f   : > { %v2599_v44 = vsub.f32 %v2587_v38, %v2597_v43 }
 0xb11   : > { %v2601_v46 = vmul.f32 %v2599_v44, %v2599_v44 }
 0xb13   : > { %v2603_v32 = vsel %vm1230_vm0, %v2601_v46, 0.0 }
 0xb14   : > { %v2596_v47 = vpop.xlane.xlu1 %2595  ;;  %2604 = vadd.xlane.f32.xlu2 %v2603_v32 }
 0xb15   : > { %v2598_v21 = vmul.f32 %v2596_v47, %v4723_v18 }
 0xb17   : > { %v2600_v48 = vsub.f32 %v2588_v35, %v2598_v21 }
 0xb19   : > { %v2602_v50 = vmul.f32 %v2600_v48, %v2600_v48 }
 0xb1b   : > { %v2606_v51 = vsel %vm1230_vm0, %v2602_v50, 0.0 }
 0xb1c   : > { %2607 = vadd.xlane.f32.xlu0 %v2606_v51 }
 0xb87   : > { %v2605_v52 = vpop.xlane.xlu2 %2604 }
 0xb88   : > { %v2609_v53 = vmul.f32 %v2605_v52, %v4723_v18 }
 0xb8a   : > { %v2611_v54 = vadd.f32 1e-06, %v2609_v53 }
 0xb8c   : > { %3703 = vrsqrt.f32 %v2611_v54  ;;  %vm2619_vm12 = vweird.f32 %v2611_v54 }
 0xb8f   : > { %v2608_v57 = vpop.xlane.xlu0 %2607 }
 0xb90   : > { %v2610_v59 = vmul.f32 %v2608_v57, %v4723_v18 }
 0xb92   : > { %v3704_v34 = vpop.eup %3703  ;;  %v2612_v61 = vadd.f32 1e-06, %v2610_v59 }
 0xb93   : > { %v2614_v62 = vmul.f32 %v3704_v34, %v2611_v54  ;;  %vm2620_vm11 = vweird.f32 %v3704_v34 }
 0xb94   : > { %3705 = vrsqrt.f32 %v2612_v61  ;;  %vm2621_vm13 = vmor %vm2619_vm12, %vm2620_vm11  ;;  %vm2629_vm15 = vweird.f32 %v2612_v61 }
 0xb95   : > { %v2615_v26 = vmul.f32 %v3704_v34, %v2614_v62 }
 0xb97   : > { %v2616_v63 = vmul.f32 0.5, %v2615_v26 }
 0xb99   : > { %v2617_v56 = vsub.f32 1.5, %v2616_v63 }
 0xb9a   : > { %v3706_v49 = vpop.eup %3705 }
 0xb9b   : > { %v2618_v58 = vmul.f32 %v3704_v34, %v2617_v56  ;;  %v2624_v0 = vmul.f32 %v3706_v49, %v2612_v61  ;;  %vm2630_vm14 = vweird.f32 %v3706_v49 }
 0xb9c   : > { %vm2631_vm1 = vmor %vm2629_vm15, %vm2630_vm14 }
 0xb9d   : > { %v2625_v2 = vmul.f32 %v3706_v49, %v2624_v0  ;;  %v2622_v3 = vsel %vm2621_vm13, %v3704_v34, %v2618_v58  ;;  %v3632_v0 = vld [vmem:[%s4999_s11] ss:$0 sm:$0xff]  ;;  %s4085_s11 = sshra.s32 %s2816_s18, 4  ;;  %s4086_s11 = int_to_ptr.hbm [resolvable:$true] %s4085_s11 }
 0xb9e   : > { %v2633_v4 = vmul.f32 %v2622_v3, %v2599_v44  ;;  %s4087_s28 = scalar_lea.hbm %s4086_s11, 16  ;;  %p4092_p8 = scmp.lt.s32.totalorder %s4086_s11, %s5000_s3 }
 0xb9f   : > { %v2626_v23 = vmul.f32 0.5, %v2625_v2  ;;  %p4088_p0 = scmp.ne.s32.totalorder %s4086_s11, %s4087_s28  ;;  %p4093_p11 = scmp.lt.s32.totalorder %s4091_s7, %s4087_s28 }
 0xba0   : > { %v2638_v7 = vmul.f32 %v3627_v37, %v2633_v4 }
 0xba1   : > { %v2627_v60 = vsub.f32 1.5, %v2626_v23  ;;  %p4089_p4 = pnand %p4088_p0, %p4413_p5  ;;  %p4094_p13 = por %p4093_p11, %p4092_p8 }
 0xba2   : > { %v2643_v12 = vadd.f32 %v3628_v6, %v2638_v7 }
 0xba3   : > { %v2628_v45 = vmul.f32 %v3706_v49, %v2627_v60  ;;  %p4090_p7 = pneg %p4089_p4 }
 0xba5   : > { %v2632_v5 = vsel %vm2631_vm1, %v3706_v49, %v2628_v45  ;;  %v3631_v49 = vld [vmem:[%s4998_s5] ss:$0 sm:$0xff]  ;;  %p4095_p1 = pnand %p4094_p13, %p4090_p7 }
 0xba6   : > { %v2634_v9 = vmul.f32 %v2632_v5, %v2600_v48 }
 0xba8   : > { %v2639_v11 = vmul.f32 %v3627_v37, %v2634_v9 }
 0xbaa   : > { %v2644_v13 = vadd.f32 %v3628_v6, %v2639_v11 }
 0xbac   : > { %v2645_v14 = vpack.c.bf16 %v2644_v13, %v2643_v12 }
 0xbae   : > { %3208 = vmatmul.msk.bf16.vlgmr.msrb.gmra.mxu2 %vm1230_vm0, %v2645_v14 }
 0xc31   : > { %v2678_v19 = vpop.f32.mrf.mxu2 }
 0xc32   : > { %v2679_v10 = vadd.f32 %v3629_v24, %v2678_v19 }
 0xc34   : > { %v2683_v16 = vmax.f32 %v2679_v10, 0.0 }
 0xc39   : > { %v2680_v25 = vpop.f32.mrf.mxu2 }
 0xc3a   : > { %v2681_v27 = vadd.f32 %v3629_v24, %v2680_v25 }
 0xc3c   : > { %v2684_v28 = vmax.f32 %v2681_v27, 0.0 }
 0xc3e   : > { %v2685_v30 = vpack.c.bf16 %v2684_v28, %v2683_v16 }
 0xc40   : > { %3225 = vmatmul.msk.bf16.vlgmr.msra.gmra.mxu3 %vm2722_vm2, %v2685_v30 }
 0xcc3   : > { %v2735_v33 = vpop.f32.mrf.mxu3 }
 0xcc4   : > { %v2736_v29 = vadd.f32 %v3630_v31, %v2735_v33 }
 0xcc6   : > { %v2740_v36 = vadd.f32 %v2736_v29, %v2643_v12 }
 0xcc8   : > { %v2744_v38 = vsel %vm1230_vm0, %v2740_v36, 0.0 }
 0xcc9   : > { %2745 = vadd.xlane.f32.xlu0 %v2744_v38 }
 0xccb   : > { %v2737_v39 = vpop.f32.mrf.mxu3 }
 0xccc   : > { %v2738_v20 = vadd.f32 %v3630_v31, %v2737_v39 }
 0xcce   : > { %v2741_v40 = vadd.f32 %v2738_v20, %v2644_v13 }
 0xcd0   : > { %v2747_v35 = vsel %vm1230_vm0, %v2741_v40, 0.0 }
 0xcd1   : > { %2748 = vadd.xlane.f32.xlu1 %v2747_v35 }
 0xd3c   : > { %v2746_v41 = vpop.xlane.xlu0 %2745 }
 0xd3d   : > { %v2750_v42 = vmul.f32 %v2746_v41, %v4723_v18 }
 0xd3f   : > { %v2752_v43 = vsub.f32 %v2740_v36, %v2750_v42 }
 0xd41   : > { %v2754_v44 = vmul.f32 %v2752_v43, %v2752_v43 }
 0xd43   : > { %v2756_v46 = vsel %vm1230_vm0, %v2754_v44, 0.0 }
 0xd44   : > { %v2749_v32 = vpop.xlane.xlu1 %2748  ;;  %2757 = vadd.xlane.f32.xlu0 %v2756_v46 }
 0xd45   : > { %v2751_v47 = vmul.f32 %v2749_v32, %v4723_v18 }
 0xd47   : > { %v2753_v21 = vsub.f32 %v2741_v40, %v2751_v47 }
 0xd49   : > { %v2755_v48 = vmul.f32 %v2753_v21, %v2753_v21 }
 0xd4b   : > { %v2759_v50 = vsel %vm1230_vm0, %v2755_v48, 0.0 }
 0xd4c   : > { %2760 = vadd.xlane.f32.xlu2 %v2759_v50 }
 0xdb7   : > { %v2758_v51 = vpop.xlane.xlu0 %2757 }
 0xdb8   : > { %v2762_v22 = vmul.f32 %v2758_v51, %v4723_v18 }
 0xdba   : > { %v2764_v52 = vadd.f32 1e-06, %v2762_v22 }
 0xdbc   : > { %3707 = vrsqrt.f32 %v2764_v52  ;;  %vm2772_vm4 = vweird.f32 %v2764_v52 }
 0xdbf   : > { %v2761_v53 = vpop.xlane.xlu2 %2760 }
 0xdc0   : > { %v2763_v54 = vmul.f32 %v2761_v53, %v4723_v18 }
 0xdc2   : > { %v3708_v55 = vpop.eup %3707  ;;  %v2765_v57 = vadd.f32 1e-06, %v2763_v54 }
 0xdc3   : > { %v2767_v59 = vmul.f32 %v3708_v55, %v2764_v52  ;;  %vm2773_vm3 = vweird.f32 %v3708_v55 }
 0xdc4   : > { %3709 = vrsqrt.f32 %v2765_v57  ;;  %vm2774_vm5 = vmor %vm2772_vm4, %vm2773_vm3  ;;  %vm2782_vm7 = vweird.f32 %v2765_v57 }
 0xdc5   : > { %v2768_v34 = vmul.f32 %v3708_v55, %v2767_v59 }
 0xdc7   : > { %v2769_v61 = vmul.f32 0.5, %v2768_v34 }
 0xdc9   : > { %v2770_v62 = vsub.f32 1.5, %v2769_v61 }
 0xdca   : > { %v3710_v26 = vpop.eup %3709 }
 0xdcb   : > { %v2771_v63 = vmul.f32 %v3708_v55, %v2770_v62  ;;  %v2777_v56 = vmul.f32 %v3710_v26, %v2765_v57  ;;  %vm2783_vm6 = vweird.f32 %v3710_v26 }
 0xdcc   : > { %vm2784_vm8 = vmor %vm2782_vm7, %vm2783_vm6 }
 0xdcd   : > { %v2775_v58 = vsel %vm2774_vm5, %v3708_v55, %v2771_v63  ;;  %v2778_v18 = vmul.f32 %v3710_v26, %v2777_v56 }
 0xdce   : > { %v2786_v2 = vmul.f32 %v2775_v58, %v2752_v43 }
 0xdcf   : > { %v2779_v3 = vmul.f32 0.5, %v2778_v18 }
 0xdd0   : > { %v2791_v23 = vmul.f32 %v3631_v49, %v2786_v2 }
 0xdd1   : > { %v2780_v60 = vsub.f32 1.5, %v2779_v3 }
 0xdd2   : > { %v2796_v37 = vadd.f32 %v3632_v0, %v2791_v23 }
 0xdd3   : > { %v2781_v4 = vmul.f32 %v3710_v26, %v2780_v60 }
 0xdd4   : > { %2798 = vst.msk [vmem:[%s1155_s26] sm:$0xff] %vm1230_vm0, %v2796_v37 }
 0xdd5   : > { %v2785_v45 = vsel %vm2784_vm8, %v3710_v26, %v2781_v4 }
 0xdd6   : > { %v2787_v5 = vmul.f32 %v2785_v45, %v2753_v21 }
 0xdd8   : > { %v2792_v6 = vmul.f32 %v3631_v49, %v2787_v5 }
 0xdda   : > { %v2797_v7 = vadd.f32 %v3632_v0, %v2792_v6 }
 0xddc   : > { %2799 = vst.msk [vmem:[%s1155_s26 + $0x8] sm:$0xff] %vm1230_vm0, %v2797_v7 }
 0xddd   : > { %4098 = shalt.err (!%p4095_p1)
}
 0xdde   : > { %s4214_s15 = smov 128  }
 0xddf   : > { %3315 = dma.vmem_to_hbm [thread:$0]  (%p4413_p5), %s2814_s2, 256, %s2816_s18, %s2801_s0, %s4214_s15, %s4214_s15, %s4210_s10  }
 0xde0 PF: > { %s5002_s8 = sld [smem:[#allocation51_spill]] }
 0xde1   : > { %s5003_s26 = sld [smem:[#allocation49_spill]] }
 0xde6   : > { %p3382_p2 = scmp.ge.s32.totalorder %s5002_s8, 2 }
 0xde7   : > { %s2830_s4 = sand.u32 1, %s5003_s26  }
 0xde8   : > { %p3355_p3 = pnand %p3382_p2, %p4417_p6  ;;  %s2831_s5 = scalar_lea.sflag [#allocation4], %s2830_s4 }
 0xdea   : > { %p3356_p10 = pneg %p3355_p3 }
 0xdec   : > { %4144 = dma.done.wait (%p3356_p10), %s2831_s5, 256  }
 0xded   : > { %4146 = vsyncadd (%p3356_p10), %s2831_s5, 4294967040  ;;  %s5005_s22 = sld [smem:[#allocation52_spill]]  ;;  %s5008_s15 = smov %s4153_s16 }
 0xdee   : > { %s5006_s11 = sld [smem:[#allocation50_spill]] }
 0xdef   : > { %s5007_s18 = sld [smem:[#allocation53_spill]] }
 0xdf3   : > { %p78_p9 = scmp.ge.s32.totalorder %s5005_s22, 4  }
 0xdf4   : > { %s5009_s16 = smov %s5006_s11 }
 0xdf5   :  { %80 = sbr.rel (!%p78_p9) target bundleno = 66 (0x42), region = 263 }
 0xdfa   :  { %2837 = vsyncpa [#allocation3], 1 }
 0xdfb   :  { %2839 = vsyncpa [#allocation3 + $0x1], 1 }
 0xdfc   :  { %2840 = vsyncpa [#allocation6], 1 }
 0xdfd   :  { %2841 = vsyncpa [#allocation9], 1 }
 0xdfe   :  { %2842 = vsyncpa [#allocation12], 1 }
 0xdff   :  { %2843 = vsyncpa [#allocation15], 1 }
 0xe00   :  { %2844 = vsyncpa [#allocation18], 1 }
 0xe01   :  { %2845 = vsyncpa [#allocation21], 1 }
 0xe02   :  { %2846 = vsyncpa [#allocation4], 1 }
 0xe03   :  { %2848 = vsyncpa [#allocation4 + $0x1], 1 }

</bundles_post_ra>
